<compile_context>
chip_gen: v7x
topology: tpu7x:2x2x1
jax: 0.10.0
libtpu: 0.0.40
codegen_flags: <defaults>
</compile_context>

<pallas_src>
import jax
import jax.numpy as jnp
from jax import lax
from jax.experimental import pallas as pl
from jax.experimental.pallas import tpu as pltpu


# ----------------------------------------------------------------------------
# Static slice plans for the stage-1 corner patches
# ----------------------------------------------------------------------------
def _stage1_corner_pieces(kh, kw, icp, stride):
    """Per 2x2-pool-corner slice plan into the space-to-depth(2*stride) input.

    Each piece is (row_block_off, col_block_off, chan_off, chan_width); lane-
    concatenating the pieces yields the conv patch in (kh, kw, icp) order.
    """
    s2d = 2 * stride
    corners = []
    for a in (0, 1):
        for b in (0, 1):
            pieces = []
            for i in range(kh):
                fr = stride * a + i
                dr, rp = fr // s2d, fr % s2d
                j = 0
                while j < kw:
                    fc = stride * b + j
                    dc, cp = fc // s2d, fc % s2d
                    cnt = min(kw - j, s2d * (dc + 1) - fc)
                    pieces.append((dr, dc, (rp * s2d + cp) * icp, icp * cnt))
                    j += cnt
            corners.append(pieces)
    return corners


# ----------------------------------------------------------------------------
# Fully fused two-stage kernel (one pallas_call for the whole module)
# ----------------------------------------------------------------------------
def _fused_forward(x4, w1m, b1r, w2m, b2r, *, bt, icp, s1, kh1, kw1, oc1,
                   kh2, kw2, oc2, ph1, pw1):
    n_pad, hb, wb, cs = x4.shape
    k1, k2 = kh1 * kw1 * icp, kh2 * kw2 * oc1
    n1 = ph1 * pw1                         # stage-1 pooled positions / image
    oh2 = ph1 - kh2 + 1                    # stage-2 conv rows
    ph2, pw2 = oh2 // 2, (pw1 - kw2 + 1) // 2
    scr_rows = n1 + pw1                    # flat scratch rows (+overread pad)
    corner_pieces = _stage1_corner_pieces(kh1, kw1, icp, s1)

    def kernel(x_ref, w1_ref, b1_ref, w2_ref, b2_ref, o_ref, p1_ref):
        # ---- stage 1: Conv(icp->64, k=7, s=2) + pool as ONE stacked matmul --
        corner_rows = []
        for pieces in corner_pieces:                       # 4 pool corners
            slabs = [x_ref[:, dr:dr + ph1, dc:dc + pw1, c0:c0 + cw]
                     for (dr, dc, c0, cw) in pieces]
            patch = jnp.concatenate(slabs, axis=-1)        # (bt, ph1, pw1, k1)
            corner_rows.append(patch.reshape(bt * n1, k1))
        patches1 = jnp.concatenate(corner_rows, axis=0)    # (4*bt*n1, k1)
        y1 = jnp.dot(patches1, w1_ref[...],
                     preferred_element_type=jnp.float32)
        p1 = jnp.max(y1.reshape(4, bt * n1, oc1), axis=0)  # fused 2x2 max-pool
        p1 = p1 + b1_ref[...]
        p1 = jnp.where(p1 > 0, p1, 0.1 * p1)               # LeakyReLU(0.1)

        # Stage-1 activation stays on-chip: flat (y*pw1 + x) rows in VMEM.
        p1_ref[:, 0:n1, :] = p1.reshape(bt, n1, oc1)
        p1_ref[:, n1:scr_rows, :] = jnp.zeros((bt, scr_rows - n1, oc1),
                                              jnp.float32)

        # ---- stage 2: Conv(64->192, k=3) + pool as ONE matmul ---------------
        # Tap (i, j) of the 3x3 conv == contiguous scratch rows
        # [i*pw1 + j, i*pw1 + j + oh2*pw1); overreads land in the zero pad or
        # in columns the pool below never touches.
        taps = [p1_ref[:, i * pw1 + j: i * pw1 + j + oh2 * pw1, :]
                for i in range(kh2) for j in range(kw2)]
        patches2 = jnp.concatenate(taps, axis=-1)          # (bt, oh2*pw1, k2)
        y2 = jnp.dot(patches2.reshape(bt * oh2 * pw1, k2), w2_ref[...],
                     preferred_element_type=jnp.float32)
        y2 = y2.reshape(bt, oh2, pw1, oc2)

        # 2x2 max-pool of the raw conv result, then bias + LeakyReLU once
        # (exact: per-channel bias + monotone activation commute with max).
        out_rows = []
        for py in range(ph2):
            h = jnp.maximum(y2[:, 2 * py], y2[:, 2 * py + 1])  # (bt, pw1, oc2)
            cols = [jnp.maximum(h[:, 2 * px:2 * px + 1, :],
                                h[:, 2 * px + 1:2 * px + 2, :])
                    for px in range(pw2)]
            out_rows.append(jnp.concatenate(cols, axis=1)
                            .reshape(bt, 1, pw2, oc2))
        out = jnp.concatenate(out_rows, axis=1) + b2_ref[...]
        o_ref[...] = jnp.where(out > 0, out, 0.1 * out).astype(o_ref.dtype)

    return pl.pallas_call(
        kernel,
        out_shape=jax.ShapeDtypeStruct((n_pad, ph2, pw2, oc2), jnp.float32),
        grid=(n_pad // bt,),
        in_specs=[
            pl.BlockSpec((bt, hb, wb, cs), lambda g: (g, 0, 0, 0)),
            pl.BlockSpec((k1, oc1), lambda g: (0, 0)),
            pl.BlockSpec((1, oc1), lambda g: (0, 0)),
            pl.BlockSpec((k2, oc2), lambda g: (0, 0)),
            pl.BlockSpec((1, oc2), lambda g: (0, 0)),
        ],
        out_specs=pl.BlockSpec((bt, ph2, pw2, oc2), lambda g: (g, 0, 0, 0)),
        scratch_shapes=[pltpu.VMEM((bt, scr_rows, oc1), jnp.float32)],
        compiler_params=pltpu.CompilerParams(
            dimension_semantics=("parallel",),        # shards batch over TCs
            vmem_limit_bytes=32 * 1024 * 1024,        # safe on v5e/v6e/v7x
        ),
    )(x4, w1m, b1r, w2m, b2r)


# ----------------------------------------------------------------------------
# CNN_Module forward
# ----------------------------------------------------------------------------
@jax.jit
def cnn_module_forward(x_nchw, w1, b1, w2, b2):
    n, ic, h, w = x_nchw.shape
    oc1, _, kh1, kw1 = w1.shape           # 64, 3, 7, 7
    oc2, _, kh2, kw2 = w2.shape           # 192, 64, 3, 3
    s1 = 2

    oh1, ow1 = (h - kh1) // s1 + 1, (w - kw1) // s1 + 1
    ph1, pw1 = oh1 // 2, ow1 // 2
    assert pw1 % 8 == 0 and ph1 > kh2 and pw1 > kw2, (
        "fused kernel expects the stage-1 pooled width to be a multiple of 8")
    # TODO(synk): general pw1 needs the old per-row fallback path (not ported).

    s2d = 2 * s1                          # space-to-depth factor = 4
    icp = 8                               # lane-aligned padded input channels
    max_d = (s1 + kh1 - 1) // s2d
    hb = max(-(-h // s2d), ph1 + max_d)
    wb = max(-(-w // s2d), pw1 + max_d)

    # fused NCHW->NHWC transpose + channel pad + space-to-depth(4), one pass
    xp = jnp.pad(x_nchw, ((0, 0), (0, icp - ic),
                          (0, hb * s2d - h), (0, wb * s2d - w)))
    xp = xp.reshape(n, icp, hb, s2d, wb, s2d)
    x4 = jnp.transpose(xp, (0, 2, 4, 3, 5, 1)).reshape(n, hb, wb,
                                                       s2d * s2d * icp)

    # weight prep: OIHW -> (kh, kw, ic[, padded], oc) matrices
    w1m = jnp.pad(jnp.transpose(w1, (2, 3, 1, 0)),
                  ((0, 0), (0, 0), (0, icp - ic), (0, 0)))
    w1m = w1m.reshape(kh1 * kw1 * icp, oc1)
    w2m = jnp.transpose(w2, (2, 3, 1, 0)).reshape(kh2 * kw2 * oc1, oc2)

    # batch tiling: biggest tile that keeps the grid >= 2 steps (v7x: 2 TCs)
    bt = min(8, max(1, n // 2))
    n_pad = -(-n // bt) * bt
    if n_pad != n:
        x4 = jnp.pad(x4, ((0, n_pad - n), (0, 0), (0, 0), (0, 0)))

    out = _fused_forward(x4, w1m, b1.reshape(1, oc1), w2m, b2.reshape(1, oc2),
                         bt=bt, icp=icp, s1=s1, kh1=kh1, kw1=kw1, oc1=oc1,
                         kh2=kh2, kw2=kw2, oc2=oc2, ph1=ph1, pw1=pw1)
    return jnp.transpose(out[:n], (0, 3, 1, 2))           # NHWC -> NCHW


# ----------------------------------------------------------------------------
# Pure-JAX reference (correctness check)
# ----------------------------------------------------------------------------
def reference_forward(x_nchw, w1, b1, w2, b2):
    def conv(x, w, b, stride):
        y = lax.conv_general_dilated(
            x, w, window_strides=(stride, stride), padding="VALID",
            dimension_numbers=("NCHW", "OIHW", "NCHW"))
        y = y + b.reshape(1, -1, 1, 1)
        return jnp.where(y > 0, y, 0.1 * y)

    def pool(x):
        return lax.reduce_window(
            x, -jnp.inf, lax.max, (1, 1, 2, 2), (1, 1, 2, 2), "VALID")

    return pool(conv(pool(conv(x_nchw, w1, b1, 2)), w2, b2, 1))


if __name__ == "__main__":
    key = jax.random.PRNGKey(0)
    k_x, k_w1, k_b1, k_w2, k_b2 = jax.random.split(key, 5)

    # PyTorch Conv2d weight layout: OIHW.
    w1 = 0.05 * jax.random.normal(k_w1, (64, 3, 7, 7), dtype=jnp.float32)
    b1 = 0.05 * jax.random.normal(k_b1, (64,), dtype=jnp.float32)
    w2 = 0.05 * jax.random.normal(k_w2, (192, 64, 3, 3), dtype=jnp.float32)
    b2 = 0.05 * jax.random.normal(k_b2, (192,), dtype=jnp.float32)

    # NCHW input: 38x38 -> conv7/s2 -> 16 -> pool -> 8 -> conv3 -> 6 -> pool -> 3
    x = jax.random.normal(k_x, (2, 3, 38, 38), dtype=jnp.float32)

    out = jax.block_until_ready(cnn_module_forward(x, w1, b1, w2, b2))
    ref = jax.block_until_ready(reference_forward(x, w1, b1, w2, b2))

    assert out.shape == (2, 192, 3, 3), out.shape
    assert jnp.allclose(out, ref, rtol=1e-4, atol=1e-4), \
        float(jnp.max(jnp.abs(out - ref)))

    print("KERNEL_OK")
</pallas_src>

<mosaic_0001>
module attributes {stable_mosaic.version = 11 : i64} {
  func.func @kernel(%arg0: i32, %arg1: memref<1x10x10x128xf32, #tpu.memory_space<vmem>>, %arg2: memref<392x64xf32, #tpu.memory_space<vmem>>, %arg3: memref<1x64xf32, #tpu.memory_space<vmem>>, %arg4: memref<576x192xf32, #tpu.memory_space<vmem>>, %arg5: memref<1x192xf32, #tpu.memory_space<vmem>>, %arg6: memref<1x3x3x192xf32, #tpu.memory_space<vmem>>, %arg7: memref<1x72x64xf32, #tpu.memory_space<vmem>>) attributes {dimension_semantics = [#tpu.dimension_semantics<parallel>], iteration_bounds = array<i64: 2>, scalar_prefetch = 0 : i64, scratch_operands = 1 : i64, tpu.core_type = #tpu.core_type<tc>, window_params = [{transform_indices = @transform_0, window_bounds = array<i64: 1, 10, 10, 128>}, {pipeline_mode = #tpu.pipeline_mode<synchronous>, transform_indices = @transform_1, window_bounds = array<i64: 392, 64>}, {pipeline_mode = #tpu.pipeline_mode<synchronous>, transform_indices = @transform_2, window_bounds = array<i64: 1, 64>}, {pipeline_mode = #tpu.pipeline_mode<synchronous>, transform_indices = @transform_3, window_bounds = array<i64: 576, 192>}, {pipeline_mode = #tpu.pipeline_mode<synchronous>, transform_indices = @transform_4, window_bounds = array<i64: 1, 192>}, {transform_indices = @transform_5, window_bounds = array<i64: 1, 3, 3, 192>}]} {
    %c0 = arith.constant 0 : index
    %c0_0 = arith.constant 0 : index
    %c0_1 = arith.constant 0 : index
    %c0_2 = arith.constant 0 : index
    %0 = vector.load %arg1[%c0, %c0_0, %c0_1, %c0_2] : memref<1x10x10x128xf32, #tpu.memory_space<vmem>>, vector<1x8x8x32xf32>
    %c0_3 = arith.constant 0 : index
    %c0_4 = arith.constant 0 : index
    %c1 = arith.constant 1 : index
    %c0_5 = arith.constant 0 : index
    %1 = vector.load %arg1[%c0_3, %c0_4, %c1, %c0_5] : memref<1x10x10x128xf32, #tpu.memory_space<vmem>>, vector<1x8x8x24xf32>
    %c0_6 = arith.constant 0 : index
    %c0_7 = arith.constant 0 : index
    %c0_8 = arith.constant 0 : index
    %c32 = arith.constant 32 : index
    %2 = vector.load %arg1[%c0_6, %c0_7, %c0_8, %c32] : memref<1x10x10x128xf32, #tpu.memory_space<vmem>>, vector<1x8x8x32xf32>
    %c0_9 = arith.constant 0 : index
    %c0_10 = arith.constant 0 : index
    %c1_11 = arith.constant 1 : index
    %c32_12 = arith.constant 32 : index
    %3 = vector.load %arg1[%c0_9, %c0_10, %c1_11, %c32_12] : memref<1x10x10x128xf32, #tpu.memory_space<vmem>>, vector<1x8x8x24xf32>
    %c0_13 = arith.constant 0 : index
    %c0_14 = arith.constant 0 : index
    %c0_15 = arith.constant 0 : index
    %c64 = arith.constant 64 : index
    %4 = vector.load %arg1[%c0_13, %c0_14, %c0_15, %c64] : memref<1x10x10x128xf32, #tpu.memory_space<vmem>>, vector<1x8x8x32xf32>
    %c0_16 = arith.constant 0 : index
    %c0_17 = arith.constant 0 : index
    %c1_18 = arith.constant 1 : index
    %c64_19 = arith.constant 64 : index
    %5 = vector.load %arg1[%c0_16, %c0_17, %c1_18, %c64_19] : memref<1x10x10x128xf32, #tpu.memory_space<vmem>>, vector<1x8x8x24xf32>
    %c0_20 = arith.constant 0 : index
    %c0_21 = arith.constant 0 : index
    %c0_22 = arith.constant 0 : index
    %c96 = arith.constant 96 : index
    %6 = vector.load %arg1[%c0_20, %c0_21, %c0_22, %c96] : memref<1x10x10x128xf32, #tpu.memory_space<vmem>>, vector<1x8x8x32xf32>
    %c0_23 = arith.constant 0 : index
    %c0_24 = arith.constant 0 : index
    %c1_25 = arith.constant 1 : index
    %c96_26 = arith.constant 96 : index
    %7 = vector.load %arg1[%c0_23, %c0_24, %c1_25, %c96_26] : memref<1x10x10x128xf32, #tpu.memory_space<vmem>>, vector<1x8x8x24xf32>
    %c0_27 = arith.constant 0 : index
    %c1_28 = arith.constant 1 : index
    %c0_29 = arith.constant 0 : index
    %c0_30 = arith.constant 0 : index
    %8 = vector.load %arg1[%c0_27, %c1_28, %c0_29, %c0_30] : memref<1x10x10x128xf32, #tpu.memory_space<vmem>>, vector<1x8x8x32xf32>
    %c0_31 = arith.constant 0 : index
    %c1_32 = arith.constant 1 : index
    %c1_33 = arith.constant 1 : index
    %c0_34 = arith.constant 0 : index
    %9 = vector.load %arg1[%c0_31, %c1_32, %c1_33, %c0_34] : memref<1x10x10x128xf32, #tpu.memory_space<vmem>>, vector<1x8x8x24xf32>
    %c0_35 = arith.constant 0 : index
    %c1_36 = arith.constant 1 : index
    %c0_37 = arith.constant 0 : index
    %c32_38 = arith.constant 32 : index
    %10 = vector.load %arg1[%c0_35, %c1_36, %c0_37, %c32_38] : memref<1x10x10x128xf32, #tpu.memory_space<vmem>>, vector<1x8x8x32xf32>
    %c0_39 = arith.constant 0 : index
    %c1_40 = arith.constant 1 : index
    %c1_41 = arith.constant 1 : index
    %c32_42 = arith.constant 32 : index
    %11 = vector.load %arg1[%c0_39, %c1_40, %c1_41, %c32_42] : memref<1x10x10x128xf32, #tpu.memory_space<vmem>>, vector<1x8x8x24xf32>
    %c0_43 = arith.constant 0 : index
    %c1_44 = arith.constant 1 : index
    %c0_45 = arith.constant 0 : index
    %c64_46 = arith.constant 64 : index
    %12 = vector.load %arg1[%c0_43, %c1_44, %c0_45, %c64_46] : memref<1x10x10x128xf32, #tpu.memory_space<vmem>>, vector<1x8x8x32xf32>
    %c0_47 = arith.constant 0 : index
    %c1_48 = arith.constant 1 : index
    %c1_49 = arith.constant 1 : index
    %c64_50 = arith.constant 64 : index
    %13 = vector.load %arg1[%c0_47, %c1_48, %c1_49, %c64_50] : memref<1x10x10x128xf32, #tpu.memory_space<vmem>>, vector<1x8x8x24xf32>
    %14 = tpu.concatenate %0, %1, %2, %3, %4, %5, %6, %7, %8, %9, %10, %11, %12, %13 in 3 : vector<1x8x8x32xf32>, vector<1x8x8x24xf32>, vector<1x8x8x32xf32>, vector<1x8x8x24xf32>, vector<1x8x8x32xf32>, vector<1x8x8x24xf32>, vector<1x8x8x32xf32>, vector<1x8x8x24xf32>, vector<1x8x8x32xf32>, vector<1x8x8x24xf32>, vector<1x8x8x32xf32>, vector<1x8x8x24xf32>, vector<1x8x8x32xf32>, vector<1x8x8x24xf32> -> vector<1x8x8x392xf32>
    %15 = vector.shape_cast %14 : vector<1x8x8x392xf32> to vector<64x392xf32>
    %c0_51 = arith.constant 0 : index
    %c0_52 = arith.constant 0 : index
    %c0_53 = arith.constant 0 : index
    %c16 = arith.constant 16 : index
    %16 = vector.load %arg1[%c0_51, %c0_52, %c0_53, %c16] : memref<1x10x10x128xf32, #tpu.memory_space<vmem>>, vector<1x8x8x16xf32>
    %c0_54 = arith.constant 0 : index
    %c0_55 = arith.constant 0 : index
    %c1_56 = arith.constant 1 : index
    %c0_57 = arith.constant 0 : index
    %17 = vector.load %arg1[%c0_54, %c0_55, %c1_56, %c0_57] : memref<1x10x10x128xf32, #tpu.memory_space<vmem>>, vector<1x8x8x32xf32>
    %c0_58 = arith.constant 0 : index
    %c0_59 = arith.constant 0 : index
    %c2 = arith.constant 2 : index
    %c0_60 = arith.constant 0 : index
    %18 = vector.load %arg1[%c0_58, %c0_59, %c2, %c0_60] : memref<1x10x10x128xf32, #tpu.memory_space<vmem>>, vector<1x8x8x8xf32>
    %c0_61 = arith.constant 0 : index
    %c0_62 = arith.constant 0 : index
    %c0_63 = arith.constant 0 : index
    %c48 = arith.constant 48 : index
    %19 = vector.load %arg1[%c0_61, %c0_62, %c0_63, %c48] : memref<1x10x10x128xf32, #tpu.memory_space<vmem>>, vector<1x8x8x16xf32>
    %c0_64 = arith.constant 0 : index
    %c0_65 = arith.constant 0 : index
    %c1_66 = arith.constant 1 : index
    %c32_67 = arith.constant 32 : index
    %20 = vector.load %arg1[%c0_64, %c0_65, %c1_66, %c32_67] : memref<1x10x10x128xf32, #tpu.memory_space<vmem>>, vector<1x8x8x32xf32>
    %c0_68 = arith.constant 0 : index
    %c0_69 = arith.constant 0 : index
    %c2_70 = arith.constant 2 : index
    %c32_71 = arith.constant 32 : index
    %21 = vector.load %arg1[%c0_68, %c0_69, %c2_70, %c32_71] : memref<1x10x10x128xf32, #tpu.memory_space<vmem>>, vector<1x8x8x8xf32>
    %c0_72 = arith.constant 0 : index
    %c0_73 = arith.constant 0 : index
    %c0_74 = arith.constant 0 : index
    %c80 = arith.constant 80 : index
    %22 = vector.load %arg1[%c0_72, %c0_73, %c0_74, %c80] : memref<1x10x10x128xf32, #tpu.memory_space<vmem>>, vector<1x8x8x16xf32>
    %c0_75 = arith.constant 0 : index
    %c0_76 = arith.constant 0 : index
    %c1_77 = arith.constant 1 : index
    %c64_78 = arith.constant 64 : index
    %23 = vector.load %arg1[%c0_75, %c0_76, %c1_77, %c64_78] : memref<1x10x10x128xf32, #tpu.memory_space<vmem>>, vector<1x8x8x32xf32>
    %c0_79 = arith.constant 0 : index
    %c0_80 = arith.constant 0 : index
    %c2_81 = arith.constant 2 : index
    %c64_82 = arith.constant 64 : index
    %24 = vector.load %arg1[%c0_79, %c0_80, %c2_81, %c64_82] : memref<1x10x10x128xf32, #tpu.memory_space<vmem>>, vector<1x8x8x8xf32>
    %c0_83 = arith.constant 0 : index
    %c0_84 = arith.constant 0 : index
    %c0_85 = arith.constant 0 : index
    %c112 = arith.constant 112 : index
    %25 = vector.load %arg1[%c0_83, %c0_84, %c0_85, %c112] : memref<1x10x10x128xf32, #tpu.memory_space<vmem>>, vector<1x8x8x16xf32>
    %c0_86 = arith.constant 0 : index
    %c0_87 = arith.constant 0 : index
    %c1_88 = arith.constant 1 : index
    %c96_89 = arith.constant 96 : index
    %26 = vector.load %arg1[%c0_86, %c0_87, %c1_88, %c96_89] : memref<1x10x10x128xf32, #tpu.memory_space<vmem>>, vector<1x8x8x32xf32>
    %c0_90 = arith.constant 0 : index
    %c0_91 = arith.constant 0 : index
    %c2_92 = arith.constant 2 : index
    %c96_93 = arith.constant 96 : index
    %27 = vector.load %arg1[%c0_90, %c0_91, %c2_92, %c96_93] : memref<1x10x10x128xf32, #tpu.memory_space<vmem>>, vector<1x8x8x8xf32>
    %c0_94 = arith.constant 0 : index
    %c1_95 = arith.constant 1 : index
    %c0_96 = arith.constant 0 : index
    %c16_97 = arith.constant 16 : index
    %28 = vector.load %arg1[%c0_94, %c1_95, %c0_96, %c16_97] : memref<1x10x10x128xf32, #tpu.memory_space<vmem>>, vector<1x8x8x16xf32>
    %c0_98 = arith.constant 0 : index
    %c1_99 = arith.constant 1 : index
    %c1_100 = arith.constant 1 : index
    %c0_101 = arith.constant 0 : index
    %29 = vector.load %arg1[%c0_98, %c1_99, %c1_100, %c0_101] : memref<1x10x10x128xf32, #tpu.memory_space<vmem>>, vector<1x8x8x32xf32>
    %c0_102 = arith.constant 0 : index
    %c1_103 = arith.constant 1 : index
    %c2_104 = arith.constant 2 : index
    %c0_105 = arith.constant 0 : index
    %30 = vector.load %arg1[%c0_102, %c1_103, %c2_104, %c0_105] : memref<1x10x10x128xf32, #tpu.memory_space<vmem>>, vector<1x8x8x8xf32>
    %c0_106 = arith.constant 0 : index
    %c1_107 = arith.constant 1 : index
    %c0_108 = arith.constant 0 : index
    %c48_109 = arith.constant 48 : index
    %31 = vector.load %arg1[%c0_106, %c1_107, %c0_108, %c48_109] : memref<1x10x10x128xf32, #tpu.memory_space<vmem>>, vector<1x8x8x16xf32>
    %c0_110 = arith.constant 0 : index
    %c1_111 = arith.constant 1 : index
    %c1_112 = arith.constant 1 : index
    %c32_113 = arith.constant 32 : index
    %32 = vector.load %arg1[%c0_110, %c1_111, %c1_112, %c32_113] : memref<1x10x10x128xf32, #tpu.memory_space<vmem>>, vector<1x8x8x32xf32>
    %c0_114 = arith.constant 0 : index
    %c1_115 = arith.constant 1 : index
    %c2_116 = arith.constant 2 : index
    %c32_117 = arith.constant 32 : index
    %33 = vector.load %arg1[%c0_114, %c1_115, %c2_116, %c32_117] : memref<1x10x10x128xf32, #tpu.memory_space<vmem>>, vector<1x8x8x8xf32>
    %c0_118 = arith.constant 0 : index
    %c1_119 = arith.constant 1 : index
    %c0_120 = arith.constant 0 : index
    %c80_121 = arith.constant 80 : index
    %34 = vector.load %arg1[%c0_118, %c1_119, %c0_120, %c80_121] : memref<1x10x10x128xf32, #tpu.memory_space<vmem>>, vector<1x8x8x16xf32>
    %c0_122 = arith.constant 0 : index
    %c1_123 = arith.constant 1 : index
    %c1_124 = arith.constant 1 : index
    %c64_125 = arith.constant 64 : index
    %35 = vector.load %arg1[%c0_122, %c1_123, %c1_124, %c64_125] : memref<1x10x10x128xf32, #tpu.memory_space<vmem>>, vector<1x8x8x32xf32>
    %c0_126 = arith.constant 0 : index
    %c1_127 = arith.constant 1 : index
    %c2_128 = arith.constant 2 : index
    %c64_129 = arith.constant 64 : index
    %36 = vector.load %arg1[%c0_126, %c1_127, %c2_128, %c64_129] : memref<1x10x10x128xf32, #tpu.memory_space<vmem>>, vector<1x8x8x8xf32>
    %37 = tpu.concatenate %16, %17, %18, %19, %20, %21, %22, %23, %24, %25, %26, %27, %28, %29, %30, %31 in 3 : vector<1x8x8x16xf32>, vector<1x8x8x32xf32>, vector<1x8x8x8xf32>, vector<1x8x8x16xf32>, vector<1x8x8x32xf32>, vector<1x8x8x8xf32>, vector<1x8x8x16xf32>, vector<1x8x8x32xf32>, vector<1x8x8x8xf32>, vector<1x8x8x16xf32>, vector<1x8x8x32xf32>, vector<1x8x8x8xf32>, vector<1x8x8x16xf32>, vector<1x8x8x32xf32>, vector<1x8x8x8xf32>, vector<1x8x8x16xf32> -> vector<1x8x8x296xf32>
    %38 = tpu.concatenate %32, %33, %34, %35, %36 in 3 : vector<1x8x8x32xf32>, vector<1x8x8x8xf32>, vector<1x8x8x16xf32>, vector<1x8x8x32xf32>, vector<1x8x8x8xf32> -> vector<1x8x8x96xf32>
    %39 = tpu.concatenate %37, %38 in 3 : vector<1x8x8x296xf32>, vector<1x8x8x96xf32> -> vector<1x8x8x392xf32>
    %40 = vector.shape_cast %39 : vector<1x8x8x392xf32> to vector<64x392xf32>
    %c0_130 = arith.constant 0 : index
    %c0_131 = arith.constant 0 : index
    %c0_132 = arith.constant 0 : index
    %c64_133 = arith.constant 64 : index
    %41 = vector.load %arg1[%c0_130, %c0_131, %c0_132, %c64_133] : memref<1x10x10x128xf32, #tpu.memory_space<vmem>>, vector<1x8x8x32xf32>
    %c0_134 = arith.constant 0 : index
    %c0_135 = arith.constant 0 : index
    %c1_136 = arith.constant 1 : index
    %c64_137 = arith.constant 64 : index
    %42 = vector.load %arg1[%c0_134, %c0_135, %c1_136, %c64_137] : memref<1x10x10x128xf32, #tpu.memory_space<vmem>>, vector<1x8x8x24xf32>
    %c0_138 = arith.constant 0 : index
    %c0_139 = arith.constant 0 : index
    %c0_140 = arith.constant 0 : index
    %c96_141 = arith.constant 96 : index
    %43 = vector.load %arg1[%c0_138, %c0_139, %c0_140, %c96_141] : memref<1x10x10x128xf32, #tpu.memory_space<vmem>>, vector<1x8x8x32xf32>
    %c0_142 = arith.constant 0 : index
    %c0_143 = arith.constant 0 : index
    %c1_144 = arith.constant 1 : index
    %c96_145 = arith.constant 96 : index
    %44 = vector.load %arg1[%c0_142, %c0_143, %c1_144, %c96_145] : memref<1x10x10x128xf32, #tpu.memory_space<vmem>>, vector<1x8x8x24xf32>
    %c0_146 = arith.constant 0 : index
    %c1_147 = arith.constant 1 : index
    %c0_148 = arith.constant 0 : index
    %c0_149 = arith.constant 0 : index
    %45 = vector.load %arg1[%c0_146, %c1_147, %c0_148, %c0_149] : memref<1x10x10x128xf32, #tpu.memory_space<vmem>>, vector<1x8x8x32xf32>
    %c0_150 = arith.constant 0 : index
    %c1_151 = arith.constant 1 : index
    %c1_152 = arith.constant 1 : index
    %c0_153 = arith.constant 0 : index
    %46 = vector.load %arg1[%c0_150, %c1_151, %c1_152, %c0_153] : memref<1x10x10x128xf32, #tpu.memory_space<vmem>>, vector<1x8x8x24xf32>
    %c0_154 = arith.constant 0 : index
    %c1_155 = arith.constant 1 : index
    %c0_156 = arith.constant 0 : index
    %c32_157 = arith.constant 32 : index
    %47 = vector.load %arg1[%c0_154, %c1_155, %c0_156, %c32_157] : memref<1x10x10x128xf32, #tpu.memory_space<vmem>>, vector<1x8x8x32xf32>
    %c0_158 = arith.constant 0 : index
    %c1_159 = arith.constant 1 : index
    %c1_160 = arith.constant 1 : index
    %c32_161 = arith.constant 32 : index
    %48 = vector.load %arg1[%c0_158, %c1_159, %c1_160, %c32_161] : memref<1x10x10x128xf32, #tpu.memory_space<vmem>>, vector<1x8x8x24xf32>
    %c0_162 = arith.constant 0 : index
    %c1_163 = arith.constant 1 : index
    %c0_164 = arith.constant 0 : index
    %c64_165 = arith.constant 64 : index
    %49 = vector.load %arg1[%c0_162, %c1_163, %c0_164, %c64_165] : memref<1x10x10x128xf32, #tpu.memory_space<vmem>>, vector<1x8x8x32xf32>
    %c0_166 = arith.constant 0 : index
    %c1_167 = arith.constant 1 : index
    %c1_168 = arith.constant 1 : index
    %c64_169 = arith.constant 64 : index
    %50 = vector.load %arg1[%c0_166, %c1_167, %c1_168, %c64_169] : memref<1x10x10x128xf32, #tpu.memory_space<vmem>>, vector<1x8x8x24xf32>
    %c0_170 = arith.constant 0 : index
    %c1_171 = arith.constant 1 : index
    %c0_172 = arith.constant 0 : index
    %c96_173 = arith.constant 96 : index
    %51 = vector.load %arg1[%c0_170, %c1_171, %c0_172, %c96_173] : memref<1x10x10x128xf32, #tpu.memory_space<vmem>>, vector<1x8x8x32xf32>
    %c0_174 = arith.constant 0 : index
    %c1_175 = arith.constant 1 : index
    %c1_176 = arith.constant 1 : index
    %c96_177 = arith.constant 96 : index
    %52 = vector.load %arg1[%c0_174, %c1_175, %c1_176, %c96_177] : memref<1x10x10x128xf32, #tpu.memory_space<vmem>>, vector<1x8x8x24xf32>
    %c0_178 = arith.constant 0 : index
    %c2_179 = arith.constant 2 : index
    %c0_180 = arith.constant 0 : index
    %c0_181 = arith.constant 0 : index
    %53 = vector.load %arg1[%c0_178, %c2_179, %c0_180, %c0_181] : memref<1x10x10x128xf32, #tpu.memory_space<vmem>>, vector<1x8x8x32xf32>
    %c0_182 = arith.constant 0 : index
    %c2_183 = arith.constant 2 : index
    %c1_184 = arith.constant 1 : index
    %c0_185 = arith.constant 0 : index
    %54 = vector.load %arg1[%c0_182, %c2_183, %c1_184, %c0_185] : memref<1x10x10x128xf32, #tpu.memory_space<vmem>>, vector<1x8x8x24xf32>
    %55 = tpu.concatenate %41, %42, %43, %44, %45, %46, %47, %48, %49, %50, %51, %52, %53, %54 in 3 : vector<1x8x8x32xf32>, vector<1x8x8x24xf32>, vector<1x8x8x32xf32>, vector<1x8x8x24xf32>, vector<1x8x8x32xf32>, vector<1x8x8x24xf32>, vector<1x8x8x32xf32>, vector<1x8x8x24xf32>, vector<1x8x8x32xf32>, vector<1x8x8x24xf32>, vector<1x8x8x32xf32>, vector<1x8x8x24xf32>, vector<1x8x8x32xf32>, vector<1x8x8x24xf32> -> vector<1x8x8x392xf32>
    %56 = vector.shape_cast %55 : vector<1x8x8x392xf32> to vector<64x392xf32>
    %c0_186 = arith.constant 0 : index
    %c0_187 = arith.constant 0 : index
    %c0_188 = arith.constant 0 : index
    %c80_189 = arith.constant 80 : index
    %57 = vector.load %arg1[%c0_186, %c0_187, %c0_188, %c80_189] : memref<1x10x10x128xf32, #tpu.memory_space<vmem>>, vector<1x8x8x16xf32>
    %c0_190 = arith.constant 0 : index
    %c0_191 = arith.constant 0 : index
    %c1_192 = arith.constant 1 : index
    %c64_193 = arith.constant 64 : index
    %58 = vector.load %arg1[%c0_190, %c0_191, %c1_192, %c64_193] : memref<1x10x10x128xf32, #tpu.memory_space<vmem>>, vector<1x8x8x32xf32>
    %c0_194 = arith.constant 0 : index
    %c0_195 = arith.constant 0 : index
    %c2_196 = arith.constant 2 : index
    %c64_197 = arith.constant 64 : index
    %59 = vector.load %arg1[%c0_194, %c0_195, %c2_196, %c64_197] : memref<1x10x10x128xf32, #tpu.memory_space<vmem>>, vector<1x8x8x8xf32>
    %c0_198 = arith.constant 0 : index
    %c0_199 = arith.constant 0 : index
    %c0_200 = arith.constant 0 : index
    %c112_201 = arith.constant 112 : index
    %60 = vector.load %arg1[%c0_198, %c0_199, %c0_200, %c112_201] : memref<1x10x10x128xf32, #tpu.memory_space<vmem>>, vector<1x8x8x16xf32>
    %c0_202 = arith.constant 0 : index
    %c0_203 = arith.constant 0 : index
    %c1_204 = arith.constant 1 : index
    %c96_205 = arith.constant 96 : index
    %61 = vector.load %arg1[%c0_202, %c0_203, %c1_204, %c96_205] : memref<1x10x10x128xf32, #tpu.memory_space<vmem>>, vector<1x8x8x32xf32>
    %c0_206 = arith.constant 0 : index
    %c0_207 = arith.constant 0 : index
    %c2_208 = arith.constant 2 : index
    %c96_209 = arith.constant 96 : index
    %62 = vector.load %arg1[%c0_206, %c0_207, %c2_208, %c96_209] : memref<1x10x10x128xf32, #tpu.memory_space<vmem>>, vector<1x8x8x8xf32>
    %c0_210 = arith.constant 0 : index
    %c1_211 = arith.constant 1 : index
    %c0_212 = arith.constant 0 : index
    %c16_213 = arith.constant 16 : index
    %63 = vector.load %arg1[%c0_210, %c1_211, %c0_212, %c16_213] : memref<1x10x10x128xf32, #tpu.memory_space<vmem>>, vector<1x8x8x16xf32>
    %c0_214 = arith.constant 0 : index
    %c1_215 = arith.constant 1 : index
    %c1_216 = arith.constant 1 : index
    %c0_217 = arith.constant 0 : index
    %64 = vector.load %arg1[%c0_214, %c1_215, %c1_216, %c0_217] : memref<1x10x10x128xf32, #tpu.memory_space<vmem>>, vector<1x8x8x32xf32>
    %c0_218 = arith.constant 0 : index
    %c1_219 = arith.constant 1 : index
    %c2_220 = arith.constant 2 : index
    %c0_221 = arith.constant 0 : index
    %65 = vector.load %arg1[%c0_218, %c1_219, %c2_220, %c0_221] : memref<1x10x10x128xf32, #tpu.memory_space<vmem>>, vector<1x8x8x8xf32>
    %c0_222 = arith.constant 0 : index
    %c1_223 = arith.constant 1 : index
    %c0_224 = arith.constant 0 : index
    %c48_225 = arith.constant 48 : index
    %66 = vector.load %arg1[%c0_222, %c1_223, %c0_224, %c48_225] : memref<1x10x10x128xf32, #tpu.memory_space<vmem>>, vector<1x8x8x16xf32>
    %c0_226 = arith.constant 0 : index
    %c1_227 = arith.constant 1 : index
    %c1_228 = arith.constant 1 : index
    %c32_229 = arith.constant 32 : index
    %67 = vector.load %arg1[%c0_226, %c1_227, %c1_228, %c32_229] : memref<1x10x10x128xf32, #tpu.memory_space<vmem>>, vector<1x8x8x32xf32>
    %c0_230 = arith.constant 0 : index
    %c1_231 = arith.constant 1 : index
    %c2_232 = arith.constant 2 : index
    %c32_233 = arith.constant 32 : index
    %68 = vector.load %arg1[%c0_230, %c1_231, %c2_232, %c32_233] : memref<1x10x10x128xf32, #tpu.memory_space<vmem>>, vector<1x8x8x8xf32>
    %c0_234 = arith.constant 0 : index
    %c1_235 = arith.constant 1 : index
    %c0_236 = arith.constant 0 : index
    %c80_237 = arith.constant 80 : index
    %69 = vector.load %arg1[%c0_234, %c1_235, %c0_236, %c80_237] : memref<1x10x10x128xf32, #tpu.memory_space<vmem>>, vector<1x8x8x16xf32>
    %c0_238 = arith.constant 0 : index
    %c1_239 = arith.constant 1 : index
    %c1_240 = arith.constant 1 : index
    %c64_241 = arith.constant 64 : index
    %70 = vector.load %arg1[%c0_238, %c1_239, %c1_240, %c64_241] : memref<1x10x10x128xf32, #tpu.memory_space<vmem>>, vector<1x8x8x32xf32>
    %c0_242 = arith.constant 0 : index
    %c1_243 = arith.constant 1 : index
    %c2_244 = arith.constant 2 : index
    %c64_245 = arith.constant 64 : index
    %71 = vector.load %arg1[%c0_242, %c1_243, %c2_244, %c64_245] : memref<1x10x10x128xf32, #tpu.memory_space<vmem>>, vector<1x8x8x8xf32>
    %c0_246 = arith.constant 0 : index
    %c1_247 = arith.constant 1 : index
    %c0_248 = arith.constant 0 : index
    %c112_249 = arith.constant 112 : index
    %72 = vector.load %arg1[%c0_246, %c1_247, %c0_248, %c112_249] : memref<1x10x10x128xf32, #tpu.memory_space<vmem>>, vector<1x8x8x16xf32>
    %c0_250 = arith.constant 0 : index
    %c1_251 = arith.constant 1 : index
    %c1_252 = arith.constant 1 : index
    %c96_253 = arith.constant 96 : index
    %73 = vector.load %arg1[%c0_250, %c1_251, %c1_252, %c96_253] : memref<1x10x10x128xf32, #tpu.memory_space<vmem>>, vector<1x8x8x32xf32>
    %c0_254 = arith.constant 0 : index
    %c1_255 = arith.constant 1 : index
    %c2_256 = arith.constant 2 : index
    %c96_257 = arith.constant 96 : index
    %74 = vector.load %arg1[%c0_254, %c1_255, %c2_256, %c96_257] : memref<1x10x10x128xf32, #tpu.memory_space<vmem>>, vector<1x8x8x8xf32>
    %c0_258 = arith.constant 0 : index
    %c2_259 = arith.constant 2 : index
    %c0_260 = arith.constant 0 : index
    %c16_261 = arith.constant 16 : index
    %75 = vector.load %arg1[%c0_258, %c2_259, %c0_260, %c16_261] : memref<1x10x10x128xf32, #tpu.memory_space<vmem>>, vector<1x8x8x16xf32>
    %c0_262 = arith.constant 0 : index
    %c2_263 = arith.constant 2 : index
    %c1_264 = arith.constant 1 : index
    %c0_265 = arith.constant 0 : index
    %76 = vector.load %arg1[%c0_262, %c2_263, %c1_264, %c0_265] : memref<1x10x10x128xf32, #tpu.memory_space<vmem>>, vector<1x8x8x32xf32>
    %c0_266 = arith.constant 0 : index
    %c2_267 = arith.constant 2 : index
    %c2_268 = arith.constant 2 : index
    %c0_269 = arith.constant 0 : index
    %77 = vector.load %arg1[%c0_266, %c2_267, %c2_268, %c0_269] : memref<1x10x10x128xf32, #tpu.memory_space<vmem>>, vector<1x8x8x8xf32>
    %78 = tpu.concatenate %57, %58, %59, %60, %61, %62, %63, %64, %65, %66, %67, %68, %69, %70, %71, %72 in 3 : vector<1x8x8x16xf32>, vector<1x8x8x32xf32>, vector<1x8x8x8xf32>, vector<1x8x8x16xf32>, vector<1x8x8x32xf32>, vector<1x8x8x8xf32>, vector<1x8x8x16xf32>, vector<1x8x8x32xf32>, vector<1x8x8x8xf32>, vector<1x8x8x16xf32>, vector<1x8x8x32xf32>, vector<1x8x8x8xf32>, vector<1x8x8x16xf32>, vector<1x8x8x32xf32>, vector<1x8x8x8xf32>, vector<1x8x8x16xf32> -> vector<1x8x8x296xf32>
    %79 = tpu.concatenate %73, %74, %75, %76, %77 in 3 : vector<1x8x8x32xf32>, vector<1x8x8x8xf32>, vector<1x8x8x16xf32>, vector<1x8x8x32xf32>, vector<1x8x8x8xf32> -> vector<1x8x8x96xf32>
    %80 = tpu.concatenate %78, %79 in 3 : vector<1x8x8x296xf32>, vector<1x8x8x96xf32> -> vector<1x8x8x392xf32>
    %81 = vector.shape_cast %80 : vector<1x8x8x392xf32> to vector<64x392xf32>
    %82 = tpu.concatenate %15, %40, %56, %81 in 0 : vector<64x392xf32>, vector<64x392xf32>, vector<64x392xf32>, vector<64x392xf32> -> vector<256x392xf32>
    %c0_270 = arith.constant 0 : index
    %c0_271 = arith.constant 0 : index
    %83 = vector.load %arg2[%c0_270, %c0_271] : memref<392x64xf32, #tpu.memory_space<vmem>>, vector<392x64xf32>
    %cst = arith.constant dense<0.000000e+00> : vector<256x64xf32>
    %84 = tpu.matmul %82, %83, %cst {dimension_numbers = #tpu.dot_dimension_numbers<[1], [0], [0], [1], [0, 0, 1, 1], [], []>} : vector<256x392xf32>, vector<392x64xf32>, vector<256x64xf32> -> vector<256x64xf32>
    %85 = vector.shape_cast %84 : vector<256x64xf32> to vector<4x64x64xf32>
    %cst_272 = arith.constant dense<0xFF800000> : vector<64x64xf32>
    %86 = vector.multi_reduction <maximumf>, %85, %cst_272 [0] : vector<4x64x64xf32> to vector<64x64xf32>
    %c0_273 = arith.constant 0 : index
    %c0_274 = arith.constant 0 : index
    %87 = vector.load %arg3[%c0_273, %c0_274] : memref<1x64xf32, #tpu.memory_space<vmem>>, vector<1x64xf32>
    %88 = vector.broadcast %87 : vector<1x64xf32> to vector<64x64xf32>
    %89 = arith.addf %86, %88 : vector<64x64xf32>
    %cst_275 = arith.constant 0.000000e+00 : f32
    %90 = vector.broadcast %cst_275 : f32 to vector<64x64xf32>
    %91 = arith.cmpf ogt, %89, %90 : vector<64x64xf32>
    %cst_276 = arith.constant 1.000000e-01 : f32
    %92 = vector.broadcast %cst_276 : f32 to vector<64x64xf32>
    %93 = arith.mulf %92, %89 : vector<64x64xf32>
    %94 = arith.select %91, %89, %93 : vector<64x64xi1>, vector<64x64xf32>
    %95 = vector.shape_cast %94 : vector<64x64xf32> to vector<1x64x64xf32>
    %c0_277 = arith.constant 0 : index
    %c0_278 = arith.constant 0 : index
    %c0_279 = arith.constant 0 : index
    %96 = vector.load %arg7[%c0_277, %c0_278, %c0_279] : memref<1x72x64xf32, #tpu.memory_space<vmem>>, vector<1x64x64xf32>
    tpu.vector_store %arg7[%c0_277, %c0_278, %c0_279], %95 {strides = array<i32>} : memref<1x72x64xf32, #tpu.memory_space<vmem>>, vector<1x64x64xf32>,
    %cst_280 = arith.constant 0.000000e+00 : f32
    %97 = vector.broadcast %cst_280 : f32 to vector<1x8x64xf32>
    %c0_281 = arith.constant 0 : index
    %c64_282 = arith.constant 64 : index
    %c0_283 = arith.constant 0 : index
    %98 = vector.load %arg7[%c0_281, %c64_282, %c0_283] : memref<1x72x64xf32, #tpu.memory_space<vmem>>, vector<1x8x64xf32>
    tpu.vector_store %arg7[%c0_281, %c64_282, %c0_283], %97 {strides = array<i32>} : memref<1x72x64xf32, #tpu.memory_space<vmem>>, vector<1x8x64xf32>,
    %c0_284 = arith.constant 0 : index
    %c0_285 = arith.constant 0 : index
    %c0_286 = arith.constant 0 : index
    %99 = vector.load %arg7[%c0_284, %c0_285, %c0_286] : memref<1x72x64xf32, #tpu.memory_space<vmem>>, vector<1x48x64xf32>
    %c0_287 = arith.constant 0 : index
    %c1_288 = arith.constant 1 : index
    %c0_289 = arith.constant 0 : index
    %100 = vector.load %arg7[%c0_287, %c1_288, %c0_289] : memref<1x72x64xf32, #tpu.memory_space<vmem>>, vector<1x48x64xf32>
    %c0_290 = arith.constant 0 : index
    %c2_291 = arith.constant 2 : index
    %c0_292 = arith.constant 0 : index
    %101 = vector.load %arg7[%c0_290, %c2_291, %c0_292] : memref<1x72x64xf32, #tpu.memory_space<vmem>>, vector<1x48x64xf32>
    %c0_293 = arith.constant 0 : index
    %c8 = arith.constant 8 : index
    %c0_294 = arith.constant 0 : index
    %102 = vector.load %arg7[%c0_293, %c8, %c0_294] : memref<1x72x64xf32, #tpu.memory_space<vmem>>, vector<1x48x64xf32>
    %c0_295 = arith.constant 0 : index
    %c9 = arith.constant 9 : index
    %c0_296 = arith.constant 0 : index
    %103 = vector.load %arg7[%c0_295, %c9, %c0_296] : memref<1x72x64xf32, #tpu.memory_space<vmem>>, vector<1x48x64xf32>
    %c0_297 = arith.constant 0 : index
    %c10 = arith.constant 10 : index
    %c0_298 = arith.constant 0 : index
    %104 = vector.load %arg7[%c0_297, %c10, %c0_298] : memref<1x72x64xf32, #tpu.memory_space<vmem>>, vector<1x48x64xf32>
    %c0_299 = arith.constant 0 : index
    %c16_300 = arith.constant 16 : index
    %c0_301 = arith.constant 0 : index
    %105 = vector.load %arg7[%c0_299, %c16_300, %c0_301] : memref<1x72x64xf32, #tpu.memory_space<vmem>>, vector<1x48x64xf32>
    %c0_302 = arith.constant 0 : index
    %c17 = arith.constant 17 : index
    %c0_303 = arith.constant 0 : index
    %106 = vector.load %arg7[%c0_302, %c17, %c0_303] : memref<1x72x64xf32, #tpu.memory_space<vmem>>, vector<1x48x64xf32>
    %c0_304 = arith.constant 0 : index
    %c18 = arith.constant 18 : index
    %c0_305 = arith.constant 0 : index
    %107 = vector.load %arg7[%c0_304, %c18, %c0_305] : memref<1x72x64xf32, #tpu.memory_space<vmem>>, vector<1x48x64xf32>
    %108 = tpu.concatenate %99, %100, %101, %102, %103, %104, %105, %106, %107 in 2 : vector<1x48x64xf32>, vector<1x48x64xf32>, vector<1x48x64xf32>, vector<1x48x64xf32>, vector<1x48x64xf32>, vector<1x48x64xf32>, vector<1x48x64xf32>, vector<1x48x64xf32>, vector<1x48x64xf32> -> vector<1x48x576xf32>
    %109 = vector.shape_cast %108 : vector<1x48x576xf32> to vector<48x576xf32>
    %c0_306 = arith.constant 0 : index
    %c0_307 = arith.constant 0 : index
    %110 = vector.load %arg4[%c0_306, %c0_307] : memref<576x192xf32, #tpu.memory_space<vmem>>, vector<576x192xf32>
    %cst_308 = arith.constant dense<0.000000e+00> : vector<48x192xf32>
    %111 = tpu.matmul %109, %110, %cst_308 {dimension_numbers = #tpu.dot_dimension_numbers<[1], [0], [0], [1], [0, 0, 1, 1], [], []>} : vector<48x576xf32>, vector<576x192xf32>, vector<48x192xf32> -> vector<48x192xf32>
    %112 = vector.shape_cast %111 : vector<48x192xf32> to vector<1x6x8x192xf32>
    %113 = vector.extract_strided_slice %112 {offsets = [0, 0, 0, 0], sizes = [1, 1, 8, 192], strides = [1, 1, 1, 1]} : vector<1x6x8x192xf32> to vector<1x1x8x192xf32>
    %114 = vector.shape_cast %113 : vector<1x1x8x192xf32> to vector<1x8x192xf32>
    %115 = vector.extract_strided_slice %112 {offsets = [0, 1, 0, 0], sizes = [1, 1, 8, 192], strides = [1, 1, 1, 1]} : vector<1x6x8x192xf32> to vector<1x1x8x192xf32>
    %116 = vector.shape_cast %115 : vector<1x1x8x192xf32> to vector<1x8x192xf32>
    %117 = arith.maximumf %114, %116 : vector<1x8x192xf32>
    %118 = vector.extract_strided_slice %117 {offsets = [0, 0, 0], sizes = [1, 1, 192], strides = [1, 1, 1]} : vector<1x8x192xf32> to vector<1x1x192xf32>
    %119 = vector.extract_strided_slice %117 {offsets = [0, 1, 0], sizes = [1, 1, 192], strides = [1, 1, 1]} : vector<1x8x192xf32> to vector<1x1x192xf32>
    %120 = arith.maximumf %118, %119 : vector<1x1x192xf32>
    %121 = vector.extract_strided_slice %117 {offsets = [0, 2, 0], sizes = [1, 1, 192], strides = [1, 1, 1]} : vector<1x8x192xf32> to vector<1x1x192xf32>
    %122 = vector.extract_strided_slice %117 {offsets = [0, 3, 0], sizes = [1, 1, 192], strides = [1, 1, 1]} : vector<1x8x192xf32> to vector<1x1x192xf32>
    %123 = arith.maximumf %121, %122 : vector<1x1x192xf32>
    %124 = vector.extract_strided_slice %117 {offsets = [0, 4, 0], sizes = [1, 1, 192], strides = [1, 1, 1]} : vector<1x8x192xf32> to vector<1x1x192xf32>
    %125 = vector.extract_strided_slice %117 {offsets = [0, 5, 0], sizes = [1, 1, 192], strides = [1, 1, 1]} : vector<1x8x192xf32> to vector<1x1x192xf32>
    %126 = arith.maximumf %124, %125 : vector<1x1x192xf32>
    %127 = tpu.concatenate %120, %123, %126 in 1 : vector<1x1x192xf32>, vector<1x1x192xf32>, vector<1x1x192xf32> -> vector<1x3x192xf32>
    %128 = vector.shape_cast %127 : vector<1x3x192xf32> to vector<1x1x3x192xf32>
    %129 = vector.extract_strided_slice %112 {offsets = [0, 2, 0, 0], sizes = [1, 1, 8, 192], strides = [1, 1, 1, 1]} : vector<1x6x8x192xf32> to vector<1x1x8x192xf32>
    %130 = vector.shape_cast %129 : vector<1x1x8x192xf32> to vector<1x8x192xf32>
    %131 = vector.extract_strided_slice %112 {offsets = [0, 3, 0, 0], sizes = [1, 1, 8, 192], strides = [1, 1, 1, 1]} : vector<1x6x8x192xf32> to vector<1x1x8x192xf32>
    %132 = vector.shape_cast %131 : vector<1x1x8x192xf32> to vector<1x8x192xf32>
    %133 = arith.maximumf %130, %132 : vector<1x8x192xf32>
    %134 = vector.extract_strided_slice %133 {offsets = [0, 0, 0], sizes = [1, 1, 192], strides = [1, 1, 1]} : vector<1x8x192xf32> to vector<1x1x192xf32>
    %135 = vector.extract_strided_slice %133 {offsets = [0, 1, 0], sizes = [1, 1, 192], strides = [1, 1, 1]} : vector<1x8x192xf32> to vector<1x1x192xf32>
    %136 = arith.maximumf %134, %135 : vector<1x1x192xf32>
    %137 = vector.extract_strided_slice %133 {offsets = [0, 2, 0], sizes = [1, 1, 192], strides = [1, 1, 1]} : vector<1x8x192xf32> to vector<1x1x192xf32>
    %138 = vector.extract_strided_slice %133 {offsets = [0, 3, 0], sizes = [1, 1, 192], strides = [1, 1, 1]} : vector<1x8x192xf32> to vector<1x1x192xf32>
    %139 = arith.maximumf %137, %138 : vector<1x1x192xf32>
    %140 = vector.extract_strided_slice %133 {offsets = [0, 4, 0], sizes = [1, 1, 192], strides = [1, 1, 1]} : vector<1x8x192xf32> to vector<1x1x192xf32>
    %141 = vector.extract_strided_slice %133 {offsets = [0, 5, 0], sizes = [1, 1, 192], strides = [1, 1, 1]} : vector<1x8x192xf32> to vector<1x1x192xf32>
    %142 = arith.maximumf %140, %141 : vector<1x1x192xf32>
    %143 = tpu.concatenate %136, %139, %142 in 1 : vector<1x1x192xf32>, vector<1x1x192xf32>, vector<1x1x192xf32> -> vector<1x3x192xf32>
    %144 = vector.shape_cast %143 : vector<1x3x192xf32> to vector<1x1x3x192xf32>
    %145 = vector.extract_strided_slice %112 {offsets = [0, 4, 0, 0], sizes = [1, 1, 8, 192], strides = [1, 1, 1, 1]} : vector<1x6x8x192xf32> to vector<1x1x8x192xf32>
    %146 = vector.shape_cast %145 : vector<1x1x8x192xf32> to vector<1x8x192xf32>
    %147 = vector.extract_strided_slice %112 {offsets = [0, 5, 0, 0], sizes = [1, 1, 8, 192], strides = [1, 1, 1, 1]} : vector<1x6x8x192xf32> to vector<1x1x8x192xf32>
    %148 = vector.shape_cast %147 : vector<1x1x8x192xf32> to vector<1x8x192xf32>
    %149 = arith.maximumf %146, %148 : vector<1x8x192xf32>
    %150 = vector.extract_strided_slice %149 {offsets = [0, 0, 0], sizes = [1, 1, 192], strides = [1, 1, 1]} : vector<1x8x192xf32> to vector<1x1x192xf32>
    %151 = vector.extract_strided_slice %149 {offsets = [0, 1, 0], sizes = [1, 1, 192], strides = [1, 1, 1]} : vector<1x8x192xf32> to vector<1x1x192xf32>
    %152 = arith.maximumf %150, %151 : vector<1x1x192xf32>
    %153 = vector.extract_strided_slice %149 {offsets = [0, 2, 0], sizes = [1, 1, 192], strides = [1, 1, 1]} : vector<1x8x192xf32> to vector<1x1x192xf32>
    %154 = vector.extract_strided_slice %149 {offsets = [0, 3, 0], sizes = [1, 1, 192], strides = [1, 1, 1]} : vector<1x8x192xf32> to vector<1x1x192xf32>
    %155 = arith.maximumf %153, %154 : vector<1x1x192xf32>
    %156 = vector.extract_strided_slice %149 {offsets = [0, 4, 0], sizes = [1, 1, 192], strides = [1, 1, 1]} : vector<1x8x192xf32> to vector<1x1x192xf32>
    %157 = vector.extract_strided_slice %149 {offsets = [0, 5, 0], sizes = [1, 1, 192], strides = [1, 1, 1]} : vector<1x8x192xf32> to vector<1x1x192xf32>
    %158 = arith.maximumf %156, %157 : vector<1x1x192xf32>
    %159 = tpu.concatenate %152, %155, %158 in 1 : vector<1x1x192xf32>, vector<1x1x192xf32>, vector<1x1x192xf32> -> vector<1x3x192xf32>
    %160 = vector.shape_cast %159 : vector<1x3x192xf32> to vector<1x1x3x192xf32>
    %161 = tpu.concatenate %128, %144, %160 in 1 : vector<1x1x3x192xf32>, vector<1x1x3x192xf32>, vector<1x1x3x192xf32> -> vector<1x3x3x192xf32>
    %c0_309 = arith.constant 0 : index
    %c0_310 = arith.constant 0 : index
    %162 = vector.load %arg5[%c0_309, %c0_310] : memref<1x192xf32, #tpu.memory_space<vmem>>, vector<1x192xf32>
    %163 = vector.shape_cast %162 : vector<1x192xf32> to vector<1x1x1x192xf32>
    %164 = vector.broadcast %163 : vector<1x1x1x192xf32> to vector<1x3x3x192xf32>
    %165 = arith.addf %161, %164 : vector<1x3x3x192xf32>
    %cst_311 = arith.constant 0.000000e+00 : f32
    %166 = vector.broadcast %cst_311 : f32 to vector<1x3x3x192xf32>
    %167 = arith.cmpf ogt, %165, %166 : vector<1x3x3x192xf32>
    %cst_312 = arith.constant 1.000000e-01 : f32
    %168 = vector.broadcast %cst_312 : f32 to vector<1x3x3x192xf32>
    %169 = arith.mulf %168, %165 : vector<1x3x3x192xf32>
    %170 = arith.select %167, %165, %169 : vector<1x3x3x192xi1>, vector<1x3x3x192xf32>
    %c0_313 = arith.constant 0 : index
    %c0_314 = arith.constant 0 : index
    %c0_315 = arith.constant 0 : index
    %c0_316 = arith.constant 0 : index
    %171 = vector.load %arg6[%c0_313, %c0_314, %c0_315, %c0_316] : memref<1x3x3x192xf32, #tpu.memory_space<vmem>>, vector<1x3x3x192xf32>
    tpu.vector_store %arg6[%c0_313, %c0_314, %c0_315, %c0_316], %170 {strides = array<i32>} : memref<1x3x3x192xf32, #tpu.memory_space<vmem>>, vector<1x3x3x192xf32>,
    return
  }
  func.func @transform_0(%arg0: i32) -> (i32, i32, i32, i32) {
    %c0_i32 = arith.constant 0 : i32
    %c0_i32_0 = arith.constant 0 : i32
    %c0_i32_1 = arith.constant 0 : i32
    %c0_i32_2 = arith.constant 0 : i32
    return %arg0, %c0_i32, %c0_i32_0, %c0_i32_1 : i32, i32, i32, i32
  }
  func.func @transform_1(%arg0: i32) -> (i32, i32) {
    %c0_i32 = arith.constant 0 : i32
    %c0_i32_0 = arith.constant 0 : i32
    %c0_i32_1 = arith.constant 0 : i32
    return %c0_i32, %c0_i32_0 : i32, i32
  }
  func.func @transform_2(%arg0: i32) -> (i32, i32) {
    %c0_i32 = arith.constant 0 : i32
    %c0_i32_0 = arith.constant 0 : i32
    %c0_i32_1 = arith.constant 0 : i32
    return %c0_i32, %c0_i32_0 : i32, i32
  }
  func.func @transform_3(%arg0: i32) -> (i32, i32) {
    %c0_i32 = arith.constant 0 : i32
    %c0_i32_0 = arith.constant 0 : i32
    %c0_i32_1 = arith.constant 0 : i32
    return %c0_i32, %c0_i32_0 : i32, i32
  }
  func.func @transform_4(%arg0: i32) -> (i32, i32) {
    %c0_i32 = arith.constant 0 : i32
    %c0_i32_0 = arith.constant 0 : i32
    %c0_i32_1 = arith.constant 0 : i32
    return %c0_i32, %c0_i32_0 : i32, i32
  }
  func.func @transform_5(%arg0: i32) -> (i32, i32, i32, i32) {
    %c0_i32 = arith.constant 0 : i32
    %c0_i32_0 = arith.constant 0 : i32
    %c0_i32_1 = arith.constant 0 : i32
    %c0_i32_2 = arith.constant 0 : i32
    return %arg0, %c0_i32, %c0_i32_0, %c0_i32_1 : i32, i32, i32, i32
  }
}

</mosaic_0001>

<bundles_post_ra>
// kernel: cnn_module_forward.1
= control target key start
LH: loop header
LB: loop body
LE: loop exit
PB: predicated region body
PF: predicated region fallthrough
CT: control target
= control target key end

     0   :  { %s5207_s18 = smov 0   ;;  %s8517_s0 = inlined_call_operand.vmem [shape: f32[2,10,10,128], index: 0, kind: input, shape index: {}]   ;;  %s8518_s1 = inlined_call_operand.vmem [shape: f32[392,64], index: 1, kind: input, shape index: {}]   ;;  %s8519_s2 = inlined_call_operand.vmem [shape: f32[1,64], index: 2, kind: input, shape index: {}]   ;;  %s8520_s3 = inlined_call_operand.vmem [shape: f32[576,192], index: 3, kind: input, shape index: {}]   ;;  %s8521_s4 = inlined_call_operand.vmem [shape: f32[1,192], index: 4, kind: input, shape index: {}]   ;;  %s8522_s5 = inlined_call_operand.vmem [shape: f32[2,3,3,192], index: 5, kind: output, shape index: {}]  }
   0x1 LB: > { %s3739_s19 = sadd.s32 4294967295, %s5158_s18   ;;  %p3743_p0 = scmp.ge.s32.totalorder %s5158_s18, 1  ;;  %s5158_s18 = sphi %s5207_s18, %s15_s18  }
   0x2   : > { %p187_p1 = scmp.lt.s32.totalorder %s5158_s18, 3 }
   0x4   : > { %p188_p2 = pnand %p3743_p0, %p187_p1 }
   0x6   : > { %191 = sbr.rel (%p188_p2) target bundleno = 1422 (0x58e), region = 40 }
   0xd   : > { %p215_p3 = scmp.lt.s32.totalorder %s3739_s19, 1  ;;  %v2303_v0 = vld [vmem:[%s8518_s1] sm:$0xff]  ;;  %v2304_v1 = vld [vmem:[%s8518_s1 + $0x8] sm:$0xff]  ;;  %v8523_v2 = vmov 0.0|0.0   ;;  %v2305_v4 = vld [vmem:[%s8518_s1 + $0x10] sm:$0xff]  ;;  %s5161_s15 = smov 32  }
   0xe   : > { %3835 = vmatprep.subr.bf16.mxu0 %v8523_v2  ;;  %v3836_v3 = vpack.c.bf16 %v2304_v1, %v2303_v0  ;;  %v2306_v5 = vld [vmem:[%s8518_s1 + $0x18] sm:$0xff]  ;;  %4051 = vmatprep.subr.bf16.mxu1 %v8523_v2  ;;  %v2307_v7 = vld [vmem:[%s8518_s1 + $0x20] sm:$0xff]  ;;  %v2308_v8 = vld [vmem:[%s8518_s1 + $0x28] sm:$0xff]  ;;  %s5162_s26 = smov 24   ;;  %s5163_s11 = smov 56   ;;  %vm578_vm0 = vcmask 261120  }
   0xf   : > { %s8847_s19 = smov (!%p215_p3, %s3739_s19), 1  ;;  %v3839_v6 = vpack.c.bf16 %v2306_v5, %v2305_v4  ;;  %v2309_v12 = vld [vmem:[%s8518_s1 + $0x30] sm:$0xff]  ;;  %v3842_v17 = vpack.c.bf16 %v2308_v8, %v2307_v7  ;;  %v2310_v21 = vld [vmem:[%s8518_s1 + $0x38] sm:$0xff]  ;;  %v2311_v30 = vld [vmem:[%s8518_s1 + $0x40] sm:$0xff]  ;;  %s5164_s23 = smov 48   ;;  %vm587_vm1 = vcmask 457728  }
  0x10   : > { %3837 = vmatpush1.bf16.msra.mxu0 %v3836_v3  ;;  %s4136_s28 = smul.u32 160, %s8847_s19  ;;  %v3845_v28 = vpack.c.bf16 %v2310_v21, %v2309_v12  ;;  %v2312_v31 = vld [vmem:[%s8518_s1 + $0x48] sm:$0xff]  ;;  %v2313_v38 = vld [vmem:[%s8518_s1 + $0x50] sm:$0xff]  ;;  %v2314_v39 = vld [vmem:[%s8518_s1 + $0x58] sm:$0xff]  ;;  %s5165_s8 = smov 80   ;;  %vm596_vm2 = vcmask 719872  }
  0x11   : > { %3838 = vmatprep.subr.bf16.mxu0 %v8523_v2  ;;  %v3848_v37 = vpack.c.bf16 %v2312_v31, %v2311_v30  ;;  %v3851_v42 = vpack.c.bf16 %v2314_v39, %v2313_v38  ;;  %v2315_v43 = vld [vmem:[%s8518_s1 + $0x60] sm:$0xff]  ;;  %v2316_v44 = vld [vmem:[%s8518_s1 + $0x68] sm:$0xff]  ;;  %v2317_v46 = vld [vmem:[%s8518_s1 + $0x70] sm:$0xff]  ;;  %s5166_s22 = smov 72   ;;  %s5167_s9 = smov 104   ;;  %vm614_vm3 = vcmask 130048  }
  0x12   : > { %s5242_s10 = scalar_lea.vmem %s8517_s0, %s4136_s28  ;;  %v3854_v45 = vpack.c.bf16 %v2316_v44, %v2315_v43  ;;  %v2318_v47 = vld [vmem:[%s8518_s1 + $0x78] sm:$0xff]  ;;  %v2319_v49 = vld [vmem:[%s8518_s1 + $0x80] sm:$0xff]  ;;  %v2320_v50 = vld [vmem:[%s8518_s1 + $0x88] sm:$0xff]  ;;  %s5168_s12 = smov 96   ;;  %vm623_vm4 = vcmask 326656   ;;  %vm605_vm5 = vcmask 916480  }
  0x13   : > { %v5245_v9 = vld [vmem:[%s5242_s10 + $0x41] sm:$0xff]  ;;  %v5248_v10 = vld [vmem:[%s5242_s10 + $0x51] sm:$0xff]  ;;  %v3857_v48 = vpack.c.bf16 %v2318_v47, %v2317_v46  ;;  %v3860_v51 = vpack.c.bf16 %v2320_v50, %v2319_v49  ;;  %s5169_s13 = smov 120   ;;  %s5170_s14 = smov 64   ;;  %vm632_vm6 = vcmask 588800   ;;  %vm641_vm7 = vcmask 785408  }
  0x14   : > { %v233_v11 = vld [vmem:[%s5242_s10 + $0x1] sm:$0xff]  ;;  %3840 = vmatpush1.bf16.msra.mxu0 %v3839_v6  ;;  %v5256_v13 = vpack.i.bf16 %v5248_v10, %v5245_v9  ;;  %v5259_v14 = vld [vmem:[%s5242_s10 + $0x11] sm:$0xff]  ;;  %s5171_s16 = smov 16   ;;  %s5172_s17 = smov 112   ;;  %vm1108_vm8 = vcmask 392192   ;;  %vm1133_vm9 = vcmask 850944  }
  0x15   : > { %v5262_v15 = vld [vmem:[%s5242_s10 + $0x61] sm:$0xff]  ;;  %v5265_v16 = vld [vmem:[%s5242_s10 + $0x71] sm:$0xff]  ;;  %3841 = vmatprep.subr.bf16.mxu0 %v8523_v2  ;;  %v5269_v18 = vpack.i.bf16 %v5259_v14, %v233_v11  ;;  %s5173_s20 = smov 8   ;;  %s5174_s21 = smov 88   ;;  %vm2867_vm10 = vcmask 523264   ;;  %vm650_vm11 = vcmask 195584  }
  0x16   : > { %8652 = vst [vmem:[#allocation3_spill] sm:$0xff] %v5265_v16  ;;  %v5272_v19 = vld [vmem:[%s5242_s10 + $0x21] sm:$0xff]  ;;  %v5275_v20 = vld [vmem:[%s5242_s10 + $0x31] sm:$0xff]  ;;  %4174 = vrot.lane.b32.xlu1 %v5256_v13, %s5161_s15  ;;  %v5284_v22 = vpack.i.bf16 %v5265_v16, %v5262_v15  ;;  %s5175_s24 = smov 40   ;;  %vm2352_vm12 = vcmask 64512   ;;  %vm667_vm13 = vcmask 654336  }
  0x17   : > { %8653 = vst [vmem:[#allocation4_spill] sm:$0xff] %v5269_v18  ;;  %4164 = vrot.lane.b32.xlu0 %v5269_v18, %s5161_s15  ;;  %v5290_v23 = vpack.i.bf16 %v5275_v20, %v5272_v19  ;;  %v5293_v24 = vld [vmem:[%s5242_s10 + $0x20] sm:$0xff]  ;;  %v5296_v25 = vld [vmem:[%s5242_s10 + $0x30] sm:$0xff]  ;;  %v2322_v53 = vld [vmem:[%s8518_s1 + $0x98] sm:$0xff]  ;;  %v4348_v31 = vpack.i.bf16 %v5245_v9, %v5275_v20 }
  0x18   : > { %v5299_v26 = vld [vmem:[%s5242_s10] sm:$0xff]  ;;  %v5302_v27 = vld [vmem:[%s5242_s10 + $0x10] sm:$0xff]  ;;  %3843 = vmatpush1.bf16.msra.mxu0 %v3842_v17  ;;  %v5309_v29 = vpack.i.bf16 %v5296_v25, %v5293_v24  ;;  %v2324_v56 = vld [vmem:[%s8518_s1 + $0xa8] sm:$0xff]  ;;  %v4423_v46 = vpack.i.bf16 %v5293_v24, %v5259_v14 }
  0x19   : > { %3844 = vmatprep.subr.bf16.mxu0 %v8523_v2  ;;  %v5321_v32 = vpack.i.bf16 %v5302_v27, %v5299_v26  ;;  %v5324_v33 = vld [vmem:[%s5242_s10 + $0x60] sm:$0xff]  ;;  %v5327_v34 = vld [vmem:[%s5242_s10 + $0x70] sm:$0xff]  ;;  %v2326_v59 = vld [vmem:[%s8518_s1 + $0xb8] sm:$0xff]  ;;  %v5475_v17 = vpack.i.bf16 %v5293_v24, %v5302_v27 }
  0x1a   : > { %4179 = vrot.lane.b32.xlu1 %v5284_v22, %s5161_s15  ;;  %v5330_v35 = vld [vmem:[%s5242_s10 + $0x40] sm:$0xff]  ;;  %v5333_v36 = vld [vmem:[%s5242_s10 + $0x50] sm:$0xff]  ;;  %v5346_v40 = vpack.i.bf16 %v5327_v34, %v5324_v33  ;;  %v2328_v62 = vld [vmem:[%s8518_s1 + $0xc8] sm:$0xff] }
  0x1b   : > { %4169 = vrot.lane.b32.xlu0 %v5290_v23, %s5161_s15  ;;  %8654 = vst [vmem:[#allocation5_spill] sm:$0xff] %v5321_v32  ;;  %v5352_v41 = vpack.i.bf16 %v5333_v36, %v5330_v35  ;;  %v2321_v52 = vld [vmem:[%s8518_s1 + $0x90] sm:$0xff]  ;;  %v2323_v55 = vld [vmem:[%s8518_s1 + $0xa0] sm:$0xff]  ;;  %v2330_v1 = vld [vmem:[%s8518_s1 + $0xd8] sm:$0xff]  ;;  %v5469_v12 = vpack.i.bf16 %v5330_v35, %v5296_v25  ;;  %v5491_v30 = vpack.i.bf16 %v5324_v33, %v5333_v36 }
  0x1c   : > { %3846 = vmatpush1.bf16.msra.mxu0 %v3845_v28  ;;  %v3863_v54 = vpack.c.bf16 %v2322_v53, %v2321_v52  ;;  %v3866_v57 = vpack.c.bf16 %v2324_v56, %v2323_v55  ;;  %v2325_v58 = vld [vmem:[%s8518_s1 + $0xb0] sm:$0xff]  ;;  %v2327_v61 = vld [vmem:[%s8518_s1 + $0xc0] sm:$0xff]  ;;  %v2332_v5 = vld [vmem:[%s8518_s1 + $0xe8] sm:$0xff]  ;;  %8655 = vst [vmem:[#allocation6_spill] sm:$0xff] %v5475_v17 }
  0x1d   : > { %3847 = vmatprep.subr.bf16.mxu0 %v8523_v2  ;;  %v3869_v60 = vpack.c.bf16 %v2326_v59, %v2325_v58  ;;  %v3872_v63 = vpack.c.bf16 %v2328_v62, %v2327_v61  ;;  %v2329_v0 = vld [vmem:[%s8518_s1 + $0xd0] sm:$0xff]  ;;  %v2331_v4 = vld [vmem:[%s8518_s1 + $0xe0] sm:$0xff]  ;;  %v2334_v8 = vld [vmem:[%s8518_s1 + $0xf8] sm:$0xff] }
  0x1e   : > { %4189 = vrot.lane.b32.xlu1 %v5309_v29, %s5162_s26  ;;  %v3875_v3 = vpack.c.bf16 %v2330_v1, %v2329_v0  ;;  %v3878_v6 = vpack.c.bf16 %v2332_v5, %v2331_v4  ;;  %v2333_v7 = vld [vmem:[%s8518_s1 + $0xf0] sm:$0xff]  ;;  %v5478_v21 = vld [vmem:[%s5242_s10 + $0x80] sm:$0xff] }
  0x1f   : > { %4184 = vrot.lane.b32.xlu0 %v5321_v32, %s5162_s26  ;;  %v3881_v11 = vpack.c.bf16 %v2334_v8, %v2333_v7  ;;  %8656 = vst [vmem:[#allocation7_spill] sm:$0xff] %v5478_v21  ;;  %v5485_v28 = vpack.i.bf16 %v5478_v21, %v5327_v34  ;;  %v5512_v38 = vld [vmem:[%s5242_s10 + $0x81] sm:$0xff]  ;;  %v685_v44 = vld [vmem:[%s5242_s10 + $0x12] sm:$0xff] }
  0x20   : > { %3849 = vmatpush1.bf16.msra.mxu0 %v3848_v37  ;;  %v5509_v37 = vpack.i.bf16 %v5272_v19, %v5259_v14  ;;  %8658 = vst [vmem:[#allocation9_spill] sm:$0xff] %v5512_v38  ;;  %v5517_v39 = vpack.i.bf16 %v5512_v38, %v5265_v16  ;;  %v684_v43 = vld [vmem:[%s5242_s10 + $0x2] sm:$0xff]  ;;  %v4453_v14 = vpack.i.bf16 %v5296_v25, %v5272_v19  ;;  %v5598_v59 = vld [vmem:[%s5242_s10 + $0x52] sm:$0xff] }
  0x21   : > { %3850 = vmatprep.subr.bf16.mxu0 %v8523_v2  ;;  %v686_v47 = vld [vmem:[%s5242_s10 + $0x22] sm:$0xff] }
  0x22   : > { %4199 = vrot.lane.b32.xlu1 %v5346_v40, %s5162_s26  ;;  %8657 = vst [vmem:[#allocation8_spill] sm:$0xff] %v5509_v37  ;;  %v5595_v58 = vld [vmem:[%s5242_s10 + $0x42] sm:$0xff] }
  0x23   : > { %4194 = vrot.lane.b32.xlu0 %v5352_v41, %s5162_s26  ;;  %v4508_v61 = vpack.i.bf16 %v5598_v59, %v5595_v58 }
  0x24   : > { %3852 = vmatpush1.bf16.msra.mxu0 %v3851_v42  ;;  %v4353_v42 = vpack.i.bf16 %v5262_v15, %v5248_v10 }
  0x25   : > { %3853 = vmatprep.subr.bf16.mxu0 %v8523_v2 }
  0x26   : > { %4209 = vrot.lane.b32.xlu1 %v5290_v23, %s5163_s11 }
  0x27   : > { %4204 = vrot.lane.b32.xlu0 %v5269_v18, %s5163_s11 }
  0x28   : > { %3855 = vmatpush1.bf16.msra.mxu0 %v3854_v45  ;;  %v4368_v45 = vpack.i.bf16 %v685_v44, %v684_v43  ;;  %v5665_v43 = vld [vmem:[%s5242_s10 + $0x72] sm:$0xff] }
  0x29   : > { %3856 = vmatprep.subr.bf16.mxu0 %v8523_v2  ;;  %8663 = vst [vmem:[#allocation14_spill] sm:$0xff] %v5665_v43 }
  0x2a   : > { %4219 = vrot.lane.b32.xlu1 %v5284_v22, %s5163_s11 }
  0x2b   : > { %4214 = vrot.lane.b32.xlu0 %v5256_v13, %s5163_s11 }
  0x2c   : > { %3858 = vmatpush1.bf16.msra.mxu0 %v3857_v48  ;;  %v687_v48 = vld [vmem:[%s5242_s10 + $0x32] sm:$0xff] }
  0x2d   : > { %3859 = vmatprep.subr.bf16.mxu0 %v8523_v2  ;;  %v4438_v49 = vpack.i.bf16 %v687_v48, %v686_v47 }
  0x2e   : > { %4229 = vrot.lane.b32.xlu1 %v5309_v29, %s5164_s23 }
  0x2f   : > { %4224 = vrot.lane.b32.xlu0 %v5321_v32, %s5164_s23 }
  0x30   : > { %3861 = vmatpush1.bf16.msra.mxu0 %v3860_v51 }
  0x31   : > { %3862 = vmatprep.subr.bf16.mxu0 %v8523_v2 }
  0x32   : > { %4239 = vrot.lane.b32.xlu1 %v5346_v40, %s5164_s23 }
  0x33   : > { %4234 = vrot.lane.b32.xlu0 %v5352_v41, %s5164_s23 }
  0x34   : > { %3864 = vmatpush1.bf16.msra.mxu0 %v3863_v54 }
  0x35   : > { %3865 = vmatprep.subr.bf16.mxu0 %v8523_v2 }
  0x36   : > { %4249 = vrot.lane.b32.xlu1 %v5290_v23, %s5165_s8 }
  0x37   : > { %4244 = vrot.lane.b32.xlu0 %v5269_v18, %s5165_s8 }
  0x38   : > { %3867 = vmatpush1.bf16.msra.mxu0 %v3866_v57  ;;  %v4493_v57 = vpack.i.bf16 %v5330_v35, %v5275_v20 }
  0x39   : > { %3868 = vmatprep.subr.bf16.mxu0 %v8523_v2 }
  0x3a   : > { %4259 = vrot.lane.b32.xlu1 %v5284_v22, %s5165_s8 }
  0x3b   : > { %4254 = vrot.lane.b32.xlu0 %v5256_v13, %s5165_s8 }
  0x3c   : > { %3870 = vmatpush1.bf16.msra.mxu0 %v3869_v60 }
  0x3d   : > { %3871 = vmatprep.subr.bf16.mxu0 %v8523_v2 }
  0x3e   : > { %4269 = vrot.lane.b32.xlu1 %v5309_v29, %s5166_s22 }
  0x3f   : > { %4264 = vrot.lane.b32.xlu0 %v5321_v32, %s5166_s22 }
  0x40   : > { %3873 = vmatpush1.bf16.msra.mxu0 %v3872_v63 }
  0x41   : > { %3874 = vmatprep.subr.bf16.mxu0 %v8523_v2 }
  0x42   : > { %4279 = vrot.lane.b32.xlu1 %v5346_v40, %s5166_s22 }
  0x43   : > { %4274 = vrot.lane.b32.xlu0 %v5352_v41, %s5166_s22 }
  0x44   : > { %3876 = vmatpush1.bf16.msra.mxu0 %v3875_v3 }
  0x45   : > { %3877 = vmatprep.subr.bf16.mxu0 %v8523_v2 }
  0x46   : > { %4289 = vrot.lane.b32.xlu1 %v5290_v23, %s5167_s9 }
  0x47   : > { %4284 = vrot.lane.b32.xlu0 %v5269_v18, %s5167_s9 }
  0x48   : > { %3879 = vmatpush1.bf16.msra.mxu0 %v3878_v6 }
  0x49   : > { %3880 = vmatprep.subr.bf16.mxu0 %v8523_v2 }
  0x4a   : > { %4299 = vrot.lane.b32.xlu1 %v5284_v22, %s5167_s9 }
  0x4b   : > { %4294 = vrot.lane.b32.xlu0 %v5256_v13, %s5167_s9 }
  0x4c   : > { %3882 = vmatpush1.bf16.msra.mxu0 %v3881_v11 }
  0x4d   : > { %3883 = vmatprep.subr.bf16.mxu0 %v8523_v2 }
  0x4e   : > { %4309 = vrot.lane.b32.xlu1 %v5469_v12, %s5168_s12 }
  0x4f   : > { %4304 = vrot.lane.b32.xlu0 %v5475_v17, %s5168_s12 }
  0x52   : > { %4319 = vrot.lane.b32.xlu1 %v5485_v28, %s5168_s12 }
  0x53   : > { %4314 = vrot.lane.b32.xlu0 %v5491_v30, %s5168_s12 }
  0x56   : > { %4329 = vrot.lane.b32.xlu1 %v5469_v12, %s5169_s13 }
  0x57   : > { %4324 = vrot.lane.b32.xlu0 %v5475_v17, %s5169_s13 }
  0x5a   : > { %4339 = vrot.lane.b32.xlu1 %v5485_v28, %s5169_s13 }
  0x5b   : > { %4334 = vrot.lane.b32.xlu0 %v5491_v30, %s5169_s13 }
  0x5e   : > { %4349 = vrot.lane.b32.xlu1 %v4348_v31, %s5162_s26 }
  0x5f   : > { %4344 = vrot.lane.b32.xlu0 %v5509_v37, %s5162_s26 }
  0x62   : > { %4359 = vrot.lane.b32.xlu1 %v5517_v39, %s5162_s26 }
  0x63   : > { %4354 = vrot.lane.b32.xlu0 %v4353_v42, %s5162_s26 }
  0x66   : > { %4369 = vrot.lane.b32.xlu1 %v4368_v45, %s5168_s12 }
  0x67   : > { %4364 = vrot.lane.b32.xlu0 %v5269_v18, %s5170_s14 }
  0x6a   : > { %4379 = vrot.lane.b32.xlu1 %v5269_v18, %s5171_s16 }
  0x6b   : > { %4374 = vrot.lane.b32.xlu0 %v5321_v32, %s5172_s17 }
  0x6e   : > { %4389 = vrot.lane.b32.xlu1 %v4368_v45, %s5164_s23 }
  0x6f   : > { %4384 = vrot.lane.b32.xlu0 %v5321_v32, %s5163_s11 }
  0x72   : > { %4399 = vrot.lane.b32.xlu1 %v5321_v32, %s5173_s20 }
  0x73   : > { %4394 = vrot.lane.b32.xlu0 %v5269_v18, %s5174_s21 }
  0x76   : > { %4409 = vrot.lane.b32.xlu1 %v5269_v18, %s5175_s24 }
  0x77   : > { %4404 = vrot.lane.b32.xlu0 %v4368_v45, %s5169_s13 }
  0x7a   : > { %4419 = vrot.lane.b32.xlu1 %v4368_v45, %s5166_s22 }
  0x7b   : > { %4414 = vrot.lane.b32.xlu0 %v5475_v17, %s5165_s8 }
  0x7e   : > { %4429 = vrot.lane.b32.xlu1 %v5321_v32, %s5161_s15 }
  0x7f   : > { %4424 = vrot.lane.b32.xlu0 %v4423_v46, %s5172_s17 }
  0x82   : > { %4439 = vrot.lane.b32.xlu1 %v4438_v49, %s5168_s12 }
  0x83   : > { %4434 = vrot.lane.b32.xlu0 %v5290_v23, %s5170_s14 }
  0x86   : > { %4449 = vrot.lane.b32.xlu1 %v5309_v29, %s5163_s11 }
  0x87   : > { %4444 = vrot.lane.b32.xlu0 %v5290_v23, %s5171_s16 }
  0x88   : > { %v5564_v50 = vpop.permute.xlu1 %4174 }
  0x89   : > { %v5566_v51 = vpop.permute.xlu0 %4164 }
  0x8a   : > { %4459 = vrot.lane.b32.xlu1 %v4438_v49, %s5164_s23  ;;  %v4167_v2 = vunpack.i.h.bf16 %v5566_v51 }
  0x8b   : > { %4454 = vrot.lane.b32.xlu0 %v4453_v14, %s5172_s17 }
  0x8c   : > { %v5570_v52 = vpop.permute.xlu1 %4179 }
  0x8d   : > { %v5572_v53 = vpop.permute.xlu0 %4169 }
  0x8e   : > { %4469 = vrot.lane.b32.xlu1 %v5309_v29, %s5173_s20 }
  0x8f   : > { %4464 = vrot.lane.b32.xlu0 %v5290_v23, %s5174_s21 }
  0x90   : > { %v5578_v19 = vpop.permute.xlu1 %4189 }
  0x91   : > { %v5580_v54 = vpop.permute.xlu0 %4184 }
  0x92   : > { %4479 = vrot.lane.b32.xlu1 %v5290_v23, %s5175_s24 }
  0x93   : > { %4474 = vrot.lane.b32.xlu0 %v4438_v49, %s5169_s13 }
  0x94   : > { %v5585_v55 = vpop.permute.xlu1 %4199 }
  0x95   : > { %v5587_v56 = vpop.permute.xlu0 %4194 }
  0x96   : > { %4489 = vrot.lane.b32.xlu1 %v4438_v49, %s5166_s22  ;;  %v4186_v49 = vunpack.i.l.bf16 %v5580_v54 }
  0x97   : > { %4484 = vrot.lane.b32.xlu0 %v5469_v12, %s5165_s8  ;;  %v4563_v12 = vpack.i.bf16 %v5324_v33, %v5248_v10 }
  0x98   : > { %v5600_v60 = vpop.permute.xlu1 %4209 }
  0x99   : > { %v5602_v23 = vpop.permute.xlu0 %4204 }
  0x9a   : > { %4499 = vrot.lane.b32.xlu1 %v5309_v29, %s5161_s15  ;;  %v4523_v29 = vpack.i.bf16 %v5333_v36, %v5245_v9  ;;  %v4206_v21 = vunpack.i.l.bf16 %v5602_v23  ;;  %v4207_v32 = vunpack.i.h.bf16 %v5602_v23 }
  0x9b   : > { %4494 = vrot.lane.b32.xlu0 %v4493_v57, %s5172_s17 }
  0x9c   : > { %v5609_v62 = vpop.permute.xlu1 %4219 }
  0x9d   : > { %v5611_v63 = vpop.permute.xlu0 %4214 }
  0x9e   : > { %4509 = vrot.lane.b32.xlu1 %v4508_v61, %s5168_s12 }
  0x9f   : > { %4504 = vrot.lane.b32.xlu0 %v5256_v13, %s5170_s14 }
  0xa0   : > { %v5616_v20 = vpop.permute.xlu1 %4229 }
  0xa1   : > { %v5618_v0 = vpop.permute.xlu0 %4224 }
  0xa2   : > { %4519 = vrot.lane.b32.xlu1 %v5352_v41, %s5163_s11  ;;  %v4226_v57 = vunpack.i.l.bf16 %v5618_v0 }
  0xa3   : > { %4514 = vrot.lane.b32.xlu0 %v5256_v13, %s5171_s16 }
  0xa4   : > { %v5626_v1 = vpop.permute.xlu1 %4239 }
  0xa5   : > { %v5628_v3 = vpop.permute.xlu0 %4234 }
  0xa6   : > { %4529 = vrot.lane.b32.xlu1 %v4508_v61, %s5164_s23 }
  0xa7   : > { %4524 = vrot.lane.b32.xlu0 %v4523_v29, %s5172_s17  ;;  %v4227_v29 = vunpack.i.h.bf16 %v5618_v0 }
  0xa8   : > { %v5632_v4 = vpop.permute.xlu1 %4249 }
  0xa9   : > { %v4245_v5 = vpop.permute.xlu0 %4244  ;;  %v4251_v38 = vunpack.i.l.bf16 %v5632_v4 }
  0xaa   : > { %4539 = vrot.lane.b32.xlu1 %v5352_v41, %s5173_s20  ;;  %v4246_v47 = vunpack.i.l.bf16 %v4245_v5 }
  0xab   : > { %4534 = vrot.lane.b32.xlu0 %v5256_v13, %s5174_s21 }
  0xac   : > { %v5638_v6 = vpop.permute.xlu1 %4259  ;;  %v5707_v37 = vsel %vm614_vm3, %v4226_v57, %v4246_v47 }
  0xad   : > { %v5640_v7 = vpop.permute.xlu0 %4254  ;;  %8670 = vst [vmem:[#allocation21_spill] sm:$0xff] %v5707_v37 }
  0xae   : > { %4549 = vrot.lane.b32.xlu1 %v5256_v13, %s5175_s24  ;;  %v5662_v13 = vld [vmem:[%s5242_s10 + $0x62] sm:$0xff] }
  0xaf   : > { %4544 = vrot.lane.b32.xlu0 %v4508_v61, %s5169_s13 }
  0xb0   : > { %v5645_v8 = vpop.permute.xlu1 %4269 }
  0xb1   : > { %8659 = vst [vmem:[#allocation10_spill] sm:$0xff] %v5645_v8  ;;  %v5647_v11 = vpop.permute.xlu0 %4264 }
  0xb2   : > { %8660 = vst [vmem:[#allocation11_spill] sm:$0xff] %v5647_v11  ;;  %4559 = vrot.lane.b32.xlu1 %v4508_v61, %s5166_s22  ;;  %v4247_v61 = vunpack.i.h.bf16 %v4245_v5  ;;  %v4187_v5 = vunpack.i.h.bf16 %v5580_v54 }
  0xb3   : > { %4554 = vrot.lane.b32.xlu0 %v5491_v30, %s5165_s8  ;;  %v5675_v30 = vpack.i.bf16 %v5665_v43, %v5662_v13 }
  0xb4   : > { %v5654_v31 = vpop.permute.xlu1 %4279  ;;  %v5721_v47 = vsel %vm614_vm3, %v4227_v29, %v4247_v61  ;;  %v8676_v61 = vunpack.i.h.bf16 %v5647_v11 }
  0xb5   : > { %8661 = vst [vmem:[#allocation12_spill] sm:$0xff] %v5654_v31  ;;  %v5656_v42 = vpop.permute.xlu0 %4274  ;;  %8672 = vst [vmem:[#allocation22_spill] sm:$0xff] %v5721_v47 }
  0xb6   : > { %8662 = vst [vmem:[#allocation13_spill] sm:$0xff] %v5656_v42  ;;  %4569 = vrot.lane.b32.xlu1 %v5352_v41, %s5161_s15  ;;  %v4166_v41 = vunpack.i.l.bf16 %v5566_v51 }
  0xb7   : > { %4564 = vrot.lane.b32.xlu0 %v4563_v12, %s5172_s17  ;;  %v4593_v12 = vpack.i.bf16 %v5327_v34, %v5262_v15 }
  0xb8   : > { %v5667_v44 = vpop.permute.xlu1 %4289  ;;  %v579_v14 = vsel %vm578_vm0, %v5299_v26, %v4166_v41  ;;  %v8671_v41 = vunpack.i.l.bf16 %v5647_v11 }
  0xb9   : > { %8664 = vst [vmem:[#allocation15_spill] sm:$0xff] %v5667_v44  ;;  %v5669_v45 = vpop.permute.xlu0 %4284  ;;  %v588_v0 = vsel %vm587_vm1, %v579_v14, %v4186_v49 }
  0xba   : > { %8665 = vst [vmem:[#allocation16_spill] sm:$0xff] %v5669_v45  ;;  %1244 = vrot.lane.b32.xlu1 %v5330_v35, %s5174_s21  ;;  %v624_v54 = vsel %vm623_vm4, %v5707_v37, %v8671_v41  ;;  %v8673_v51 = vunpack.i.l.bf16 %v5669_v45  ;;  %v597_v14 = vsel %vm596_vm2, %v588_v0, %v4206_v21  ;;  %v625_v41 = vsel %vm623_vm4, %v5721_v47, %v8676_v61  ;;  %v2347_v47 = vld [vmem:[%s8518_s1 + $0x160] sm:$0xff] }
  0xbb   : > { %1220 = vrot.lane.b32.xlu0 %v5245_v9, %s5168_s12  ;;  %v8558_v37 = vunpack.i.l.bf16 %v5667_v44  ;;  %v8678_v16 = vunpack.i.h.bf16 %v5669_v45  ;;  %v580_v21 = vsel %vm578_vm0, %v5302_v27, %v4167_v2  ;;  %v4171_v0 = vunpack.i.l.bf16 %v5572_v53 }
  0xbc   : > { %v5680_v46 = vpop.permute.xlu1 %4299  ;;  %v633_v26 = vsel %vm632_vm6, %v624_v54, %v8673_v51  ;;  %v606_v54 = vsel %vm605_vm5, %v597_v14, %v4226_v57  ;;  %v4191_v57 = vunpack.i.l.bf16 %v5578_v19  ;;  %v4252_v14 = vunpack.i.h.bf16 %v5632_v4 }
  0xbd   : > { %8666 = vst [vmem:[#allocation17_spill] sm:$0xff] %v5680_v46  ;;  %v5682_v48 = vpop.permute.xlu0 %4294  ;;  %v589_v2 = vsel %vm587_vm1, %v580_v21, %v4187_v5  ;;  %v4211_v27 = vunpack.i.l.bf16 %v5600_v60  ;;  %v4232_v4 = vunpack.i.h.bf16 %v5616_v20 }
  0xbe   : > { %8667 = vst [vmem:[#allocation18_spill] sm:$0xff] %v5682_v48  ;;  %4579 = vrot.lane.b32.xlu1 %v5675_v30, %s5168_s12 }
  0xbf   : > { %4574 = vrot.lane.b32.xlu0 %v5284_v22, %s5170_s14 }
  0xc0   : > { %v5699_v43 = vpop.permute.xlu1 %4309 }
  0xc1   : > { %8668 = vst [vmem:[#allocation19_spill] sm:$0xff] %v5699_v43  ;;  %v5704_v18 = vpop.permute.xlu0 %4304 }
  0xc2   : > { %8669 = vst [vmem:[#allocation20_spill] sm:$0xff] %v5704_v18  ;;  %4584 = vrot.lane.b32.xlu1 %v5284_v22, %s5171_s16  ;;  %v8675_v49 = vunpack.i.l.bf16 %v5704_v18  ;;  %v8679_v61 = vunpack.i.h.bf16 %v5704_v18 }
  0xc3   : > { %1268 = vrot.lane.b32.xlu0 %v5245_v9, %s5169_s13  ;;  %v4231_v9 = vunpack.i.l.bf16 %v5616_v20 }
  0xc4   : > { %v5729_v17 = vpop.permute.xlu1 %4319  ;;  %v642_v23 = vsel %vm641_vm7, %v633_v26, %v8675_v49  ;;  %v634_v26 = vsel %vm632_vm6, %v625_v41, %v8678_v16  ;;  %v8542_v49 = vunpack.i.l.bf16 %v5699_v43 }
  0xc5   : > { %8674 = vst [vmem:[#allocation23_spill] sm:$0xff] %v5729_v17  ;;  %v5741_v51 = vpop.permute.xlu0 %4314  ;;  %2481 = vmatprep.mubr.f32.mxu0 %v642_v23  ;;  %v643_v23 = vsel %vm641_vm7, %v634_v26, %v8679_v61  ;;  %v5758_v16 = vsel %vm614_vm3, %v4231_v9, %v4251_v38  ;;  %v8682_v26 = vunpack.i.l.bf16 %v5645_v8  ;;  %v8540_v61 = vunpack.i.h.bf16 %v5667_v44 }
  0xc6   : > { %8677 = vst [vmem:[#allocation24_spill] sm:$0xff] %v5741_v51  ;;  %2482 = vmatmul.mubr.f32.vlgmr.msra.gmra.mrb[0].mxu0 %v606_v54  ;;  %4594 = vrot.lane.b32.xlu1 %v4593_v12, %s5172_s17  ;;  %8680 = vst [vmem:[#allocation25_spill] sm:$0xff] %v5758_v16  ;;  %v598_v54 = vsel %vm596_vm2, %v589_v2, %v4207_v32  ;;  %v4172_v12 = vunpack.i.h.bf16 %v5572_v53  ;;  %v581_v32 = vsel %vm578_vm0, %v5293_v24, %v4171_v0 }
  0xc7   : > { %4589 = vrot.lane.b32.xlu0 %v5346_v40, %s5163_s11  ;;  %2486 = vmatprep.mubr.f32.mxu0 %v643_v23  ;;  %v626_v38 = vsel %vm623_vm4, %v5758_v16, %v8682_v26  ;;  %v607_v5 = vsel %vm605_vm5, %v598_v54, %v4227_v29  ;;  %v8541_v2 = vunpack.i.h.bf16 %v5699_v43  ;;  %v4192_v29 = vunpack.i.h.bf16 %v5578_v19 }
  0xc8   : > { %v5765_v41 = vpop.permute.xlu1 %4329  ;;  %v635_v21 = vsel %vm632_vm6, %v626_v38, %v8558_v37  ;;  %v5791_v54 = vsel %vm614_vm3, %v4232_v4, %v4252_v14  ;;  %v4256_v53 = vunpack.i.l.bf16 %v5640_v7  ;;  %v590_v24 = vsel %vm587_vm1, %v581_v32, %v4191_v57 }
  0xc9   : > { %8681 = vst [vmem:[#allocation26_spill] sm:$0xff] %v5765_v41  ;;  %v5774_v23 = vpop.permute.xlu0 %4324  ;;  %v644_v20 = vsel %vm641_vm7, %v635_v21, %v8542_v49  ;;  %8684 = vst [vmem:[#allocation28_spill] sm:$0xff] %v5791_v54  ;;  %v4212_v0 = vunpack.i.h.bf16 %v5600_v60  ;;  %v8554_v26 = vunpack.i.l.bf16 %v5656_v42  ;;  %v8686_v19 = vunpack.i.h.bf16 %v5645_v8 }
  0xca   : > { %8683 = vst [vmem:[#allocation27_spill] sm:$0xff] %v5774_v23  ;;  %2487 = vmatmul.mubr.f32.gmra.mrb[2].mxu0 %v607_v5  ;;  %4599 = vrot.lane.b32.xlu1 %v5675_v30, %s5164_s23  ;;  %v599_v5 = vsel %vm596_vm2, %v590_v24, %v4211_v27  ;;  %v4236_v21 = vunpack.i.l.bf16 %v5628_v3  ;;  %v4176_v32 = vunpack.i.l.bf16 %v5564_v50  ;;  %v582_v27 = vsel %vm578_vm0, %v5296_v25, %v4172_v12 }
  0xcb   : > { %1292 = vrot.lane.b32.xlu0 %v5595_v58, %s5162_s26  ;;  %2491 = vmatprep.mubr.f32.mxu0 %v644_v20  ;;  %v627_v14 = vsel %vm623_vm4, %v5791_v54, %v8686_v19  ;;  %v8553_v58 = vunpack.i.l.bf16 %v5682_v48  ;;  %v608_v57 = vsel %vm605_vm5, %v599_v5, %v4231_v9  ;;  %v8543_v24 = vunpack.i.l.bf16 %v5741_v51 }
  0xcc   : > { %v5799_v38 = vpop.permute.xlu1 %4339  ;;  %v636_v60 = vsel %vm632_vm6, %v627_v14, %v8540_v61  ;;  %v4196_v9 = vunpack.i.l.bf16 %v5587_v56  ;;  %v4257_v5 = vunpack.i.h.bf16 %v5640_v7  ;;  %v5826_v14 = vsel %vm614_vm3, %v4236_v21, %v4256_v53 }
  0xcd   : > { %8685 = vst [vmem:[#allocation29_spill] sm:$0xff] %v5799_v38  ;;  %v5808_v20 = vpop.permute.xlu0 %4334  ;;  %v645_v19 = vsel %vm641_vm7, %v636_v60, %v8541_v2  ;;  %8688 = vst [vmem:[#allocation31_spill] sm:$0xff] %v5826_v14  ;;  %v591_v25 = vsel %vm587_vm1, %v582_v27, %v4192_v29  ;;  %v4216_v12 = vunpack.i.l.bf16 %v5611_v63  ;;  %v628_v7 = vsel %vm623_vm4, %v5826_v14, %v8554_v26 }
  0xce   : > { %8687 = vst [vmem:[#allocation30_spill] sm:$0xff] %v5808_v20  ;;  %2492 = vmatmul.mubr.f32.gmra.mrb[4].mxu0 %v608_v57  ;;  %1222 = vrot.lane.b32.xlu1 %v5248_v10, %s5168_s12  ;;  %v8544_v57 = vunpack.i.h.bf16 %v5656_v42  ;;  %v600_v60 = vsel %vm596_vm2, %v591_v25, %v4212_v0  ;;  %v4237_v53 = vunpack.i.h.bf16 %v5628_v3  ;;  %v8545_v2 = vunpack.i.h.bf16 %v5682_v48  ;;  %v5121_v20 = vld [vmem:[%s5242_s10 + $0x32] sm:$0xff] }
  0xcf   : > { %4604 = vrot.lane.b32.xlu0 %v5284_v22, %s5174_s21  ;;  %2496 = vmatprep.mubr.f32.mxu0 %v645_v19  ;;  %v609_v29 = vsel %vm605_vm5, %v600_v60, %v4232_v4  ;;  %v637_v27 = vsel %vm632_vm6, %v628_v7, %v8553_v58  ;;  %v4177_v49 = vunpack.i.h.bf16 %v5564_v50  ;;  %v583_v0 = vsel %vm578_vm0, %v5330_v35, %v4176_v32 }
  0xd0   : > { %v5833_v61 = vpop.permute.xlu1 %4349  ;;  %v8546_v25 = vunpack.i.h.bf16 %v5741_v51  ;;  %v646_v3 = vsel %vm641_vm7, %v637_v27, %v8543_v24  ;;  %v4197_v4 = vunpack.i.h.bf16 %v5587_v56  ;;  %v4261_v60 = vunpack.i.l.bf16 %v5638_v6 }
  0xd1   : > { %8689 = vst [vmem:[#allocation32_spill] sm:$0xff] %v5833_v61  ;;  %v5842_v19 = vpop.permute.xlu0 %4344  ;;  %v5860_v7 = vsel %vm614_vm3, %v4237_v53, %v4257_v5  ;;  %v592_v35 = vsel %vm587_vm1, %v583_v0, %v4196_v9  ;;  %v4217_v50 = vunpack.i.h.bf16 %v5611_v63  ;;  %v8552_v32 = vunpack.i.l.bf16 %v5654_v31  ;;  %v6424_v61 = vld [vmem:[%s5242_s10 + $0x11] sm:$0xff] }
  0xd2   : > { %8690 = vst [vmem:[#allocation33_spill] sm:$0xff] %v5842_v19  ;;  %2497 = vmatmul.mubr.f32.gmra.mrb[6].mxu0 %v609_v29  ;;  %4614 = vrot.lane.b32.xlu1 %v5675_v30, %s5169_s13  ;;  %8691 = vst [vmem:[#allocation34_spill] sm:$0xff] %v5860_v7  ;;  %v601_v27 = vsel %vm596_vm2, %v592_v35, %v4216_v12  ;;  %v629_v56 = vsel %vm623_vm4, %v5860_v7, %v8544_v57  ;;  %v4241_v5 = vunpack.i.l.bf16 %v5626_v1 }
  0xd3   : > { %4609 = vrot.lane.b32.xlu0 %v5346_v40, %s5173_s20  ;;  %2501 = vmatprep.mubr.f32.mxu0 %v646_v3  ;;  %v8550_v24 = vunpack.i.l.bf16 %v5680_v46  ;;  %v610_v9 = vsel %vm605_vm5, %v601_v27, %v4236_v21  ;;  %v638_v63 = vsel %vm632_vm6, %v629_v56, %v8545_v2  ;;  %v584_v12 = vsel %vm578_vm0, %v5333_v36, %v4177_v49 }
  0xd4   : > { %v5867_v29 = vpop.permute.xlu1 %4359  ;;  %v4181_v0 = vunpack.i.l.bf16 %v5570_v52  ;;  %v8549_v35 = vunpack.i.l.bf16 %v5729_v17  ;;  %v647_v57 = vsel %vm641_vm7, %v638_v63, %v8546_v25  ;;  %v4201_v21 = vunpack.i.l.bf16 %v5585_v55 }
  0xd5   : > { %8692 = vst [vmem:[#allocation35_spill] sm:$0xff] %v5867_v29  ;;  %v5876_v3 = vpop.permute.xlu0 %4354  ;;  %v4262_v27 = vunpack.i.h.bf16 %v5638_v6  ;;  %v5894_v56 = vsel %vm614_vm3, %v4241_v5, %v4261_v60  ;;  %v593_v49 = vsel %vm587_vm1, %v584_v12, %v4197_v4  ;;  %v4242_v60 = vunpack.i.h.bf16 %v5626_v1 }
  0xd6   : > { %8693 = vst [vmem:[#allocation36_spill] sm:$0xff] %v5876_v3  ;;  %2502 = vmatmul.mubr.f32.gmra.mrb[8].mxu0 %v610_v9  ;;  %4619 = vrot.lane.b32.xlu1 %v5284_v22, %s5175_s24  ;;  %8694 = vst [vmem:[#allocation37_spill] sm:$0xff] %v5894_v56  ;;  %v4221_v9 = vunpack.i.l.bf16 %v5609_v62  ;;  %v8551_v22 = vunpack.i.h.bf16 %v5654_v31  ;;  %v602_v63 = vsel %vm596_vm2, %v593_v49, %v4217_v50  ;;  %v4182_v25 = vunpack.i.h.bf16 %v5570_v52  ;;  %v6406_v3 = vld [vmem:[%s5242_s10 + $0x42] sm:$0xff] }
  0xd7   : > { %1246 = vrot.lane.b32.xlu0 %v5333_v36, %s5174_s21  ;;  %2506 = vmatprep.mubr.f32.mxu0 %v647_v57  ;;  %v630_v6 = vsel %vm623_vm4, %v5894_v56, %v8552_v32  ;;  %v8548_v36 = vunpack.i.h.bf16 %v5680_v46  ;;  %v611_v4 = vsel %vm605_vm5, %v602_v63, %v4237_v53  ;;  %v585_v50 = vsel %vm578_vm0, %v5324_v33, %v4181_v0 }
  0xd8   : > { %v5901_v2 = vpop.permute.xlu1 %4369  ;;  %v639_v12 = vsel %vm632_vm6, %v630_v6, %v8550_v24  ;;  %v8547_v49 = vunpack.i.h.bf16 %v5729_v17  ;;  %v4202_v53 = vunpack.i.h.bf16 %v5585_v55  ;;  %v5927_v63 = vsel %vm614_vm3, %v4242_v60, %v4262_v27 }
  0xd9   : > { %v5910_v57 = vpop.permute.xlu0 %4364  ;;  %v648_v1 = vsel %vm641_vm7, %v639_v12, %v8549_v35  ;;  %8695 = vst [vmem:[#allocation38_spill] sm:$0xff] %v5927_v63  ;;  %v594_v52 = vsel %vm587_vm1, %v585_v50, %v4201_v21  ;;  %v4222_v0 = vunpack.i.h.bf16 %v5609_v62  ;;  %v631_v55 = vsel %vm623_vm4, %v5927_v63, %v8551_v22  ;;  %v8697_v35 = vld [vmem:[#allocation3_spill] sm:$0xff] }
  0xda   : > { %2507 = vmatmul.mubr.f32.gmra.mrb[10].mxu0 %v611_v4  ;;  %1270 = vrot.lane.b32.xlu1 %v5248_v10, %s5169_s13  ;;  %v603_v10 = vsel %vm596_vm2, %v594_v52, %v4221_v9  ;;  %v586_v62 = vsel %vm578_vm0, %v5327_v34, %v4182_v25 }
  0xdb   : > { %4624 = vrot.lane.b32.xlu0 %v5485_v28, %s5165_s8  ;;  %2511 = vmatprep.mubr.f32.mxu0 %v648_v1  ;;  %v612_v27 = vsel %vm605_vm5, %v603_v10, %v4241_v5  ;;  %v640_v28 = vsel %vm632_vm6, %v631_v55, %v8548_v36  ;;  %v595_v5 = vsel %vm587_vm1, %v586_v62, %v4202_v53 }
  0xdc   : > { %v5933_v6 = vpop.permute.xlu1 %4379  ;;  %v649_v21 = vsel %vm641_vm7, %v640_v28, %v8547_v49  ;;  %v604_v12 = vsel %vm596_vm2, %v595_v5, %v4222_v0  ;;  %v4366_v0 = vunpack.i.l.bf16 %v5910_v57 }
  0xdd   : > { %v5940_v4 = vpop.permute.xlu0 %4374  ;;  %v613_v25 = vsel %vm605_vm5, %v604_v12, %v4242_v60  ;;  %v4381_v53 = vunpack.i.l.bf16 %v5933_v6 }
  0xde   : > { %2512 = vmatmul.mubr.f32.gmra.mrb[12].mxu0 %v612_v27  ;;  %4634 = vrot.lane.b32.xlu1 %v5517_v39, %s5172_s17  ;;  %v4376_v52 = vunpack.i.l.bf16 %v5940_v4 }
  0xdf   : > { %4629 = vrot.lane.b32.xlu0 %v5675_v30, %s5166_s22  ;;  %2516 = vmatprep.mubr.f32.mxu0 %v649_v21 }
  0xe0   : > { %v5956_v9 = vpop.permute.xlu1 %4389  ;;  %v1100_v21 = vsel %vm614_vm3, %v4376_v52, %v4381_v53 }
  0xe1   : > { %v5959_v50 = vpop.permute.xlu0 %4384 }
  0xe2   : > { %2517 = vmatmul.mubr.f32.gmra.mrb[14].mxu0 %v613_v25  ;;  %4639 = vrot.lane.b32.xlu1 %v5346_v40, %s5161_s15  ;;  %v4386_v10 = vunpack.i.l.bf16 %v5959_v50 }
  0xe3   : > { %1294 = vrot.lane.b32.xlu0 %v5598_v59, %s5162_s26  ;;  %v4371_v59 = vunpack.i.l.bf16 %v5901_v2 }
  0xe4   : > { %v5966_v39 = vpop.permute.xlu1 %4399 }
  0xe5   : > { %v5968_v30 = vpop.permute.xlu0 %4394  ;;  %v4401_v55 = vunpack.i.l.bf16 %v5966_v39  ;;  %v1150_v25 = vsel %vm578_vm0, %v4366_v0, %v4371_v59 }
  0xe6   : > { %1248 = vrot.lane.b32.xlu1 %v5324_v33, %s5174_s21  ;;  %v4391_v33 = vunpack.i.l.bf16 %v5956_v9  ;;  %v4396_v28 = vunpack.i.l.bf16 %v5968_v30  ;;  %v1158_v24 = vsel %vm623_vm4, %v1150_v25, %v4386_v10  ;;  %v8699_v10 = vld [vmem:[#allocation8_spill] sm:$0xff]  ;;  %v4392_v25 = vunpack.i.h.bf16 %v5956_v9 }
  0xe7   : > { %1224 = vrot.lane.b32.xlu0 %v5262_v15, %s5168_s12 }
  0xe8   : > { %v5974_v1 = vpop.permute.xlu1 %4409  ;;  %v1109_v49 = vsel %vm1108_vm8, %v1100_v21, %v4391_v33  ;;  %v1166_v22 = vsel %vm587_vm1, %v1158_v24, %v4396_v28  ;;  %v4377_v21 = vunpack.i.h.bf16 %v5940_v4 }
  0xe9   : > { %v5976_v60 = vpop.permute.xlu0 %4404  ;;  %v1117_v53 = vsel %vm587_vm1, %v1109_v49, %v4401_v55  ;;  %v4412_v4 = vunpack.i.h.bf16 %v5974_v1 }
  0xea   : > { %1296 = vrot.lane.b32.xlu1 %v5662_v13, %s5162_s26  ;;  %v4411_v13 = vunpack.i.l.bf16 %v5974_v1  ;;  %v4406_v5 = vunpack.i.l.bf16 %v5976_v60 }
  0xeb   : > { %1272 = vrot.lane.b32.xlu0 %v5262_v15, %s5169_s13  ;;  %v8696_v15 = vld [vmem:[#allocation6_spill] sm:$0xff] }
  0xec   : > { %v5989_v27 = vpop.permute.xlu1 %4419  ;;  %v1125_v26 = vsel %vm632_vm6, %v1117_v53, %v4411_v13  ;;  %v1174_v0 = vsel %vm596_vm2, %v1166_v22, %v4406_v5  ;;  %v4367_v22 = vunpack.i.h.bf16 %v5910_v57  ;;  %v4387_v5 = vunpack.i.h.bf16 %v5959_v50 }
  0xed   : > { %v4415_v62 = vpop.permute.xlu0 %4414  ;;  %v4421_v12 = vunpack.i.l.bf16 %v5989_v27  ;;  %v4397_v53 = vunpack.i.h.bf16 %v5968_v30  ;;  %v4407_v57 = vunpack.i.h.bf16 %v5976_v60 }
  0xee   : > { %4644 = vrot.lane.b32.xlu1 %v8696_v15, %s5172_s17  ;;  %v4416_v36 = vunpack.i.l.bf16 %v4415_v62  ;;  %v4417_v50 = vunpack.i.h.bf16 %v4415_v62 }
  0xef   : > { %1226 = vrot.lane.b32.xlu0 %v8697_v35, %s5168_s12  ;;  %v1134_v33 = vsel %vm1133_vm9, %v1125_v26, %v4421_v12  ;;  %v4372_v26 = vunpack.i.h.bf16 %v5901_v2  ;;  %v4402_v2 = vunpack.i.h.bf16 %v5966_v39 }
  0xf0   : > { %v4430_v52 = vpop.permute.xlu1 %4429  ;;  %v1182_v49 = vsel %vm641_vm7, %v1174_v0, %v4416_v36  ;;  %v8701_v36 = vld [vmem:[#allocation5_spill] sm:$0xff] }
  0xf1   : > { %v4431_v32 = vunpack.i.l.bf16 %v4430_v52  ;;  %v6005_v58 = vpop.permute.xlu0 %4424 }
  0xf2   : > { %8698 = vst [vmem:[#allocation6_spill] sm:$0xff] %v6005_v58  ;;  %v8556_v59 = vunpack.i.l.bf16 %v6005_v58  ;;  %1250 = vrot.lane.b32.xlu1 %v5327_v34, %s5174_s21  ;;  %v8700_v34 = vld [vmem:[#allocation4_spill] sm:$0xff] }
  0xf3   : > { %4649 = vrot.lane.b32.xlu0 %v8699_v10, %s5171_s16  ;;  %v1142_v24 = vsel %vm605_vm5, %v1134_v33, %v4431_v32  ;;  %v4382_v32 = vunpack.i.h.bf16 %v5933_v6  ;;  %v1151_v6 = vsel %vm578_vm0, %v4367_v22, %v4372_v26  ;;  %v4422_v33 = vunpack.i.h.bf16 %v5989_v27 }
  0xf4   : > { %v6017_v55 = vpop.permute.xlu1 %4439  ;;  %v1190_v28 = vsel %vm605_vm5, %v1182_v49, %v8556_v59  ;;  %v1159_v30 = vsel %vm623_vm4, %v1151_v6, %v4387_v5  ;;  %v4432_v49 = vunpack.i.h.bf16 %v4430_v52  ;;  %v6121_v59 = vld [vmem:[%s5242_s10 + $0x82] sm:$0xff] }
  0xf5   : > { %v6022_v13 = vpop.permute.xlu0 %4434  ;;  %2521 = vmatprep.mubr.f32.mxu0 %v1190_v28  ;;  %v1101_v9 = vsel %vm614_vm3, %v4377_v21, %v4382_v32 }
  0xf6   : > { %2522 = vmatmul.mubr.f32.gmra.mrb[16].mxu0 %v1142_v24  ;;  %4659 = vrot.lane.b32.xlu1 %v8700_v34, %s5168_s12  ;;  %v1110_v60 = vsel %vm1108_vm8, %v1101_v9, %v4392_v25  ;;  %v4436_v6 = vunpack.i.l.bf16 %v6022_v13 }
  0xf7   : > { %4654 = vrot.lane.b32.xlu0 %v8701_v36, %s5170_s14  ;;  %v1118_v1 = vsel %vm587_vm1, %v1110_v60, %v4402_v2  ;;  %v8704_v2 = vld [vmem:[#allocation9_spill] sm:$0xff] }
  0xf8   : > { %v6033_v12 = vpop.permute.xlu1 %4449  ;;  %v1126_v26 = vsel %vm632_vm6, %v1118_v1, %v4412_v4  ;;  %v4427_v4 = vunpack.i.h.bf16 %v6005_v58  ;;  %8710 = vst [vmem:[#allocation9_spill] sm:$0xff] %v6424_v61 }
  0xf9   : > { %v6037_v0 = vpop.permute.xlu0 %4444  ;;  %v1135_v32 = vsel %vm1133_vm9, %v1126_v26, %v4422_v33  ;;  %v6106_v26 = vld [vmem:[%s5242_s10 + $0x40] sm:$0xff] }
  0xfa   : > { %1274 = vrot.lane.b32.xlu1 %v8697_v35, %s5169_s13  ;;  %v1167_v35 = vsel %vm587_vm1, %v1159_v30, %v4397_v53  ;;  %v4446_v53 = vunpack.i.l.bf16 %v6037_v0 }
  0xfb   : > { %4664 = vrot.lane.b32.xlu0 %v8696_v15, %s5173_s20  ;;  %v1175_v28 = vsel %vm596_vm2, %v1167_v35, %v4407_v57  ;;  %v4441_v57 = vunpack.i.l.bf16 %v6017_v55 }
  0xfc   : > { %v6050_v39 = vpop.permute.xlu1 %4459  ;;  %v1183_v27 = vsel %vm641_vm7, %v1175_v28, %v4417_v50  ;;  %v4451_v50 = vunpack.i.l.bf16 %v6033_v12 }
  0xfd   : > { %v6054_v24 = vpop.permute.xlu0 %4454 }
  0xfe   : > { %8702 = vst [vmem:[#allocation3_spill] sm:$0xff] %v6054_v24  ;;  %v8555_v62 = vunpack.i.l.bf16 %v6054_v24  ;;  %4674 = vrot.lane.b32.xlu1 %v8699_v10, %s5175_s24  ;;  %v1143_v10 = vsel %vm605_vm5, %v1135_v32, %v4432_v49  ;;  %v1102_v49 = vsel %vm614_vm3, %v4427_v4, %v4446_v53  ;;  %v1152_v32 = vsel %vm578_vm0, %v4436_v6, %v4441_v57  ;;  %v8705_v53 = vld [vmem:[#allocation7_spill] sm:$0xff] }
  0xff   : > { %4669 = vrot.lane.b32.xlu0 %v8701_v36, %s5174_s21  ;;  %v8703_v36 = vld [vmem:[#allocation14_spill] sm:$0xff]  ;;  %v1160_v4 = vsel %vm623_vm4, %v1152_v32, %v4451_v50 }
 0x100   : > { %v6065_v22 = vpop.permute.xlu1 %4469  ;;  %v1191_v52 = vsel %vm605_vm5, %v1183_v27, %v8555_v62  ;;  %v5103_v27 = vld [vmem:[%s5242_s10 + $0x30] sm:$0xff]  ;;  %v6134_v32 = vld [vmem:[%s5242_s10 + $0x20] sm:$0xff] }
 0x101   : > { %v6071_v21 = vpop.permute.xlu0 %4464  ;;  %2526 = vmatprep.mubr.f32.mxu0 %v1191_v52  ;;  %v4471_v9 = vunpack.i.l.bf16 %v6065_v22  ;;  %v6109_v52 = vpack.i.bf16 %v6106_v26, %v5103_v27 }
 0x102   : > { %2527 = vmatmul.mubr.f32.gmra.mrb[18].mxu0 %v1143_v10  ;;  %4679 = vrot.lane.b32.xlu1 %v8700_v34, %s5169_s13  ;;  %v4461_v34 = vunpack.i.l.bf16 %v6050_v39  ;;  %v4466_v33 = vunpack.i.l.bf16 %v6071_v21  ;;  %v4467_v37 = vunpack.i.h.bf16 %v6071_v21 }
 0x103   : > { %1298 = vrot.lane.b32.xlu0 %v8703_v36, %s5162_s26 }
 0x104   : > { %v6078_v5 = vpop.permute.xlu1 %4479  ;;  %v1111_v10 = vsel %vm1108_vm8, %v1102_v49, %v4461_v34  ;;  %v1168_v57 = vsel %vm587_vm1, %v1160_v4, %v4466_v33  ;;  %v6142_v4 = vld [vmem:[%s5242_s10 + $0x41] sm:$0xff] }
 0x105   : > { %v6080_v25 = vpop.permute.xlu0 %4474  ;;  %v4481_v60 = vunpack.i.l.bf16 %v6078_v5 }
 0x106   : > { %1228 = vrot.lane.b32.xlu1 %v8704_v2, %s5168_s12  ;;  %v4476_v1 = vunpack.i.l.bf16 %v6080_v25  ;;  %v4477_v58 = vunpack.i.h.bf16 %v6080_v25 }
 0x107   : > { %4684 = vrot.lane.b32.xlu0 %v8696_v15, %s5161_s15 }
 0x108   : > { %v6093_v30 = vpop.permute.xlu1 %4489  ;;  %v1176_v50 = vsel %vm596_vm2, %v1168_v57, %v4476_v1 }
 0x109   : > { %v6097_v35 = vpop.permute.xlu0 %4484  ;;  %v4491_v28 = vunpack.i.l.bf16 %v6093_v30  ;;  %v4492_v21 = vunpack.i.h.bf16 %v6093_v30 }
 0x10a   : > { %1276 = vrot.lane.b32.xlu1 %v8704_v2, %s5169_s13  ;;  %v4486_v36 = vunpack.i.l.bf16 %v6097_v35  ;;  %v1119_v2 = vsel %vm587_vm1, %v1111_v10, %v4471_v9  ;;  %v4698_v10 = vpack.i.bf16 %v5103_v27, %v6134_v32  ;;  %v4487_v17 = vunpack.i.h.bf16 %v6097_v35 }
 0x10b   : > { %1252 = vrot.lane.b32.xlu0 %v8705_v53, %s5174_s21  ;;  %v1127_v49 = vsel %vm632_vm6, %v1119_v2, %v4481_v60  ;;  %v6145_v2 = vld [vmem:[%s5242_s10 + $0x31] sm:$0xff] }
 0x10c   : > { %v6118_v62 = vpop.permute.xlu1 %4499  ;;  %v1136_v9 = vsel %vm1133_vm9, %v1127_v49, %v4491_v28  ;;  %v1184_v33 = vsel %vm641_vm7, %v1176_v50, %v4486_v36  ;;  %v4693_v1 = vpack.i.bf16 %v6142_v4, %v6145_v2  ;;  %v4457_v36 = vunpack.i.h.bf16 %v6054_v24  ;;  %v6162_v50 = vld [vmem:[%s5242_s10 + $0x21] sm:$0xff] }
 0x10d   : > { %v4501_v6 = vunpack.i.l.bf16 %v6118_v62  ;;  %v6125_v34 = vpop.permute.xlu0 %4494  ;;  %v4437_v49 = vunpack.i.h.bf16 %v6022_v13  ;;  %v4472_v24 = vunpack.i.h.bf16 %v6065_v22 }
 0x10e   : > { %8706 = vst [vmem:[#allocation8_spill] sm:$0xff] %v6125_v34  ;;  %v8557_v53 = vunpack.i.l.bf16 %v6125_v34  ;;  %4689 = vrot.lane.b32.xlu1 %v6109_v52, %s5172_s17 }
 0x10f   : > { %1300 = vrot.lane.b32.xlu0 %v6121_v59, %s5162_s26  ;;  %v1144_v60 = vsel %vm605_vm5, %v1136_v9, %v4501_v6  ;;  %v4442_v6 = vunpack.i.h.bf16 %v6017_v55  ;;  %v4703_v9 = vpack.i.bf16 %v6145_v2, %v6162_v50 }
 0x110   : > { %v6149_v28 = vpop.permute.xlu1 %4509  ;;  %v1192_v27 = vsel %vm605_vm5, %v1184_v33, %v8557_v53  ;;  %v4452_v33 = vunpack.i.h.bf16 %v6033_v12 }
 0x111   : > { %v6154_v57 = vpop.permute.xlu0 %4504  ;;  %2531 = vmatprep.mubr.f32.mxu0 %v1192_v27  ;;  %v4447_v27 = vunpack.i.h.bf16 %v6037_v0  ;;  %v1153_v12 = vsel %vm578_vm0, %v4437_v49, %v4442_v6  ;;  %v4482_v0 = vunpack.i.h.bf16 %v6078_v5 }
 0x112   : > { %2532 = vmatmul.mubr.f32.gmra.mrb[20].mxu0 %v1144_v60  ;;  %4699 = vrot.lane.b32.xlu1 %v4698_v10, %s5170_s14  ;;  %v4462_v60 = vunpack.i.h.bf16 %v6050_v39  ;;  %v1161_v39 = vsel %vm623_vm4, %v1153_v12, %v4452_v33 }
 0x113   : > { %4694 = vrot.lane.b32.xlu0 %v4693_v1, %s5171_s16  ;;  %v1103_v13 = vsel %vm614_vm3, %v4457_v36, %v4447_v27  ;;  %v1169_v25 = vsel %vm587_vm1, %v1161_v39, %v4467_v37  ;;  %v4502_v27 = vunpack.i.h.bf16 %v6118_v62 }
 0x114   : > { %v6168_v53 = vpop.permute.xlu1 %4519  ;;  %v1112_v22 = vsel %vm1108_vm8, %v1103_v13, %v4462_v60  ;;  %v1177_v30 = vsel %vm596_vm2, %v1169_v25, %v4477_v58  ;;  %v6220_v60 = vld [vmem:[%s5242_s10 + $0x60] sm:$0xff]  ;;  %v6223_v13 = vld [vmem:[%s5242_s10 + $0x50] sm:$0xff]  ;;  %v4506_v25 = vunpack.i.l.bf16 %v6154_v57 }
 0x115   : > { %v6172_v55 = vpop.permute.xlu0 %4514  ;;  %v1120_v5 = vsel %vm587_vm1, %v1112_v22, %v4472_v24  ;;  %v1185_v37 = vsel %vm641_vm7, %v1177_v30, %v4487_v17  ;;  %v6211_v17 = vld [vmem:[%s5242_s10 + $0x51] sm:$0xff]  ;;  %v4733_v12 = vpack.i.bf16 %v6220_v60, %v6223_v13  ;;  %v4497_v30 = vunpack.i.h.bf16 %v6125_v34 }
 0x116   : > { %4709 = vrot.lane.b32.xlu1 %v6109_v52, %s5173_s20  ;;  %v1128_v62 = vsel %vm632_vm6, %v1120_v5, %v4482_v0  ;;  %v4748_v22 = vpack.i.bf16 %v6211_v17, %v6142_v4  ;;  %v6241_v5 = vpack.i.bf16 %v6223_v13, %v6106_v26 }
 0x117   : > { %4704 = vrot.lane.b32.xlu0 %v4703_v9, %s5168_s12  ;;  %v1137_v49 = vsel %vm1133_vm9, %v1128_v62, %v4492_v21  ;;  %v4516_v21 = vunpack.i.l.bf16 %v6172_v55 }
 0x118   : > { %v6185_v36 = vpop.permute.xlu1 %4529  ;;  %v1145_v58 = vsel %vm605_vm5, %v1137_v49, %v4502_v27 }
 0x119   : > { %v6190_v46 = vpop.permute.xlu0 %4524  ;;  %v4531_v27 = vunpack.i.l.bf16 %v6185_v36  ;;  %v1104_v31 = vsel %vm614_vm3, %v4497_v30, %v4516_v21 }
 0x11a   : > { %8707 = vst [vmem:[#allocation4_spill] sm:$0xff] %v6190_v46  ;;  %v8565_v35 = vunpack.i.l.bf16 %v6190_v46  ;;  %4719 = vrot.lane.b32.xlu1 %v4693_v1, %s5175_s24 }
 0x11b   : > { %4714 = vrot.lane.b32.xlu0 %v4698_v10, %s5174_s21  ;;  %v6214_v10 = vld [vmem:[%s5242_s10 + $0x61] sm:$0xff]  ;;  %v1113_v56 = vsel %vm1108_vm8, %v1104_v31, %v4531_v27 }
 0x11c   : > { %v6199_v6 = vpop.permute.xlu1 %4539  ;;  %v1193_v24 = vsel %vm605_vm5, %v1185_v37, %v8565_v35  ;;  %v4738_v1 = vpack.i.bf16 %v6214_v10, %v6211_v17  ;;  %v4521_v37 = vunpack.i.l.bf16 %v6168_v53 }
 0x11d   : > { %v6205_v33 = vpop.permute.xlu0 %4534  ;;  %2536 = vmatprep.mubr.f32.mxu0 %v1193_v24  ;;  %v4541_v62 = vunpack.i.l.bf16 %v6199_v6 }
 0x11e   : > { %2537 = vmatmul.mubr.f32.gmra.mrb[22].mxu0 %v1145_v58  ;;  %4729 = vrot.lane.b32.xlu1 %v6109_v52, %s5161_s15  ;;  %v4536_v49 = vunpack.i.l.bf16 %v6205_v33 }
 0x11f   : > { %4724 = vrot.lane.b32.xlu0 %v4703_v9, %s5169_s13  ;;  %v4511_v9 = vunpack.i.l.bf16 %v6149_v28  ;;  %v1121_v51 = vsel %vm587_vm1, %v1113_v56, %v4541_v62  ;;  %v6290_v62 = vld [vmem:[%s5242_s10 + $0x80] sm:$0xff] }
 0x120   : > { %v6227_v0 = vpop.permute.xlu1 %4549 }
 0x121   : > { %v6229_v39 = vpop.permute.xlu0 %4544  ;;  %v4551_v58 = vunpack.i.l.bf16 %v6227_v0  ;;  %v1154_v34 = vsel %vm578_vm0, %v4506_v25, %v4511_v9 }
 0x122   : > { %4739 = vrot.lane.b32.xlu1 %v4738_v1, %s5171_s16  ;;  %v4546_v63 = vunpack.i.l.bf16 %v6229_v39  ;;  %v1162_v38 = vsel %vm623_vm4, %v1154_v34, %v4521_v37 }
 0x123   : > { %4734 = vrot.lane.b32.xlu0 %v4733_v12, %s5172_s17  ;;  %v1170_v30 = vsel %vm587_vm1, %v1162_v38, %v4536_v49  ;;  %v1129_v31 = vsel %vm632_vm6, %v1121_v51, %v4551_v58  ;;  %v4527_v49 = vunpack.i.h.bf16 %v6190_v46  ;;  %v5120_v46 = vld [vmem:[%s5242_s10 + $0x22] sm:$0xff] }
 0x124   : > { %v6246_v24 = vpop.permute.xlu1 %4559  ;;  %v1178_v34 = vsel %vm596_vm2, %v1170_v30, %v4546_v63  ;;  %v6287_v63 = vld [vmem:[%s5242_s10 + $0x70] sm:$0xff]  ;;  %v4507_v30 = vunpack.i.h.bf16 %v6154_v57  ;;  %v6417_v54 = vpack.i.bf16 %v5121_v20, %v5120_v46 }
 0x125   : > { %v6250_v35 = vpop.permute.xlu0 %4554  ;;  %v4561_v26 = vunpack.i.l.bf16 %v6246_v24 }
 0x126   : > { %4749 = vrot.lane.b32.xlu1 %v4748_v22, %s5168_s12  ;;  %v4556_v29 = vunpack.i.l.bf16 %v6250_v35  ;;  %v4557_v42 = vunpack.i.h.bf16 %v6250_v35 }
 0x127   : > { %4744 = vrot.lane.b32.xlu0 %v6241_v5, %s5170_s14  ;;  %v1138_v56 = vsel %vm1133_vm9, %v1129_v31, %v4561_v26  ;;  %v4512_v26 = vunpack.i.h.bf16 %v6149_v28  ;;  %v4517_v31 = vunpack.i.h.bf16 %v6172_v55  ;;  %v4537_v28 = vunpack.i.h.bf16 %v6205_v33 }
 0x128   : > { %v6263_v21 = vpop.permute.xlu1 %4569  ;;  %v1186_v38 = vsel %vm641_vm7, %v1178_v34, %v4556_v29  ;;  %v6307_v34 = vld [vmem:[%s5242_s10 + $0x71] sm:$0xff]  ;;  %v4547_v55 = vunpack.i.h.bf16 %v6229_v39  ;;  %v4562_v33 = vunpack.i.h.bf16 %v6246_v24 }
 0x129   : > { %v4571_v48 = vunpack.i.l.bf16 %v6263_v21  ;;  %v6267_v7 = vpop.permute.xlu0 %4564 }
 0x12a   : > { %8708 = vst [vmem:[#allocation5_spill] sm:$0xff] %v6267_v7  ;;  %v8578_v9 = vunpack.i.l.bf16 %v6267_v7  ;;  %4759 = vrot.lane.b32.xlu1 %v6241_v5, %s5174_s21 }
 0x12b   : > { %4754 = vrot.lane.b32.xlu0 %v4733_v12, %s5173_s20  ;;  %v1146_v25 = vsel %vm605_vm5, %v1138_v56, %v4571_v48  ;;  %v4778_v48 = vpack.i.bf16 %v6290_v62, %v6287_v63 }
 0x12c   : > { %v6278_v27 = vpop.permute.xlu1 %1244  ;;  %v1194_v51 = vsel %vm605_vm5, %v1186_v38, %v8578_v9  ;;  %v4532_v38 = vunpack.i.h.bf16 %v6185_v36  ;;  %v4552_v9 = vunpack.i.h.bf16 %v6227_v0  ;;  %v4572_v0 = vunpack.i.h.bf16 %v6263_v21 }
 0x12d   : > { %v6283_v37 = vpop.permute.xlu0 %1220  ;;  %2541 = vmatprep.mubr.f32.mxu0 %v1194_v51  ;;  %v1155_v51 = vsel %vm578_vm0, %v4507_v30, %v4512_v26 }
 0x12e   : > { %2542 = vmatmul.mubr.f32.gmra.mrb[24].mxu0 %v1146_v25  ;;  %4769 = vrot.lane.b32.xlu1 %v4748_v22, %s5169_s13  ;;  %v4522_v22 = vunpack.i.h.bf16 %v6168_v53  ;;  %v1105_v25 = vsel %vm614_vm3, %v4527_v49, %v4517_v31  ;;  %v4542_v53 = vunpack.i.h.bf16 %v6199_v6  ;;  %v4793_v6 = vpack.i.bf16 %v6307_v34, %v6214_v10 }
 0x12f   : > { %4764 = vrot.lane.b32.xlu0 %v4738_v1, %s5175_s24  ;;  %v6310_v1 = vld [vmem:[%s5242_s10 + $0x81] sm:$0xff]  ;;  %v1114_v39 = vsel %vm1108_vm8, %v1105_v25, %v4532_v38  ;;  %v6352_v25 = vld [vmem:[%s5242_s10 + $0x12] sm:$0xff] }
 0x130   : > { %v6295_v29 = vpop.permute.xlu1 %4579  ;;  %v4783_v56 = vpack.i.bf16 %v6310_v1, %v6307_v34  ;;  %v1163_v36 = vsel %vm623_vm4, %v1155_v51, %v4522_v22  ;;  %v1122_v26 = vsel %vm587_vm1, %v1114_v39, %v4542_v53  ;;  %v6367_v51 = vld [vmem:[%s5242_s10 + $0x22] sm:$0xff]  ;;  %v5118_v39 = vld [vmem:[%s5242_s10 + $0x12] sm:$0xff] }
 0x131   : > { %v6298_v58 = vpop.permute.xlu0 %4574  ;;  %v1171_v49 = vsel %vm587_vm1, %v1163_v36, %v4537_v28  ;;  %v1130_v38 = vsel %vm632_vm6, %v1122_v26, %v4552_v9  ;;  %v4818_v9 = vpack.i.bf16 %v6352_v25, %v6287_v63  ;;  %v4833_v26 = vpack.i.bf16 %v6367_v51, %v6352_v25 }
 0x132   : > { %4779 = vrot.lane.b32.xlu1 %v4778_v48, %s5172_s17  ;;  %v1179_v24 = vsel %vm596_vm2, %v1171_v49, %v4547_v55  ;;  %v1139_v28 = vsel %vm1133_vm9, %v1130_v38, %v4562_v33  ;;  %v5117_v33 = vld [vmem:[%s5242_s10 + $0x2] sm:$0xff]  ;;  %v4576_v38 = vunpack.i.l.bf16 %v6298_v58 }
 0x133   : > { %4774 = vrot.lane.b32.xlu0 %v4733_v12, %s5161_s15  ;;  %v1187_v31 = vsel %vm641_vm7, %v1179_v24, %v4557_v42  ;;  %v4828_v49 = vpack.i.bf16 %v5118_v39, %v5117_v33 }
 0x134   : > { %v6316_v57 = vpop.permute.xlu1 %4584 }
 0x135   : > { %v6321_v12 = vpop.permute.xlu0 %1268  ;;  %v4586_v33 = vunpack.i.l.bf16 %v6316_v57  ;;  %v4587_v44 = vunpack.i.h.bf16 %v6316_v57 }
 0x136   : > { %4789 = vrot.lane.b32.xlu1 %v5346_v40, %s5170_s14 }
 0x137   : > { %4784 = vrot.lane.b32.xlu0 %v4783_v56, %s5171_s16 }
 0x138   : > { %v6336_v35 = vpop.permute.xlu1 %4594 }
 0x139   : > { %8709 = vst [vmem:[#allocation14_spill] sm:$0xff] %v6336_v35  ;;  %v8581_v30 = vunpack.i.l.bf16 %v6336_v35  ;;  %v6340_v22 = vpop.permute.xlu0 %4589 }
 0x13a   : > { %4799 = vrot.lane.b32.xlu1 %v4778_v48, %s5173_s20  ;;  %v1147_v48 = vsel %vm605_vm5, %v1139_v28, %v4572_v0  ;;  %v4582_v28 = vunpack.i.h.bf16 %v6295_v29 }
 0x13b   : > { %4794 = vrot.lane.b32.xlu0 %v4793_v6, %s5168_s12  ;;  %v1195_v21 = vsel %vm605_vm5, %v1187_v31, %v8581_v30 }
 0x13c   : > { %v6354_v53 = vpop.permute.xlu1 %4599  ;;  %2546 = vmatprep.mubr.f32.mxu0 %v1195_v21  ;;  %v6394_v21 = vld [vmem:[%s5242_s10 + $0x32] sm:$0xff] }
 0x13d   : > { %v6357_v42 = vpop.permute.xlu0 %1292  ;;  %2547 = vmatmul.mubr.f32.gmra.mrb[26].mxu0 %v1147_v48  ;;  %v4577_v48 = vunpack.i.h.bf16 %v6298_v58  ;;  %v4567_v58 = vunpack.i.h.bf16 %v6267_v7  ;;  %v4601_v16 = vunpack.i.l.bf16 %v6354_v53  ;;  %v4597_v7 = vunpack.i.h.bf16 %v6336_v35 }
 0x13e   : > { %4809 = vrot.lane.b32.xlu1 %v4783_v56, %s5175_s24  ;;  %v4823_v56 = vpack.i.bf16 %v6367_v51, %v6290_v62 }
 0x13f   : > { %4804 = vrot.lane.b32.xlu0 %v5346_v40, %s5174_s21  ;;  %v1157_v43 = vsel %vm578_vm0, %v4577_v48, %v4582_v28 }
 0x140   : > { %v6364_v55 = vpop.permute.xlu1 %1222 }
 0x141   : > { %v6369_v36 = vpop.permute.xlu0 %4604 }
 0x142   : > { %4819 = vrot.lane.b32.xlu1 %v4818_v9, %s5161_s15  ;;  %v4591_v9 = vunpack.i.l.bf16 %v6340_v22  ;;  %v4606_v39 = vunpack.i.l.bf16 %v6369_v36  ;;  %v4607_v57 = vunpack.i.h.bf16 %v6369_v36 }
 0x143   : > { %4814 = vrot.lane.b32.xlu0 %v4793_v6, %s5169_s13  ;;  %v4581_v6 = vunpack.i.l.bf16 %v6295_v29  ;;  %v6410_v29 = vpack.i.bf16 %v6406_v3, %v6394_v21 }
 0x144   : > { %v6377_v0 = vpop.permute.xlu1 %4614 }
 0x145   : > { %v6379_v40 = vpop.permute.xlu0 %4609 }
 0x146   : > { %4829 = vrot.lane.b32.xlu1 %v4828_v49, %s5172_s17  ;;  %v4611_v20 = vunpack.i.l.bf16 %v6379_v40 }
 0x147   : > { %4824 = vrot.lane.b32.xlu0 %v4823_v56, %s5161_s15 }
 0x148   : > { %v6385_v24 = vpop.permute.xlu1 %4619 }
 0x149   : > { %v6387_v31 = vpop.permute.xlu0 %1246  ;;  %v4621_v28 = vunpack.i.l.bf16 %v6385_v24 }
 0x14a   : > { %4839 = vrot.lane.b32.xlu1 %v8696_v15, %s5171_s16  ;;  %v4616_v15 = vunpack.i.l.bf16 %v6377_v0 }
 0x14b   : > { %4834 = vrot.lane.b32.xlu0 %v4833_v26, %s5163_s11  ;;  %v1156_v26 = vsel %vm578_vm0, %v4576_v38, %v4581_v6  ;;  %v1106_v6 = vsel %vm614_vm3, %v4567_v58, %v4586_v33  ;;  %v4617_v33 = vunpack.i.h.bf16 %v6377_v0 }
 0x14c   : > { %v6402_v56 = vpop.permute.xlu1 %1270  ;;  %v1164_v8 = vsel %vm623_vm4, %v1156_v26, %v4591_v9  ;;  %v1115_v36 = vsel %vm1108_vm8, %v1106_v6, %v4601_v16 }
 0x14d   : > { %v4625_v30 = vpop.permute.xlu0 %4624  ;;  %v1172_v46 = vsel %vm587_vm1, %v1164_v8, %v4606_v39  ;;  %v4602_v39 = vunpack.i.h.bf16 %v6354_v53  ;;  %v1123_v35 = vsel %vm587_vm1, %v1115_v36, %v4611_v20 }
 0x14e   : > { %v4626_v14 = vunpack.i.l.bf16 %v4625_v30  ;;  %4844 = vrot.lane.b32.xlu1 %v4828_v49, %s5173_s20  ;;  %v4592_v49 = vunpack.i.h.bf16 %v6340_v22  ;;  %v1180_v26 = vsel %vm596_vm2, %v1172_v46, %v4616_v15  ;;  %v4627_v58 = vunpack.i.h.bf16 %v4625_v30 }
 0x14f   : > { %554 = vrot.lane.b32.xlu0 %v6424_v61, %s5164_s23  ;;  %v4612_v46 = vunpack.i.h.bf16 %v6379_v40  ;;  %v4622_v30 = vunpack.i.h.bf16 %v6385_v24  ;;  %v1131_v41 = vsel %vm632_vm6, %v1123_v35, %v4621_v28 }
 0x150   : > { %v6432_v38 = vpop.permute.xlu1 %4634  ;;  %v1188_v8 = vsel %vm641_vm7, %v1180_v26, %v4626_v14  ;;  %v1165_v0 = vsel %vm623_vm4, %v1157_v43, %v4592_v49  ;;  %v6461_v49 = vld [vmem:[%s5242_s10 + $0x10] sm:$0xff] }
 0x151   : > { %8711 = vst [vmem:[#allocation7_spill] sm:$0xff] %v6432_v38  ;;  %v8599_v48 = vunpack.i.l.bf16 %v6432_v38  ;;  %v4630_v9 = vpop.permute.xlu0 %4629  ;;  %v8598_v14 = vunpack.i.h.bf16 %v6432_v38  ;;  %v1173_v16 = vsel %vm587_vm1, %v1165_v0, %v4607_v57  ;;  %v2336_v0 = vld [vmem:[%s8518_s1 + $0x108] sm:$0xff] }
 0x152   : > { %v4631_v22 = vunpack.i.l.bf16 %v4630_v9  ;;  %4849 = vrot.lane.b32.xlu1 %v6410_v29, %s5161_s15  ;;  %v4632_v43 = vunpack.i.h.bf16 %v4630_v9  ;;  %v1181_v20 = vsel %vm596_vm2, %v1173_v16, %v4617_v33  ;;  %v6605_v38 = vld [vmem:[%s5242_s10 + $0x62] sm:$0xff] }
 0x153   : > { %1214 = vrot.lane.b32.xlu0 %v6424_v61, %s5168_s12  ;;  %v1196_v15 = vsel %vm605_vm5, %v1188_v8, %v8599_v48  ;;  %v1107_v8 = vsel %vm614_vm3, %v4597_v7, %v4587_v44  ;;  %v1189_v44 = vsel %vm641_vm7, %v1181_v20, %v4627_v58 }
 0x154   : > { %v4640_v53 = vpop.permute.xlu1 %4639  ;;  %2551 = vmatprep.mubr.f32.mxu0 %v1196_v15  ;;  %v1140_v40 = vsel %vm1133_vm9, %v1131_v41, %v4631_v22  ;;  %v1116_v57 = vsel %vm1108_vm8, %v1107_v8, %v4602_v39  ;;  %v1197_v41 = vsel %vm605_vm5, %v1189_v44, %v8598_v14  ;;  %v2335_v15 = vld [vmem:[%s8518_s1 + $0x100] sm:$0xff]  ;;  %v2338_v8 = vld [vmem:[%s8518_s1 + $0x118] sm:$0xff] }
 0x155   : > { %v4641_v6 = vunpack.i.l.bf16 %v4640_v53  ;;  %v6456_v26 = vpop.permute.xlu0 %1294  ;;  %v4642_v24 = vunpack.i.h.bf16 %v4640_v53  ;;  %v1124_v7 = vsel %vm587_vm1, %v1116_v57, %v4612_v46  ;;  %v3884_v53 = vpack.c.bf16 %v2336_v0, %v2335_v15  ;;  %v6529_v57 = vld [vmem:[%s5242_s10 + $0x21] sm:$0xff] }
 0x156   : > { %1238 = vrot.lane.b32.xlu1 %v6461_v49, %s5174_s21  ;;  %v1132_v33 = vsel %vm632_vm6, %v1124_v7, %v4622_v30  ;;  %v8712_v30 = vmov 0.0|0.0   ;;  %8714 = vst [vmem:[#allocation40_spill] sm:$0xff] %v6529_v57  ;;  %v2343_v0 = vld [vmem:[%s8518_s1 + $0x140] sm:$0xff] }
 0x157   : > { %556 = vrot.lane.b32.xlu0 %v6162_v50, %s5164_s23  ;;  %v1148_v35 = vsel %vm605_vm5, %v1140_v40, %v4641_v6  ;;  %v1141_v22 = vsel %vm1133_vm9, %v1132_v33, %v4632_v43  ;;  %4060 = vmatpush1.bf16.msra.mxu1 %v3884_v53  ;;  %v2337_v6 = vld [vmem:[%s8518_s1 + $0x110] sm:$0xff]  ;;  %v6519_v40 = vld [vmem:[%s5242_s10 + $0x20] sm:$0xff]  ;;  %v2342_v33 = vld [vmem:[%s8518_s1 + $0x138] sm:$0xff] }
 0x158   : > { %v6473_v28 = vpop.permute.xlu1 %1248  ;;  %2552 = vmatmul.mubr.f32.gmra.mrb[28].mxu0 %v1148_v35  ;;  %v1149_v39 = vsel %vm605_vm5, %v1141_v22, %v4642_v24  ;;  %4052 = vmatprep.subr.bf16.mxu1 %v8712_v30  ;;  %8713 = vst [vmem:[#allocation39_spill] sm:$0xff] %v6519_v40  ;;  %v3887_v20 = vpack.c.bf16 %v2338_v8, %v2337_v6  ;;  %v2339_v24 = vld [vmem:[%s8518_s1 + $0x120] sm:$0xff]  ;;  %v2340_v35 = vld [vmem:[%s8518_s1 + $0x128] sm:$0xff] }
 0x159   : > { %v6478_v9 = vpop.permute.xlu0 %1224  ;;  %2556 = vmatprep.mubr.f32.mxu0 %v1197_v41  ;;  %3885 = vmatpush1.bf16.msra.mxu0 %v3884_v53  ;;  %v3890_v7 = vpack.c.bf16 %v2340_v35, %v2339_v24  ;;  %v2341_v41 = vld [vmem:[%s8518_s1 + $0x130] sm:$0xff]  ;;  %v2344_v53 = vld [vmem:[%s8518_s1 + $0x148] sm:$0xff]  ;;  %v2346_v35 = vld [vmem:[%s8518_s1 + $0x158] sm:$0xff] }
 0x15a   : > { %4854 = vrot.lane.b32.xlu1 %v6417_v54, %s5172_s17  ;;  %3886 = vmatprep.subr.bf16.mxu0 %v8712_v30  ;;  %v3896_v8 = vpack.c.bf16 %v2344_v53, %v2343_v0  ;;  %v2345_v24 = vld [vmem:[%s8518_s1 + $0x150] sm:$0xff] }
 0x15b   : > { %1262 = vrot.lane.b32.xlu0 %v6424_v61, %s5169_s13  ;;  %4061 = vmatpush1.bf16.msra.mxu1 %v3887_v20 }
 0x15c   : > { %v6487_v36 = vpop.permute.xlu1 %1296  ;;  %2557 = vmatmul.mubr.f32.gmra.mrb[30].mxu0 %v1149_v39  ;;  %4053 = vmatprep.subr.bf16.mxu1 %v8712_v30  ;;  %v3893_v39 = vpack.c.bf16 %v2342_v33, %v2341_v41 }
 0x15d   : > { %v6489_v58 = vpop.permute.xlu0 %1272  ;;  %3888 = vmatpush1.bf16.msra.mxu0 %v3887_v20 }
 0x15e   : > { %2127 = vrot.lane.b32.xlu1 %v6352_v25, %s5170_s14  ;;  %3889 = vmatprep.subr.bf16.mxu0 %v8712_v30 }
 0x15f   : > { %2103 = vrot.lane.b32.xlu0 %v6424_v61, %s5161_s15  ;;  %4062 = vmatpush1.bf16.msra.mxu1 %v3890_v7 }
 0x160   : > { %v6501_v46 = vpop.permute.xlu1 %4644  ;;  %4054 = vmatprep.subr.bf16.mxu1 %v8712_v30 }
 0x161   : > { %v6503_v16 = vpop.permute.xlu0 %1226  ;;  %3891 = vmatpush1.bf16.msra.mxu0 %v3890_v7 }
 0x162   : > { %4859 = vrot.lane.b32.xlu1 %v6410_v29, %s5163_s11  ;;  %3892 = vmatprep.subr.bf16.mxu0 %v8712_v30 }
 0x163   : > { %1286 = vrot.lane.b32.xlu0 %v6352_v25, %s5162_s26  ;;  %4063 = vmatpush1.bf16.msra.mxu1 %v3893_v39 }
 0x164   : > { %v6516_v43 = vpop.permute.xlu1 %1250  ;;  %4055 = vmatprep.subr.bf16.mxu1 %v8712_v30 }
 0x165   : > { %v6521_v29 = vpop.permute.xlu0 %4649  ;;  %3894 = vmatpush1.bf16.msra.mxu0 %v3893_v39  ;;  %v3899_v39 = vpack.c.bf16 %v2346_v35, %v2345_v24  ;;  %v8715_v35 = vunpack.i.l.bf16 %v6501_v46 }
 0x166   : > { %4864 = vrot.lane.b32.xlu1 %v6109_v52, %s5171_s16  ;;  %3895 = vmatprep.subr.bf16.mxu0 %v8712_v30  ;;  %v4652_v24 = vunpack.i.h.bf16 %v6521_v29 }
 0x167   : > { %2151 = vrot.lane.b32.xlu0 %v6519_v40, %s5162_s26  ;;  %4064 = vmatpush1.bf16.msra.mxu1 %v3896_v8 }
 0x168   : > { %v6538_v44 = vpop.permute.xlu1 %4659  ;;  %4056 = vmatprep.subr.bf16.mxu1 %v8712_v30 }
 0x169   : > { %v6540_v52 = vpop.permute.xlu0 %4654  ;;  %v4661_v7 = vunpack.i.l.bf16 %v6538_v44  ;;  %3897 = vmatpush1.bf16.msra.mxu0 %v3896_v8  ;;  %v4662_v18 = vunpack.i.h.bf16 %v6538_v44 }
 0x16a   : > { %2175 = vrot.lane.b32.xlu1 %v6529_v57, %s5163_s11  ;;  %v4656_v41 = vunpack.i.l.bf16 %v6540_v52  ;;  %3898 = vmatprep.subr.bf16.mxu0 %v8712_v30  ;;  %v4657_v11 = vunpack.i.h.bf16 %v6540_v52 }
 0x16b   : > { %1216 = vrot.lane.b32.xlu0 %v6162_v50, %s5168_s12  ;;  %4065 = vmatpush1.bf16.msra.mxu1 %v3899_v39 }
 0x16c   : > { %v6554_v22 = vpop.permute.xlu1 %1274  ;;  %4057 = vmatprep.subr.bf16.mxu1 %v8712_v30 }
 0x16d   : > { %v6556_v15 = vpop.permute.xlu0 %4664  ;;  %3900 = vmatpush1.bf16.msra.mxu0 %v3899_v39  ;;  %v6658_v39 = vld [vmem:[%s5242_s10 + $0x30] sm:$0xff] }
 0x16e   : > { %1240 = vrot.lane.b32.xlu1 %v6134_v32, %s5174_s21  ;;  %v6602_v32 = vld [vmem:[%s5242_s10 + $0x52] sm:$0xff]  ;;  %v4667_v44 = vunpack.i.h.bf16 %v6556_v15  ;;  %3901 = vmatprep.subr.bf16.mxu0 %v8712_v30 }
 0x16f   : > { %558 = vrot.lane.b32.xlu0 %v6145_v2, %s5164_s23  ;;  %v4651_v2 = vunpack.i.l.bf16 %v6521_v29  ;;  %v6609_v8 = vpack.i.bf16 %v6605_v38, %v6602_v32  ;;  %v2348_v29 = vld [vmem:[%s8518_s1 + $0x168] sm:$0xff] }
 0x170   : > { %v6570_v6 = vpop.permute.xlu1 %4674  ;;  %v3902_v57 = vpack.c.bf16 %v2348_v29, %v2347_v47 }
 0x171   : > { %v6572_v20 = vpop.permute.xlu0 %4669  ;;  %v1783_v14 = vsel %vm614_vm3, %v8715_v35, %v4651_v2  ;;  %v4676_v45 = vunpack.i.l.bf16 %v6570_v6  ;;  %v1751_v2 = vsel %vm578_vm0, %v4656_v41, %v4661_v7 }
 0x172   : > { %2207 = vrot.lane.b32.xlu1 %v6367_v51, %s5174_s21  ;;  %v4671_v0 = vunpack.i.l.bf16 %v6572_v20  ;;  %v4672_v19 = vunpack.i.h.bf16 %v6572_v20  ;;  %4066 = vmatpush1.bf16.msra.mxu1 %v3902_v57 }
 0x173   : > { %4869 = vrot.lane.b32.xlu0 %v6417_v54, %s5173_s20  ;;  %v4666_v54 = vunpack.i.l.bf16 %v6556_v15  ;;  %4058 = vmatprep.subr.bf16.mxu1 %v8712_v30 }
 0x174   : > { %v6590_v33 = vpop.permute.xlu1 %4679  ;;  %v1759_v61 = vsel %vm587_vm1, %v1751_v2, %v4671_v0  ;;  %3903 = vmatpush1.bf16.msra.mxu0 %v3902_v57  ;;  %v6678_v2 = vld [vmem:[%s5242_s10 + $0x31] sm:$0xff] }
 0x175   : > { %v6594_v53 = vpop.permute.xlu0 %1298  ;;  %v4681_v48 = vunpack.i.l.bf16 %v6590_v33  ;;  %v1791_v23 = vsel %vm623_vm4, %v1783_v14, %v4666_v54  ;;  %v4682_v52 = vunpack.i.h.bf16 %v6590_v33  ;;  %v8717_v54 = vunpack.i.l.bf16 %v6501_v46  ;;  %3904 = vmatprep.subr.bf16.mxu0 %v8712_v30 }
 0x176   : > { %2105 = vrot.lane.b32.xlu1 %v6162_v50, %s5161_s15  ;;  %v1799_v14 = vsel %vm632_vm6, %v1791_v23, %v4676_v45 }
 0x177   : > { %1264 = vrot.lane.b32.xlu0 %v6162_v50, %s5169_s13  ;;  %v4677_v50 = vunpack.i.h.bf16 %v6570_v6  ;;  %v1767_v47 = vsel %vm596_vm2, %v1759_v61, %v4681_v48  ;;  %v8716_v6 = vunpack.i.h.bf16 %v6501_v46  ;;  %v2350_v61 = vld [vmem:[%s8518_s1 + $0x178] sm:$0xff]  ;;  %v1752_v48 = vsel %vm578_vm0, %v4657_v11, %v4662_v18 }
 0x178   : > { %v6629_v35 = vpop.permute.xlu1 %1228  ;;  %v1775_v0 = vsel %vm605_vm5, %v1767_v47, %v8717_v54  ;;  %v1760_v11 = vsel %vm587_vm1, %v1752_v48, %v4672_v19  ;;  %v4878_v46 = vpack.i.bf16 %v6223_v13, %v6406_v3  ;;  %v4883_v47 = vpack.i.bf16 %v6602_v32, %v6406_v3 }
 0x179   : > { %v4685_v40 = vpop.permute.xlu0 %4684  ;;  %v1784_v20 = vsel %vm614_vm3, %v8716_v6, %v4652_v24  ;;  %v1768_v57 = vsel %vm596_vm2, %v1760_v11, %v4682_v52  ;;  %v8718_v30 = vmov %v8716_v6  ;;  %v2351_v52 = vld [vmem:[%s8518_s1 + $0x180] sm:$0xff] }
 0x17a   : > { %v4687_v7 = vunpack.i.h.bf16 %v4685_v40  ;;  %v4686_v15 = vunpack.i.l.bf16 %v4685_v40  ;;  %1288 = vrot.lane.b32.xlu1 %v6367_v51, %s5162_s26  ;;  %v2349_v40 = vld [vmem:[%s8518_s1 + $0x170] sm:$0xff]  ;;  %v1792_v45 = vsel %vm623_vm4, %v1784_v20, %v4667_v44  ;;  %v1776_v44 = vsel %vm605_vm5, %v1768_v57, %v8718_v30 }
 0x17b   : > { %2129 = vrot.lane.b32.xlu0 %v6367_v51, %s5170_s14  ;;  %v3905_v23 = vpack.c.bf16 %v2350_v61, %v2349_v40  ;;  %v1800_v18 = vsel %vm632_vm6, %v1792_v45, %v4677_v50  ;;  %v8615_v50 = vmov 0.0  }
 0x17c   : > { %v6654_v41 = vpop.permute.xlu1 %1276  ;;  %v1807_v33 = vsel %vm641_vm7, %v1799_v14, %v4686_v15  ;;  %v1808_v24 = vsel %vm641_vm7, %v1800_v18, %v4687_v7  ;;  %2971 = vst.msk [vmem:[#allocation2 + $0x40] sm:$0xff] %vm2867_vm10, %v8615_v50 }
 0x17d   : > { %v6661_v51 = vpop.permute.xlu0 %1252  ;;  %2561 = vmatprep.mubr.f32.mxu0 %v1807_v33  ;;  %4067 = vmatpush1.bf16.msra.mxu1 %v3905_v23 }
 0x17e   : > { %2562 = vmatmul.mubr.f32.gmra.mrb[32].mxu0 %v1775_v0  ;;  %4874 = vrot.lane.b32.xlu1 %v6609_v8, %s5161_s15 }
 0x17f   : > { %2153 = vrot.lane.b32.xlu0 %v6658_v39, %s5162_s26  ;;  %2566 = vmatprep.mubr.f32.mxu0 %v1808_v24 }
 0x180   : > { %v6675_v29 = vpop.permute.xlu1 %4689  ;;  %3906 = vmatpush1.bf16.msra.mxu0 %v3905_v23  ;;  %4059 = vmatprep.subr.mxu1 %v8615_v50  ;;  %v4903_v23 = vpack.i.bf16 %v6220_v60, %v6602_v32 }
 0x181   : > { %v6680_v19 = vpop.permute.xlu0 %1300  ;;  %2674 = vmatprep.subr.mxu0 %v8615_v50  ;;  %4068 = vmatpush1.msra.mxu1 %v2351_v52  ;;  %v4691_v14 = vunpack.i.l.bf16 %v6675_v29 }
 0x182   : > { %2567 = vmatmul.mubr.f32.gmra.mrb[34].mxu0 %v1776_v44  ;;  %560 = vrot.lane.b32.xlu1 %v6142_v4, %s5164_s23  ;;  %v1313_v4 = vsel %vm578_vm0, %v6283_v37, %v6406_v3 }
 0x183   : > { %2177 = vrot.lane.b32.xlu0 %v6678_v2, %s5163_s11  ;;  %v1321_v20 = vsel %vm623_vm4, %v1313_v4, %v6278_v27 }
 0x184   : > { %v4700_v7 = vpop.permute.xlu1 %4699  ;;  %2675 = vmatpush1.msra.mxu0 %v2351_v52 }
 0x185   : > { %v4695_v15 = vpop.permute.xlu0 %4694  ;;  %v4701_v37 = vunpack.i.l.bf16 %v4700_v7 }
 0x186   : > { %4879 = vrot.lane.b32.xlu1 %v4878_v46, %s5171_s16  ;;  %v4696_v40 = vunpack.i.l.bf16 %v4695_v15  ;;  %v4697_v54 = vunpack.i.h.bf16 %v4695_v15 }
 0x187   : > { %2209 = vrot.lane.b32.xlu0 %v6394_v21, %s5174_s21  ;;  %v1329_v21 = vsel %vm587_vm1, %v1321_v20, %v6321_v12  ;;  %v4692_v12 = vunpack.i.h.bf16 %v6675_v29 }
 0x188   : > { %v4710_v13 = vpop.permute.xlu1 %4709  ;;  %v1337_v3 = vsel %vm596_vm2, %v1329_v21, %v6357_v42  ;;  %v1785_v0 = vsel %vm614_vm3, %v4691_v14, %v4696_v40  ;;  %v4702_v42 = vunpack.i.h.bf16 %v4700_v7 }
 0x189   : > { %v4705_v6 = vpop.permute.xlu0 %4704  ;;  %v4711_v61 = vunpack.i.l.bf16 %v4710_v13  ;;  %v4712_v11 = vunpack.i.h.bf16 %v4710_v13  ;;  %v1786_v7 = vsel %vm614_vm3, %v4692_v12, %v4697_v54 }
 0x18a   : > { %4889 = vrot.lane.b32.xlu1 %v6241_v5, %s5167_s9  ;;  %v4706_v33 = vunpack.i.l.bf16 %v4705_v6  ;;  %v1314_v5 = vsel %vm578_vm0, %v6364_v55, %v6602_v32  ;;  %v4707_v24 = vunpack.i.h.bf16 %v4705_v6 }
 0x18b   : > { %4884 = vrot.lane.b32.xlu0 %v4883_v47, %s5172_s17  ;;  %v1793_v55 = vsel %vm623_vm4, %v1785_v0, %v4711_v61 }
 0x18c   : > { %v4720_v48 = vpop.permute.xlu1 %4719  ;;  %v1753_v30 = vsel %vm578_vm0, %v4701_v37, %v4706_v33  ;;  %v1754_v61 = vsel %vm578_vm0, %v4702_v42, %v4707_v24 }
 0x18d   : > { %v4715_v45 = vpop.permute.xlu0 %4714  ;;  %v4721_v27 = vunpack.i.l.bf16 %v4720_v48  ;;  %v4722_v44 = vunpack.i.h.bf16 %v4720_v48  ;;  %v1794_v48 = vsel %vm623_vm4, %v1786_v7, %v4712_v11 }
 0x18e   : > { %1356 = vrot.lane.b32.xlu1 %v1337_v3, %s5175_s24  ;;  %v4716_v18 = vunpack.i.l.bf16 %v4715_v45  ;;  %v4717_v52 = vunpack.i.h.bf16 %v4715_v45 }
 0x18f   : > { %4894 = vrot.lane.b32.xlu0 %v6609_v8, %s5163_s11  ;;  %v1801_v40 = vsel %vm632_vm6, %v1793_v55, %v4721_v27  ;;  %v1322_v8 = vsel %vm623_vm4, %v1314_v5, %v6387_v31  ;;  %v1802_v33 = vsel %vm632_vm6, %v1794_v48, %v4722_v44  ;;  %v6756_v27 = vld [vmem:[%s5242_s10 + $0x72] sm:$0xff] }
 0x190   : > { %v4730_v57 = vpop.permute.xlu1 %4729  ;;  %v1761_v6 = vsel %vm587_vm1, %v1753_v30, %v4716_v18  ;;  %v1330_v21 = vsel %vm587_vm1, %v1322_v8, %v6402_v56  ;;  %v1762_v56 = vsel %vm587_vm1, %v1754_v61, %v4717_v52  ;;  %v4918_v18 = vpack.i.bf16 %v6756_v27, %v6605_v38 }
 0x191   : > { %v4731_v46 = vunpack.i.l.bf16 %v4730_v57  ;;  %v4725_v4 = vpop.permute.xlu0 %4724  ;;  %v4732_v29 = vunpack.i.h.bf16 %v4730_v57 }
 0x192   : > { %v4727_v15 = vunpack.i.h.bf16 %v4725_v4  ;;  %v4726_v20 = vunpack.i.l.bf16 %v4725_v4  ;;  %4899 = vrot.lane.b32.xlu1 %v4883_v47, %s5173_s20  ;;  %v4938_v4 = vpack.i.bf16 %v6290_v62, %v6756_v27 }
 0x193   : > { %562 = vrot.lane.b32.xlu0 %v6211_v17, %s5164_s23  ;;  %v1809_v13 = vsel %vm641_vm7, %v1801_v40, %v4731_v46  ;;  %v1338_v17 = vsel %vm596_vm2, %v1330_v21, %v6456_v26  ;;  %v1810_v45 = vsel %vm641_vm7, %v1802_v33, %v4732_v29  ;;  %v4908_v26 = vpack.i.bf16 %v6121_v59, %v6756_v27 }
 0x194   : > { %v6740_v47 = vpop.permute.xlu1 %4739  ;;  %2571 = vmatprep.mubr.f32.mxu0 %v1809_v13  ;;  %v1769_v31 = vsel %vm596_vm2, %v1761_v6, %v4726_v20  ;;  %v1770_v5 = vsel %vm596_vm2, %v1762_v56, %v4727_v15  ;;  %v4913_v59 = vpack.i.bf16 %v6287_v63, %v6605_v38 }
 0x195   : > { %v6746_v3 = vpop.permute.xlu0 %4734  ;;  %v1777_v37 = vsel %vm605_vm5, %v1769_v31, %v4691_v14  ;;  %v1778_v0 = vsel %vm605_vm5, %v1770_v5, %v4692_v12  ;;  %v4741_v24 = vunpack.i.l.bf16 %v6740_v47  ;;  %v4742_v29 = vunpack.i.h.bf16 %v6740_v47 }
 0x196   : > { %2572 = vmatmul.mubr.f32.gmra.mrb[36].mxu0 %v1777_v37  ;;  %1358 = vrot.lane.b32.xlu1 %v1338_v17, %s5175_s24  ;;  %v4736_v57 = vunpack.i.l.bf16 %v6746_v3  ;;  %v4737_v15 = vunpack.i.h.bf16 %v6746_v3 }
 0x197   : > { %4904 = vrot.lane.b32.xlu0 %v4903_v23, %s5171_s16  ;;  %2576 = vmatprep.mubr.f32.mxu0 %v1810_v45  ;;  %v1315_v23 = vsel %vm578_vm0, %v6478_v9, %v6605_v38  ;;  %v4923_v9 = vpack.i.bf16 %v6287_v63, %v6220_v60 }
 0x198   : > { %v4750_v14 = vpop.permute.xlu1 %4749  ;;  %v1323_v12 = vsel %vm623_vm4, %v1315_v23, %v6473_v28  ;;  %v1787_v60 = vsel %vm614_vm3, %v4736_v57, %v4741_v24  ;;  %v1788_v37 = vsel %vm614_vm3, %v4737_v15, %v4742_v29 }
 0x199   : > { %v4745_v54 = vpop.permute.xlu0 %4744  ;;  %v4751_v38 = vunpack.i.l.bf16 %v4750_v14  ;;  %v4752_v20 = vunpack.i.h.bf16 %v4750_v14 }
 0x19a   : > { %2577 = vmatmul.mubr.f32.gmra.mrb[38].mxu0 %v1778_v0  ;;  %564 = vrot.lane.b32.xlu1 %v6214_v10, %s5164_s23  ;;  %v1331_v10 = vsel %vm587_vm1, %v1323_v12, %v6489_v58  ;;  %v4746_v55 = vunpack.i.l.bf16 %v4745_v54  ;;  %v4747_v40 = vunpack.i.h.bf16 %v4745_v54  ;;  %v6821_v12 = vld [vmem:[%s5242_s10 + $0x82] sm:$0xff] }
 0x19b   : > { %4909 = vrot.lane.b32.xlu0 %v4908_v26, %s5161_s15  ;;  %v1339_v58 = vsel %vm596_vm2, %v1331_v10, %v6487_v36  ;;  %8719 = vst [vmem:[#allocation41_spill] sm:$0xff] %v6821_v12  ;;  %v1317_v10 = vsel %vm578_vm0, %v6629_v35, %v6821_v12 }
 0x19c   : > { %v4760_v42 = vpop.permute.xlu1 %4759  ;;  %v1755_v8 = vsel %vm578_vm0, %v4746_v55, %v4751_v38  ;;  %v1756_v56 = vsel %vm578_vm0, %v4747_v40, %v4752_v20  ;;  %v1325_v35 = vsel %vm623_vm4, %v1317_v10, %v6661_v51 }
 0x19d   : > { %v4755_v11 = vpop.permute.xlu0 %4754  ;;  %v4761_v44 = vunpack.i.l.bf16 %v4760_v42  ;;  %v4762_v36 = vunpack.i.h.bf16 %v4760_v42  ;;  %v1316_v42 = vsel %vm578_vm0, %v6503_v16, %v6756_v27  ;;  %v1333_v51 = vsel %vm587_vm1, %v1325_v35, %v6654_v41  ;;  %v8724_v35 = vld [vmem:[#allocation21_spill] sm:$0xff] }
 0x19e   : > { %4919 = vrot.lane.b32.xlu1 %v4918_v18, %s5172_s17  ;;  %v4756_v52 = vunpack.i.l.bf16 %v4755_v11  ;;  %v4757_v7 = vunpack.i.h.bf16 %v4755_v11  ;;  %v1324_v11 = vsel %vm623_vm4, %v1316_v42, %v6516_v43  ;;  %v4948_v43 = vpack.i.bf16 %v6461_v49, %v6290_v62 }
 0x19f   : > { %4914 = vrot.lane.b32.xlu0 %v4913_v59, %s5171_s16  ;;  %v1763_v47 = vsel %vm587_vm1, %v1755_v8, %v4761_v44  ;;  %v1764_v0 = vsel %vm587_vm1, %v1756_v56, %v4762_v36 }
 0x1a0   : > { %v4770_v30 = vpop.permute.xlu1 %4769  ;;  %v1795_v61 = vsel %vm623_vm4, %v1787_v60, %v4756_v52  ;;  %v8720_v52 = vld [vmem:[#allocation9_spill] sm:$0xff] }
 0x1a1   : > { %v4765_v28 = vpop.permute.xlu0 %4764  ;;  %v4771_v46 = vunpack.i.l.bf16 %v4770_v30  ;;  %v4772_v31 = vunpack.i.h.bf16 %v4770_v30 }
 0x1a2   : > { %4929 = vrot.lane.b32.xlu1 %v4908_v26, %s5163_s11  ;;  %v4766_v63 = vunpack.i.l.bf16 %v4765_v28  ;;  %v4767_v6 = vunpack.i.h.bf16 %v4765_v28  ;;  %v1796_v26 = vsel %vm623_vm4, %v1788_v37, %v4757_v7 }
 0x1a3   : > { %4924 = vrot.lane.b32.xlu0 %v4923_v9, %s5167_s9  ;;  %v1771_v3 = vsel %vm596_vm2, %v1763_v47, %v4771_v46  ;;  %v1772_v59 = vsel %vm596_vm2, %v1764_v0, %v4772_v31 }
 0x1a4   : > { %v6791_v13 = vpop.permute.xlu1 %4779  ;;  %v1803_v33 = vsel %vm632_vm6, %v1795_v61, %v4766_v63  ;;  %v1804_v54 = vsel %vm632_vm6, %v1796_v26, %v4767_v6  ;;  %v1780_v16 = vsel %vm605_vm5, %v1772_v59, %v4737_v15 }
 0x1a5   : > { %v4775_v21 = vpop.permute.xlu0 %4774  ;;  %v4781_v38 = vunpack.i.l.bf16 %v6791_v13 }
 0x1a6   : > { %v4777_v48 = vunpack.i.h.bf16 %v4775_v21  ;;  %v4776_v17 = vunpack.i.l.bf16 %v4775_v21  ;;  %566 = vrot.lane.b32.xlu1 %v6307_v34, %s5164_s23  ;;  %v1779_v34 = vsel %vm605_vm5, %v1771_v3, %v4736_v57  ;;  %v1332_v57 = vsel %vm587_vm1, %v1324_v11, %v6554_v22  ;;  %v6870_v3 = vld [vmem:[%s5242_s10 + $0x20] sm:$0xff] }
 0x1a7   : > { %1360 = vrot.lane.b32.xlu0 %v1339_v58, %s5175_s24  ;;  %v4943_v22 = vpack.i.bf16 %v6352_v25, %v6821_v12  ;;  %v1341_v58 = vsel %vm596_vm2, %v1333_v51, %v6680_v19  ;;  %v6874_v37 = vpack.i.bf16 %v6870_v3, %v6461_v49  ;;  %v8766_v12 = vld [vmem:[#allocation36_spill] sm:$0xff] }
 0x1a8   : > { %v6802_v45 = vpop.permute.xlu1 %4789  ;;  %v1811_v5 = vsel %vm641_vm7, %v1803_v33, %v4776_v17  ;;  %v1812_v23 = vsel %vm641_vm7, %v1804_v54, %v4777_v48  ;;  %v8721_v33 = vld [vmem:[#allocation27_spill] sm:$0xff] }
 0x1a9   : > { %v6806_v14 = vpop.permute.xlu0 %4784  ;;  %2581 = vmatprep.mubr.f32.mxu0 %v1811_v5  ;;  %v4791_v28 = vunpack.i.l.bf16 %v6802_v45  ;;  %v4792_v29 = vunpack.i.h.bf16 %v6802_v45  ;;  %v8625_v56 = vunpack.i.l.bf16 %v8721_v33 }
 0x1aa   : > { %2582 = vmatmul.mubr.f32.gmra.mrb[40].mxu0 %v1779_v34  ;;  %4939 = vrot.lane.b32.xlu1 %v4938_v4, %s5171_s16  ;;  %v4786_v55 = vunpack.i.l.bf16 %v6806_v14  ;;  %v4782_v4 = vunpack.i.h.bf16 %v6791_v13  ;;  %v4787_v60 = vunpack.i.h.bf16 %v6806_v14 }
 0x1ab   : > { %4934 = vrot.lane.b32.xlu0 %v4918_v18, %s5173_s20  ;;  %2586 = vmatprep.mubr.f32.mxu0 %v1812_v23  ;;  %v1340_v18 = vsel %vm596_vm2, %v1332_v57, %v6594_v53 }
 0x1ac   : > { %v6826_v24 = vpop.permute.xlu1 %4799  ;;  %v1789_v41 = vsel %vm614_vm3, %v4781_v38, %v4786_v55  ;;  %v1790_v45 = vsel %vm614_vm3, %v4782_v4, %v4787_v60 }
 0x1ad   : > { %v4795_v9 = vpop.permute.xlu0 %4794  ;;  %v4801_v30 = vunpack.i.l.bf16 %v6826_v24  ;;  %v4802_v63 = vunpack.i.h.bf16 %v6826_v24  ;;  %v8722_v24 = vld [vmem:[#allocation39_spill] sm:$0xff] }
 0x1ae   : > { %2587 = vmatmul.mubr.f32.gmra.mrb[42].mxu0 %v1780_v16  ;;  %568 = vrot.lane.b32.xlu1 %v6310_v1, %s5164_s23  ;;  %v6846_v1 = vld [vmem:[%s5242_s10 + $0x21] sm:$0xff]  ;;  %v4796_v46 = vunpack.i.l.bf16 %v4795_v9  ;;  %v4797_v20 = vunpack.i.h.bf16 %v4795_v9  ;;  %v4968_v57 = vpack.i.bf16 %v6658_v39, %v8722_v24  ;;  %v8723_v16 = vld [vmem:[#allocation33_spill] sm:$0xff] }
 0x1af   : > { %1362 = vrot.lane.b32.xlu0 %v1340_v18, %s5175_s24  ;;  %v4953_v62 = vpack.i.bf16 %v6846_v1, %v8720_v52  ;;  %v1797_v13 = vsel %vm623_vm4, %v1789_v41, %v4801_v30  ;;  %v1798_v11 = vsel %vm623_vm4, %v1790_v45, %v4802_v63  ;;  %v8624_v18 = vunpack.i.l.bf16 %v8723_v16  ;;  %v5133_v45 = vld [vmem:[%s5242_s10 + $0x40] sm:$0xff] }
 0x1b0   : > { %v4810_v53 = vpop.permute.xlu1 %4809  ;;  %v1757_v6 = vsel %vm578_vm0, %v4791_v28, %v4796_v46  ;;  %v1758_v5 = vsel %vm578_vm0, %v4792_v29, %v4797_v20  ;;  %v8725_v28 = vld [vmem:[#allocation40_spill] sm:$0xff]  ;;  %v6909_v46 = vld [vmem:[%s5242_s10 + $0x41] sm:$0xff] }
 0x1b1   : > { %v4805_v44 = vpop.permute.xlu0 %4804  ;;  %v4811_v25 = vunpack.i.l.bf16 %v4810_v53  ;;  %v4812_v31 = vunpack.i.h.bf16 %v4810_v53  ;;  %8726 = vst [vmem:[#allocation9_spill] sm:$0xff] %v6909_v46  ;;  %v8727_v29 = vld [vmem:[#allocation11_spill] sm:$0xff] }
 0x1b2   : > { %4949 = vrot.lane.b32.xlu1 %v4948_v43, %s5167_s9  ;;  %v4806_v15 = vunpack.i.l.bf16 %v4805_v44  ;;  %v4807_v8 = vunpack.i.h.bf16 %v4805_v44 }
 0x1b3   : > { %4944 = vrot.lane.b32.xlu0 %v4943_v22, %s5171_s16  ;;  %v1805_v47 = vsel %vm632_vm6, %v1797_v13, %v4811_v25  ;;  %v1806_v9 = vsel %vm632_vm6, %v1798_v11, %v4812_v31  ;;  %v6912_v25 = vld [vmem:[%s5242_s10 + $0x31] sm:$0xff] }
 0x1b4   : > { %v4820_v40 = vpop.permute.xlu1 %4819  ;;  %v1765_v17 = vsel %vm587_vm1, %v1757_v6, %v4806_v15  ;;  %v1766_v49 = vsel %vm587_vm1, %v1758_v5, %v4807_v8  ;;  %v8728_v15 = vunpack.i.l.bf16 %v8727_v29  ;;  %v8729_v8 = vld [vmem:[#allocation22_spill] sm:$0xff] }
 0x1b5   : > { %v4822_v7 = vunpack.i.h.bf16 %v4820_v40  ;;  %v4821_v36 = vunpack.i.l.bf16 %v4820_v40  ;;  %v4815_v19 = vpop.permute.xlu0 %4814  ;;  %v8621_v40 = vunpack.i.h.bf16 %v8723_v16 }
 0x1b6   : > { %v4817_v21 = vunpack.i.h.bf16 %v4815_v19  ;;  %v4816_v61 = vunpack.i.l.bf16 %v4815_v19  ;;  %4954 = vrot.lane.b32.xlu1 %v4953_v62, %s5170_s14 }
 0x1b7   : > { %1364 = vrot.lane.b32.xlu0 %v1341_v58, %s5175_s24  ;;  %v1813_v48 = vsel %vm641_vm7, %v1805_v47, %v4821_v36  ;;  %v2039_v34 = vsel %vm578_vm0, %v8720_v52, %v4822_v7  ;;  %v4973_v58 = vpack.i.bf16 %v6909_v46, %v6912_v25 }
 0x1b8   : > { %v4830_v26 = vpop.permute.xlu1 %4829  ;;  %2591 = vmatprep.mubr.f32.mxu0 %v1813_v48  ;;  %v1773_v14 = vsel %vm596_vm2, %v1765_v17, %v4816_v61  ;;  %v1774_v10 = vsel %vm596_vm2, %v1766_v49, %v4817_v21  ;;  %v2047_v43 = vsel %vm623_vm4, %v2039_v34, %v8625_v56  ;;  %v8730_v61 = vld [vmem:[#allocation16_spill] sm:$0xff] }
 0x1b9   : > { %v4831_v54 = vunpack.i.l.bf16 %v4830_v26  ;;  %v4825_v0 = vpop.permute.xlu0 %4824  ;;  %v1781_v23 = vsel %vm605_vm5, %v1773_v14, %v4781_v38  ;;  %v4832_v55 = vunpack.i.h.bf16 %v4830_v26  ;;  %v1782_v52 = vsel %vm605_vm5, %v1774_v10, %v4782_v4  ;;  %v6945_v17 = vld [vmem:[%s5242_s10 + $0x30] sm:$0xff] }
 0x1ba   : > { %v4827_v59 = vunpack.i.h.bf16 %v4825_v0  ;;  %v4826_v42 = vunpack.i.l.bf16 %v4825_v0  ;;  %2592 = vmatmul.mubr.f32.gmra.mrb[44].mxu0 %v1781_v23  ;;  %4964 = vrot.lane.b32.xlu1 %v4953_v62, %s5174_s21  ;;  %v8622_v62 = vunpack.i.h.bf16 %v8721_v33  ;;  %v2055_v4 = vsel %vm587_vm1, %v2047_v43, %v8624_v18  ;;  %8732 = vst [vmem:[#allocation27_spill] sm:$0xff] %v6945_v17  ;;  %v6960_v23 = vld [vmem:[%s5242_s10 + $0x40] sm:$0xff]  ;;  %v6963_v49 = vld [vmem:[%s5242_s10 + $0x50] sm:$0xff] }
 0x1bb   : > { %4959 = vrot.lane.b32.xlu0 %v6874_v37, %s5163_s11  ;;  %v1999_v22 = vsel %vm1108_vm8, %v8724_v35, %v4831_v54  ;;  %v2000_v7 = vsel %vm1108_vm8, %v8729_v8, %v4832_v55  ;;  %v8731_v47 = vunpack.i.l.bf16 %v8730_v61  ;;  %v6949_v5 = vpack.i.bf16 %v5133_v45, %v6945_v17  ;;  %v8734_v54 = vld [vmem:[#allocation20_spill] sm:$0xff]  ;;  %v7022_v8 = vld [vmem:[%s5242_s10 + $0x60] sm:$0xff] }
 0x1bc   : > { %v6898_v38 = vpop.permute.xlu1 %4839  ;;  %v1814_v39 = vsel %vm641_vm7, %v1806_v9, %v4826_v42  ;;  %v2040_v53 = vsel %vm578_vm0, %v6846_v1, %v4827_v59  ;;  %v2007_v60 = vsel %vm587_vm1, %v1999_v22, %v8728_v15  ;;  %v8735_v0 = vunpack.i.l.bf16 %v8734_v54  ;;  %v7010_v15 = vld [vmem:[%s5242_s10 + $0x51] sm:$0xff] }
 0x1bd   : > { %v8623_v30 = vunpack.i.l.bf16 %v6898_v38  ;;  %v4835_v44 = vpop.permute.xlu0 %4834  ;;  %2596 = vmatprep.mubr.f32.mxu0 %v1814_v39  ;;  %v2048_v41 = vsel %vm623_vm4, %v2040_v53, %v8622_v62  ;;  %v2015_v31 = vsel %vm632_vm6, %v2007_v60, %v8731_v47  ;;  %8733 = vst [vmem:[#allocation39_spill] sm:$0xff] %v6949_v5  ;;  %v8736_v59 = vunpack.i.h.bf16 %v8727_v29 }
 0x1be   : > { %v4836_v51 = vunpack.i.l.bf16 %v4835_v44  ;;  %2597 = vmatmul.mubr.f32.gmra.mrb[46].mxu0 %v1782_v52  ;;  %1727 = vrot.lane.b32.xlu1 %v8725_v28, %s5172_s17  ;;  %v4837_v6 = vunpack.i.h.bf16 %v4835_v44  ;;  %v2056_v26 = vsel %vm587_vm1, %v2048_v41, %v8621_v40  ;;  %v8620_v11 = vunpack.i.h.bf16 %v6898_v38  ;;  %v6996_v52 = vld [vmem:[%s5242_s10 + $0x51] sm:$0xff]  ;;  %v5136_v41 = vld [vmem:[%s5242_s10 + $0x60] sm:$0xff] }
 0x1bf   : > { %4969 = vrot.lane.b32.xlu0 %v4968_v57, %s5165_s8  ;;  %v2008_v42 = vsel %vm587_vm1, %v2000_v7, %v8736_v59  ;;  %v6976_v57 = vld [vmem:[%s5242_s10 + $0x41] sm:$0xff]  ;;  %v4988_v9 = vpack.i.bf16 %v6963_v49, %v6960_v23  ;;  %v8737_v43 = vunpack.i.h.bf16 %v8730_v61  ;;  %v7025_v7 = vld [vmem:[%s5242_s10 + $0x70] sm:$0xff] }
 0x1c0   : > { %v4845_v63 = vpop.permute.xlu1 %4844  ;;  %v2063_v20 = vsel %vm596_vm2, %v2055_v4, %v4836_v51  ;;  %v2064_v24 = vsel %vm596_vm2, %v2056_v26, %v4837_v6  ;;  %v6999_v51 = vld [vmem:[%s5242_s10 + $0x61] sm:$0xff]  ;;  %v5008_v6 = vpack.i.bf16 %v7025_v7, %v7022_v8 }
 0x1c1   : > { %v4846_v36 = vunpack.i.l.bf16 %v4845_v63  ;;  %v6930_v19 = vpop.permute.xlu0 %554  ;;  %v2071_v13 = vsel %vm641_vm7, %v2063_v20, %v8623_v30  ;;  %v4847_v14 = vunpack.i.h.bf16 %v4845_v63  ;;  %v2016_v35 = vsel %vm632_vm6, %v2008_v42, %v8737_v43  ;;  %v5137_v63 = vld [vmem:[%s5242_s10 + $0x50] sm:$0xff] }
 0x1c2   : > { %4974 = vrot.lane.b32.xlu1 %v4973_v58, %s5170_s14  ;;  %v2079_v21 = vsel %vm605_vm5, %v2071_v13, %v6930_v19  ;;  %v2072_v53 = vsel %vm641_vm7, %v2064_v24, %v8620_v11  ;;  %v4993_v28 = vpack.i.bf16 %v6999_v51, %v6996_v52  ;;  %v7019_v20 = vpack.i.bf16 %v5136_v41, %v5137_v63  ;;  %v8742_v42 = vld [vmem:[#allocation32_spill] sm:$0xff] }
 0x1c3   : > { %1729 = vrot.lane.b32.xlu0 %v6678_v2, %s5172_s17  ;;  %2601 = vmatprep.mubr.f32.mxu0 %v2079_v21  ;;  %v2023_v48 = vsel %vm1133_vm9, %v2015_v31, %v4846_v36  ;;  %v2024_v39 = vsel %vm1133_vm9, %v2016_v35, %v4847_v14  ;;  %v7045_v31 = vld [vmem:[%s5242_s10 + $0x61] sm:$0xff]  ;;  %v8618_v24 = vunpack.i.l.bf16 %v8742_v42  ;;  %v7087_v63 = vld [vmem:[%s5242_s10 + $0x32] sm:$0xff] }
 0x1c4   : > { %v6954_v34 = vpop.permute.xlu1 %4849  ;;  %v2031_v2 = vsel %vm605_vm5, %v2023_v48, %v8735_v0  ;;  %8739 = vst [vmem:[#allocation33_spill] sm:$0xff] %v7019_v20  ;;  %v8741_v14 = vld [vmem:[#allocation26_spill] sm:$0xff]  ;;  %8744 = vst [vmem:[#allocation40_spill] sm:$0xff] %v7087_v63 }
 0x1c5   : > { %v6969_v10 = vpop.permute.xlu0 %1214  ;;  %2602 = vmatmul.mubr.f32.gmra.mrb[48].mxu0 %v2031_v2  ;;  %v4851_v61 = vunpack.i.l.bf16 %v6954_v34  ;;  %v4852_v50 = vunpack.i.h.bf16 %v6954_v34  ;;  %v5140_v34 = vld [vmem:[%s5242_s10 + $0x80] sm:$0xff] }
 0x1c6   : > { %4984 = vrot.lane.b32.xlu1 %v4973_v58, %s5174_s21  ;;  %v8738_v58 = vunpack.i.h.bf16 %v8734_v54  ;;  %v8619_v54 = vunpack.i.l.bf16 %v8741_v14 }
 0x1c7   : > { %4979 = vrot.lane.b32.xlu0 %v6949_v5, %s5163_s11  ;;  %v2041_v45 = vsel %vm578_vm0, %v6912_v25, %v4851_v61  ;;  %v7184_v5 = vld [vmem:[%s5242_s10 + $0x80] sm:$0xff] }
 0x1c8   : > { %v6983_v22 = vpop.permute.xlu1 %1238  ;;  %v2032_v4 = vsel %vm605_vm5, %v2024_v39, %v8738_v58  ;;  %v2049_v0 = vsel %vm623_vm4, %v2041_v45, %v8619_v54  ;;  %v8745_v45 = vld [vmem:[#allocation10_spill] sm:$0xff] }
 0x1c9   : > { %v6986_v55 = vpop.permute.xlu0 %556  ;;  %v2057_v39 = vsel %vm587_vm1, %v2049_v0, %v8618_v24  ;;  %v8746_v0 = vunpack.i.l.bf16 %v8745_v45  ;;  %v7114_v24 = vld [vmem:[%s5242_s10 + $0x71] sm:$0xff] }
 0x1ca   : > { %1731 = vrot.lane.b32.xlu1 %v6976_v57, %s5172_s17  ;;  %v2080_v44 = vsel %vm605_vm5, %v2072_v53, %v6986_v55 }
 0x1cb   : > { %4989 = vrot.lane.b32.xlu0 %v4988_v9, %s5165_s8  ;;  %2606 = vmatprep.mubr.f32.mxu0 %v2080_v44 }
 0x1cc   : > { %2607 = vmatmul.mubr.f32.gmra.mrb[50].mxu0 %v2032_v4  ;;  %v7007_v29 = vpop.permute.xlu1 %4854 }
 0x1cd   : > { %v7012_v60 = vpop.permute.xlu0 %1262  ;;  %v4856_v9 = vunpack.i.l.bf16 %v7007_v29 }
 0x1ce   : > { %4994 = vrot.lane.b32.xlu1 %v4993_v28, %s5170_s14 }
 0x1cf   : > { %1733 = vrot.lane.b32.xlu0 %v7010_v15, %s5172_s17 }
 0x1d0   : > { %v7027_v36 = vpop.permute.xlu1 %2127 }
 0x1d1   : > { %v7029_v13 = vpop.permute.xlu0 %2103 }
 0x1d2   : > { %5004 = vrot.lane.b32.xlu1 %v4993_v28, %s5174_s21  ;;  %v8743_v28 = vld [vmem:[#allocation25_spill] sm:$0xff] }
 0x1d3   : > { %4999 = vrot.lane.b32.xlu0 %v7019_v20, %s5163_s11  ;;  %v2001_v58 = vsel %vm1108_vm8, %v8743_v28, %v4856_v9 }
 0x1d4   : > { %v7036_v21 = vpop.permute.xlu1 %4859 }
 0x1d5   : > { %v7039_v47 = vpop.permute.xlu0 %1286  ;;  %v4861_v2 = vunpack.i.l.bf16 %v7036_v21  ;;  %v4862_v30 = vunpack.i.h.bf16 %v7036_v21 }
 0x1d6   : > { %5009 = vrot.lane.b32.xlu1 %v5008_v6, %s5165_s8 }
 0x1d7   : > { %1218 = vrot.lane.b32.xlu0 %v6912_v25, %s5168_s12  ;;  %v2065_v44 = vsel %vm596_vm2, %v2057_v39, %v4861_v2  ;;  %v2009_v2 = vsel %vm587_vm1, %v2001_v58, %v8746_v0  ;;  %v4857_v58 = vunpack.i.h.bf16 %v7007_v29 }
 0x1d8   : > { %v7047_v48 = vpop.permute.xlu1 %4864 }
 0x1d9   : > { %8740 = vst [vmem:[#allocation21_spill] sm:$0xff] %v7047_v48  ;;  %v7051_v26 = vpop.permute.xlu0 %2151  ;;  %v8617_v43 = vunpack.i.l.bf16 %v7047_v48 }
 0x1da   : > { %1735 = vrot.lane.b32.xlu1 %v7045_v31, %s5172_s17 }
 0x1db   : > { %1242 = vrot.lane.b32.xlu0 %v6945_v17, %s5174_s21  ;;  %v2073_v41 = vsel %vm641_vm7, %v2065_v44, %v8617_v43  ;;  %v8747_v44 = vld [vmem:[#allocation15_spill] sm:$0xff] }
 0x1dc   : > { %v7062_v59 = vpop.permute.xlu1 %2175  ;;  %v8748_v28 = vunpack.i.l.bf16 %v8747_v44 }
 0x1dd   : > { %v7067_v35 = vpop.permute.xlu0 %1216 }
 0x1de   : > { %2107 = vrot.lane.b32.xlu1 %v6912_v25, %s5161_s15 }
 0x1df   : > { %1266 = vrot.lane.b32.xlu0 %v6912_v25, %s5169_s13 }
 0x1e0   : > { %v7076_v53 = vpop.permute.xlu1 %1240 }
 0x1e1   : > { %v7081_v4 = vpop.permute.xlu0 %558 }
 0x1e2   : > { %1290 = vrot.lane.b32.xlu1 %v7087_v63, %s5162_s26  ;;  %v2081_v6 = vsel %vm605_vm5, %v2073_v41, %v7081_v4  ;;  %v2017_v41 = vsel %vm632_vm6, %v2009_v2, %v8748_v28  ;;  %v7123_v2 = vld [vmem:[%s5242_s10 + $0x70] sm:$0xff]  ;;  %v7133_v28 = vld [vmem:[%s5242_s10 + $0x81] sm:$0xff] }
 0x1e3   : > { %2131 = vrot.lane.b32.xlu0 %v7087_v63, %s5170_s14  ;;  %2611 = vmatprep.mubr.f32.mxu0 %v2081_v6  ;;  %v3788_v6 = vld [vmem:[%s5242_s10 + $0x42] sm:$0xff]  ;;  %8751 = vst [vmem:[#allocation11_spill] sm:$0xff] %v7123_v2  ;;  %v5018_v29 = vpack.i.bf16 %v5140_v34, %v7123_v2  ;;  %v8627_v34 = vunpack.i.h.bf16 %v8741_v14 }
 0x1e4   : > { %v7095_v61 = vpop.permute.xlu1 %2207 }
 0x1e5   : > { %v4870_v9 = vpop.permute.xlu0 %4869 }
 0x1e6   : > { %v4871_v39 = vunpack.i.l.bf16 %v4870_v9  ;;  %2179 = vrot.lane.b32.xlu1 %v6976_v57, %s5163_s11  ;;  %v4872_v18 = vunpack.i.h.bf16 %v4870_v9  ;;  %v7164_v9 = vld [vmem:[%s5242_s10 + $0x42] sm:$0xff] }
 0x1e7   : > { %2155 = vrot.lane.b32.xlu0 %v6960_v23, %s5162_s26  ;;  %v8749_v23 = vld [vmem:[#allocation19_spill] sm:$0xff]  ;;  %8755 = vst [vmem:[#allocation16_spill] sm:$0xff] %v7164_v9 }
 0x1e8   : > { %v7110_v0 = vpop.permute.xlu1 %2105  ;;  %v2025_v43 = vsel %vm1133_vm9, %v2017_v41, %v4871_v39  ;;  %v8750_v54 = vunpack.i.l.bf16 %v8749_v23  ;;  %v7130_v39 = vld [vmem:[%s5242_s10 + $0x71] sm:$0xff] }
 0x1e9   : > { %v7116_v57 = vpop.permute.xlu0 %1264  ;;  %v5013_v41 = vpack.i.bf16 %v7133_v28, %v7130_v39 }
 0x1ea   : > { %v2033_v11 = vsel %vm605_vm5, %v2025_v43, %v8750_v54  ;;  %2211 = vrot.lane.b32.xlu1 %v3788_v6, %s5174_s21  ;;  %v8752_v54 = vld [vmem:[#allocation28_spill] sm:$0xff] }
 0x1eb   : > { %2612 = vmatmul.mubr.f32.gmra.mrb[52].mxu0 %v2033_v11  ;;  %1737 = vrot.lane.b32.xlu0 %v7114_v24, %s5172_s17  ;;  %v2042_v11 = vsel %vm578_vm0, %v6909_v46, %v4852_v50  ;;  %v2002_v43 = vsel %vm1108_vm8, %v8752_v54, %v4857_v58  ;;  %v8753_v50 = vunpack.i.h.bf16 %v8745_v45  ;;  %v8630_v54 = vunpack.i.h.bf16 %v8742_v42 }
 0x1ec   : > { %v7141_v6 = vpop.permute.xlu1 %1288  ;;  %v2050_v62 = vsel %vm623_vm4, %v2042_v11, %v8627_v34 }
 0x1ed   : > { %v7144_v40 = vpop.permute.xlu0 %2129  ;;  %v2010_v58 = vsel %vm587_vm1, %v2002_v43, %v8753_v50  ;;  %v2058_v45 = vsel %vm587_vm1, %v2050_v62, %v8630_v54  ;;  %v8756_v43 = vunpack.i.h.bf16 %v8747_v44  ;;  %v7187_v62 = vld [vmem:[%s5242_s10 + $0x90] sm:$0xff] }
 0x1ee   : > { %5019 = vrot.lane.b32.xlu1 %v5018_v29, %s5163_s11  ;;  %v2066_v34 = vsel %vm596_vm2, %v2058_v45, %v4862_v30  ;;  %8759 = vst [vmem:[#allocation26_spill] sm:$0xff] %v7187_v62 }
 0x1ef   : > { %5014 = vrot.lane.b32.xlu0 %v5013_v41, %s5170_s14  ;;  %v2018_v50 = vsel %vm632_vm6, %v2010_v58, %v8756_v43 }
 0x1f0   : > { %v7157_v29 = vpop.permute.xlu1 %4874 }
 0x1f1   : > { %v7159_v2 = vpop.permute.xlu0 %2153  ;;  %v7161_v11 = vpop.f32.mrb[22].mxu0  ;;  %v4876_v45 = vunpack.i.l.bf16 %v7157_v29 }
 0x1f2   : > { %8754 = vst [vmem:[#allocation22_spill] sm:$0xff] %v7161_v11  ;;  %v2540_v21 = vpop.f32.mrb[23].mxu0  ;;  %2133 = vrot.lane.b32.xlu1 %v7164_v9, %s5170_s14  ;;  %v8758_v11 = vunpack.i.h.bf16 %v7047_v48 }
 0x1f3   : > { %2109 = vrot.lane.b32.xlu0 %v6909_v46, %s5161_s15  ;;  %v2026_v21 = vsel %vm1133_vm9, %v2018_v50, %v4872_v18  ;;  %v8760_v18 = vunpack.i.h.bf16 %v8749_v23  ;;  %v2043_v50 = vsel %vm578_vm0, %v6996_v52, %v4876_v45  ;;  %v4877_v45 = vunpack.i.h.bf16 %v7157_v29 }
 0x1f4   : > { %v7178_v56 = vpop.permute.xlu1 %560  ;;  %v2074_v20 = vsel %vm641_vm7, %v2066_v34, %v8758_v11  ;;  %v5028_v34 = vpack.i.bf16 %v7187_v62, %v7184_v5  ;;  %v8765_v62 = vld [vmem:[#allocation31_spill] sm:$0xff]  ;;  %v8643_v46 = vunpack.i.l.bf16 %v8766_v12 }
 0x1f5   : > { %8757 = vst [vmem:[#allocation20_spill] sm:$0xff] %v7178_v56  ;;  %v7189_v44 = vpop.permute.xlu0 %2177  ;;  %v2082_v58 = vsel %vm605_vm5, %v2074_v20, %v7178_v56  ;;  %v2034_v30 = vsel %vm605_vm5, %v2026_v21, %v8760_v18  ;;  %v8762_v18 = vld [vmem:[#allocation30_spill] sm:$0xff] }
 0x1f6   : > { %2157 = vrot.lane.b32.xlu1 %v6963_v49, %s5162_s26  ;;  %2616 = vmatprep.mubr.f32.mxu0 %v2082_v58  ;;  %v3789_v49 = vld [vmem:[%s5242_s10 + $0x52] sm:$0xff] }
 0x1f7   : > { %5024 = vrot.lane.b32.xlu0 %v5013_v41, %s5174_s21  ;;  %2617 = vmatmul.mubr.f32.gmra.mrb[54].mxu0 %v2034_v30  ;;  %v7214_v41 = vld [vmem:[%s5242_s10 + $0x81] sm:$0xff]  ;;  %v8642_v30 = vunpack.i.l.bf16 %v8762_v18 }
 0x1f8   : > { %v7201_v11 = vpop.permute.xlu1 %4879 }
 0x1f9   : > { %8761 = vst [vmem:[#allocation32_spill] sm:$0xff] %v7201_v11  ;;  %v7204_v43 = vpop.permute.xlu0 %2209  ;;  %v4881_v20 = vunpack.i.l.bf16 %v7201_v11  ;;  %v2051_v63 = vsel %vm623_vm4, %v2043_v50, %v8642_v30 }
 0x1fa   : > { %2181 = vrot.lane.b32.xlu1 %v7010_v15, %s5163_s11  ;;  %v8763_v15 = vld [vmem:[#allocation4_spill] sm:$0xff] }
 0x1fb   : > { %5029 = vrot.lane.b32.xlu0 %v5028_v34, %s5165_s8  ;;  %v8764_v34 = vunpack.i.l.bf16 %v8763_v15 }
 0x1fc   : > { %v7211_v23 = vpop.permute.xlu1 %4889 }
 0x1fd   : > { %v4891_v21 = vunpack.i.l.bf16 %v7211_v23  ;;  %v4885_v58 = vpop.permute.xlu0 %4884  ;;  %v1201_v9 = vsel %vm614_vm3, %v8764_v34, %v4881_v20 }
 0x1fe   : > { %v4886_v54 = vunpack.i.l.bf16 %v4885_v58  ;;  %2213 = vrot.lane.b32.xlu1 %v3789_v49, %s5174_s21  ;;  %v4887_v15 = vunpack.i.h.bf16 %v4885_v58 }
 0x1ff   : > { %1739 = vrot.lane.b32.xlu0 %v7214_v41, %s5172_s17  ;;  %v1209_v17 = vsel %vm650_vm11, %v1201_v9, %v4891_v21 }
 0x200   : > { %v2003_v56 = vsel %vm1108_vm8, %v8765_v62, %v4886_v54  ;;  %v1357_v49 = vpop.permute.xlu1 %1356  ;;  %v2059_v54 = vsel %vm587_vm1, %v2051_v63, %v8643_v46  ;;  %v8768_v62 = vld [vmem:[#allocation13_spill] sm:$0xff]  ;;  %v8772_v63 = vunpack.i.h.bf16 %v7201_v11  ;;  %v8775_v11 = vld [vmem:[#allocation24_spill] sm:$0xff] }
 0x201   : > { %v4895_v48 = vpop.permute.xlu0 %4894  ;;  %v7234_v20 = vpop.f32.mrb[24].mxu0  ;;  %3805 = vmatprep.mubr.msk.f32.mxu1 %vm2352_vm12, %v1357_v49  ;;  %v1377_v9 = vsel %vm623_vm4, %v1209_v17, %v1357_v49  ;;  %v8769_v58 = vunpack.i.l.bf16 %v8768_v62  ;;  %v2044_v17 = vsel %vm578_vm0, %v6999_v51, %v4877_v45 }
 0x202   : > { %8767 = vst [vmem:[#allocation25_spill] sm:$0xff] %v7234_v20  ;;  %v4896_v21 = vunpack.i.l.bf16 %v4895_v48  ;;  %v2545_v29 = vpop.f32.mrb[25].mxu0  ;;  %2135 = vrot.lane.b32.xlu1 %v6602_v32, %s5170_s14  ;;  %2762 = vmatmul.mubr.f32.vlgmr.msra.gmra.mrb[0].mxu1 %v1377_v9  ;;  %v8647_v9 = vunpack.i.h.bf16 %v8762_v18 }
 0x203   : > { %2111 = vrot.lane.b32.xlu0 %v6996_v52, %s5161_s15  ;;  %v2011_v34 = vsel %vm587_vm1, %v2003_v56, %v8769_v58  ;;  %v8770_v29 = vld [vmem:[#allocation34_spill] sm:$0xff] }
 0x204   : > { %v4900_v49 = vpop.permute.xlu1 %4899  ;;  %v2067_v32 = vsel %vm596_vm2, %v2059_v54, %v4896_v21  ;;  %v2004_v30 = vsel %vm1108_vm8, %v8770_v29, %v4887_v15  ;;  %v8773_v21 = vld [vmem:[#allocation18_spill] sm:$0xff]  ;;  %v2052_v15 = vsel %vm623_vm4, %v2044_v17, %v8647_v9  ;;  %v4897_v29 = vunpack.i.h.bf16 %v4895_v48 }
 0x205   : > { %v4901_v50 = vunpack.i.l.bf16 %v4900_v49  ;;  %v7255_v20 = vpop.permute.xlu0 %562  ;;  %v2075_v56 = vsel %vm641_vm7, %v2067_v32, %v8772_v63  ;;  %v8774_v54 = vunpack.i.l.bf16 %v8773_v21  ;;  %v3790_v63 = vld [vmem:[%s5242_s10 + $0x62] sm:$0xff]  ;;  %v4902_v46 = vunpack.i.h.bf16 %v4900_v49 }
 0x206   : > { %8771 = vst [vmem:[#allocation10_spill] sm:$0xff] %v7255_v20  ;;  %2183 = vrot.lane.b32.xlu1 %v7045_v31, %s5163_s11  ;;  %v2083_v45 = vsel %vm605_vm5, %v2075_v56, %v7255_v20  ;;  %v8650_v31 = vunpack.i.h.bf16 %v8766_v12  ;;  %v8776_v20 = vunpack.i.l.bf16 %v8775_v11  ;;  %v8777_v17 = vunpack.i.h.bf16 %v8768_v62 }
 0x207   : > { %v2019_v58 = vsel %vm632_vm6, %v2011_v34, %v8774_v54  ;;  %2159 = vrot.lane.b32.xlu0 %v7022_v8, %s5162_s26  ;;  %2621 = vmatprep.mubr.f32.mxu0 %v2083_v45  ;;  %v7279_v54 = vld [vmem:[%s5242_s10 + $0x91] sm:$0xff]  ;;  %v4892_v62 = vunpack.i.h.bf16 %v7211_v23  ;;  %v8778_v49 = vunpack.i.h.bf16 %v8773_v21 }
 0x208   : > { %v2027_v32 = vsel %vm1133_vm9, %v2019_v58, %v4901_v50  ;;  %v1359_v56 = vpop.permute.xlu1 %1358  ;;  %v2012_v48 = vsel %vm587_vm1, %v2004_v30, %v8777_v17 }
 0x209   : > { %v2035_v34 = vsel %vm605_vm5, %v2027_v32, %v8776_v20  ;;  %v7284_v9 = vpop.permute.xlu0 %4904  ;;  %3806 = vmatprep.mubr.msk.f32.mxu1 %vm2352_vm12, %v1359_v56  ;;  %v2060_v20 = vsel %vm587_vm1, %v2052_v15, %v8650_v31  ;;  %v2020_v45 = vsel %vm632_vm6, %v2012_v48, %v8778_v49  ;;  %v8779_v15 = vld [vmem:[#allocation5_spill] sm:$0xff]  ;;  %v7313_v48 = vld [vmem:[%s5242_s10 + $0x62] sm:$0xff] }
 0x20a   : > { %2622 = vmatmul.mubr.f32.gmra.mrb[56].mxu0 %v2035_v34  ;;  %v8648_v8 = vunpack.i.h.bf16 %v7284_v9  ;;  %v4906_v50 = vunpack.i.l.bf16 %v7284_v9  ;;  %2215 = vrot.lane.b32.xlu1 %v3790_v63, %s5174_s21  ;;  %v2068_v30 = vsel %vm596_vm2, %v2060_v20, %v4897_v29  ;;  %v8780_v63 = vunpack.i.l.bf16 %v8779_v15  ;;  %v5145_v49 = vld [vmem:[%s5242_s10 + $0x12] sm:$0xff]  ;;  %v7320_v15 = vld [vmem:[%s5242_s10 + $0x22] sm:$0xff] }
 0x20b   : > { %1741 = vrot.lane.b32.xlu0 %v7279_v54, %s5172_s17  ;;  %v2028_v34 = vsel %vm1133_vm9, %v2020_v45, %v4902_v46  ;;  %v5033_v46 = vpack.i.bf16 %v7320_v15, %v5145_v49 }
 0x20c   : > { %v7300_v58 = vpop.permute.xlu1 %564  ;;  %v2076_v32 = vsel %vm641_vm7, %v2068_v30, %v8648_v8  ;;  %v1202_v23 = vsel %vm614_vm3, %v8780_v63, %v4906_v50  ;;  %v1310_v50 = vsel %vm578_vm0, %v6969_v10, %v5145_v49 }
 0x20d   : > { %v4910_v17 = vpop.permute.xlu0 %4909  ;;  %v2084_v29 = vsel %vm605_vm5, %v2076_v32, %v7300_v58  ;;  %v1210_v21 = vsel %vm650_vm11, %v1202_v23, %v4892_v62  ;;  %v8781_v62 = vunpack.i.h.bf16 %v8775_v11  ;;  %v1318_v32 = vsel %vm623_vm4, %v1310_v50, %v6983_v22  ;;  %v8783_v50 = vld [vmem:[#allocation35_spill] sm:$0xff] }
 0x20e   : > { %v4911_v20 = vunpack.i.l.bf16 %v4910_v17  ;;  %2137 = vrot.lane.b32.xlu1 %v7313_v48, %s5170_s14  ;;  %2626 = vmatprep.mubr.f32.mxu0 %v2084_v29  ;;  %v1378_v30 = vsel %vm623_vm4, %v1210_v21, %v1359_v56  ;;  %v8782_v29 = vld [vmem:[#allocation29_spill] sm:$0xff]  ;;  %v1326_v21 = vsel %vm587_vm1, %v1318_v32, %v7012_v60  ;;  %v4912_v22 = vunpack.i.h.bf16 %v4910_v17 }
 0x20f   : > { %2113 = vrot.lane.b32.xlu0 %v6999_v51, %s5161_s15  ;;  %2767 = vmatmul.mubr.f32.gmra.mrb[2].mxu1 %v1378_v30  ;;  %v2036_v45 = vsel %vm605_vm5, %v2028_v34, %v8781_v62  ;;  %v8649_v10 = vunpack.i.l.bf16 %v8782_v29  ;;  %v1334_v34 = vsel %vm596_vm2, %v1326_v21, %v7039_v47  ;;  %v4361_v62 = vunpack.i.l.bf16 %v8783_v50 }
 0x210   : > { %v2045_v56 = vsel %vm578_vm0, %v7130_v39, %v4911_v20  ;;  %2627 = vmatmul.mubr.f32.gmra.mrb[58].mxu0 %v2036_v45  ;;  %v4920_v63 = vpop.permute.xlu1 %4919  ;;  %v7334_v23 = vpop.f32.mrb[26].mxu0  ;;  %v4342_v31 = vunpack.i.h.bf16 %v8782_v29 }
 0x211   : > { %v7339_v30 = vpop.permute.xlu0 %4914  ;;  %v2550_v11 = vpop.f32.mrb[27].mxu0  ;;  %v2053_v20 = vsel %vm623_vm4, %v2045_v56, %v8649_v10  ;;  %v4921_v45 = vunpack.i.l.bf16 %v4920_v63  ;;  %v4922_v8 = vunpack.i.h.bf16 %v4920_v63 }
 0x212   : > { %5034 = vrot.lane.b32.xlu1 %v5033_v46, %s5165_s8  ;;  %v4916_v49 = vunpack.i.l.bf16 %v7339_v30  ;;  %v2061_v17 = vsel %vm587_vm1, %v2053_v20, %v4361_v62  ;;  %v2046_v46 = vsel %vm578_vm0, %v7133_v28, %v4912_v22  ;;  %v8786_v20 = vunpack.i.h.bf16 %v7339_v30 }
 0x213   : > { %1350 = vrot.lane.b32.xlu0 %v1334_v34, %s5175_s24  ;;  %v8784_v34 = vld [vmem:[#allocation14_spill] sm:$0xff] }
 0x214   : > { %v4930_v60 = vpop.permute.xlu1 %4929  ;;  %v8785_v63 = vunpack.i.l.bf16 %v8784_v34 }
 0x215   : > { %v4931_v32 = vunpack.i.l.bf16 %v4930_v60  ;;  %v4925_v11 = vpop.permute.xlu0 %4924 }
 0x216   : > { %v4926_v21 = vunpack.i.l.bf16 %v4925_v11  ;;  %5039 = vrot.lane.b32.xlu1 %v6874_v37, %s5175_s24  ;;  %v1203_v10 = vsel %vm614_vm3, %v8785_v63, %v4916_v49  ;;  %v2231_v37 = vsel %vm578_vm0, %v7029_v13, %v7027_v36  ;;  %v2054_v36 = vsel %vm623_vm4, %v2046_v46, %v4342_v31  ;;  %v8788_v13 = vld [vmem:[#allocation38_spill] sm:$0xff]  ;;  %v8789_v46 = vld [vmem:[#allocation12_spill] sm:$0xff] }
 0x217   : > { %2161 = vrot.lane.b32.xlu0 %v7025_v7, %s5162_s26  ;;  %v2069_v56 = vsel %vm596_vm2, %v2061_v17, %v4931_v32  ;;  %v2239_v32 = vsel %vm623_vm4, %v2231_v37, %v7051_v26  ;;  %v8787_v17 = vld [vmem:[#allocation37_spill] sm:$0xff]  ;;  %v8790_v37 = vunpack.i.l.bf16 %v8789_v46 }
 0x218   : > { %v7368_v47 = vpop.permute.xlu1 %566  ;;  %v2077_v22 = vsel %vm641_vm7, %v2069_v56, %v8786_v20  ;;  %v1211_v7 = vsel %vm650_vm11, %v1203_v10, %v4926_v21  ;;  %v2005_v49 = vsel %vm1108_vm8, %v8787_v17, %v4921_v45  ;;  %v2006_v56 = vsel %vm1108_vm8, %v8788_v13, %v4922_v8  ;;  %v3791_v21 = vld [vmem:[%s5242_s10 + $0x72] sm:$0xff] }
 0x219   : > { %v1361_v34 = vpop.permute.xlu0 %1360  ;;  %v2085_v63 = vsel %vm605_vm5, %v2077_v22, %v7368_v47  ;;  %v4932_v20 = vunpack.i.h.bf16 %v4930_v60  ;;  %v8651_v10 = vunpack.i.h.bf16 %v8783_v50  ;;  %v2247_v45 = vsel %vm587_vm1, %v2239_v32, %v7062_v59 }
 0x21a   : > { %3807 = vmatprep.mubr.msk.f32.mxu1 %vm2352_vm12, %v1361_v34  ;;  %1054 = vrot.lane.b32.xlu1 %v7320_v15, %s5171_s16  ;;  %v1379_v26 = vsel %vm623_vm4, %v1211_v7, %v1361_v34  ;;  %v2255_v8 = vsel %vm596_vm2, %v2247_v45, %v7095_v61  ;;  %v2013_v22 = vsel %vm587_vm1, %v2005_v49, %v8790_v37  ;;  %v8791_v32 = vunpack.i.h.bf16 %v8789_v46  ;;  %v8794_v46 = vld [vmem:[#allocation7_spill] sm:$0xff] }
 0x21b   : > { %2185 = vrot.lane.b32.xlu0 %v7114_v24, %s5163_s11  ;;  %2631 = vmatprep.mubr.f32.mxu0 %v2085_v63  ;;  %v2062_v24 = vsel %vm587_vm1, %v2054_v36, %v8651_v10  ;;  %v4927_v34 = vunpack.i.h.bf16 %v4925_v11  ;;  %vm3678_vm8 = vcmask 1042432  }
 0x21c   : > { %2772 = vmatmul.mubr.f32.gmra.mrb[4].mxu1 %v1379_v26  ;;  %v7396_v60 = vpop.permute.xlu1 %4939  ;;  %v2014_v61 = vsel %vm587_vm1, %v2006_v56, %v8791_v32  ;;  %v2070_v49 = vsel %vm596_vm2, %v2062_v24, %v4932_v20  ;;  %v8792_v26 = vld [vmem:[#allocation17_spill] sm:$0xff]  ;;  %v8795_v56 = vunpack.i.l.bf16 %v8794_v46 }
 0x21d   : > { %v4942_v7 = vunpack.i.h.bf16 %v7396_v60  ;;  %v4941_v17 = vunpack.i.l.bf16 %v7396_v60  ;;  %v4935_v59 = vpop.permute.xlu0 %4934  ;;  %v8793_v45 = vunpack.i.l.bf16 %v8792_v26 }
 0x21e   : > { %v4937_v63 = vunpack.i.h.bf16 %v4935_v59  ;;  %v4936_v13 = vunpack.i.l.bf16 %v4935_v59  ;;  %2271 = vrot.lane.b32.xlu1 %v2255_v8, %s5175_s24 }
 0x21f   : > { %2217 = vrot.lane.b32.xlu0 %v3791_v21, %s5174_s21  ;;  %v2021_v37 = vsel %vm632_vm6, %v2013_v22, %v8793_v45  ;;  %v2078_v36 = vsel %vm641_vm7, %v2070_v49, %v4942_v7  ;;  %v1204_v11 = vsel %vm614_vm3, %v8795_v56, %v4941_v17  ;;  %v8796_v21 = vld [vmem:[#allocation23_spill] sm:$0xff]  ;;  %v8798_v49 = vunpack.i.h.bf16 %v8792_v26 }
 0x220   : > { %v7422_v59 = vpop.permute.xlu1 %568  ;;  %v2029_v8 = vsel %vm1133_vm9, %v2021_v37, %v4936_v13  ;;  %v1212_v20 = vsel %vm650_vm11, %v1204_v11, %v4927_v34  ;;  %v8797_v32 = vunpack.i.l.bf16 %v8796_v21  ;;  %v5147_v34 = vld [vmem:[%s5242_s10 + $0x11] sm:$0xff]  ;;  %v8799_v37 = vunpack.i.l.bf16 %v8721_v33 }
 0x221   : > { %v1363_v24 = vpop.permute.xlu0 %1362  ;;  %v2086_v22 = vsel %vm605_vm5, %v2078_v36, %v7422_v59  ;;  %v2022_v45 = vsel %vm632_vm6, %v2014_v61, %v8798_v49  ;;  %v1311_v36 = vsel %vm578_vm0, %v7067_v35, %v7320_v15  ;;  %vm3576_vm6 = vcmask 1040384  }
 0x222   : > { %v2037_v10 = vsel %vm605_vm5, %v2029_v8, %v8797_v32  ;;  %3808 = vmatprep.mubr.msk.f32.mxu1 %vm2352_vm12, %v1363_v24  ;;  %v1380_v17 = vsel %vm623_vm4, %v1212_v20, %v1363_v24  ;;  %v2030_v13 = vsel %vm1133_vm9, %v2022_v45, %v4937_v63  ;;  %v651_v56 = vsel %vm650_vm11, %v5147_v34, %v8799_v37  ;;  %v8804_v45 = vld [vmem:[#allocation6_spill] sm:$0xff] }
 0x223   : > { %2632 = vmatmul.mubr.f32.gmra.mrb[60].mxu0 %v2037_v10  ;;  %1078 = vrot.lane.b32.xlu0 %v6870_v3, %s5167_s9  ;;  %v8800_v10 = vunpack.i.l.bf16 %v8723_v16  ;;  %v1319_v63 = vsel %vm623_vm4, %v1311_v36, %v7076_v53  ;;  %v8801_v8 = vunpack.i.h.bf16 %v8796_v21  ;;  %v8802_v53 = vunpack.i.l.bf16 %v6898_v38 }
 0x224   : > { %2115 = vrot.lane.b32.xlu1 %v7130_v39, %s5161_s15  ;;  %2636 = vmatprep.mubr.f32.mxu0 %v2086_v22  ;;  %v4950_v26 = vpop.permute.xlu1 %4949  ;;  %v1327_v35 = vsel %vm587_vm1, %v1319_v63, %v7116_v57  ;;  %v8803_v21 = vunpack.i.h.bf16 %v8794_v46  ;;  %v8806_v36 = vunpack.i.h.bf16 %v8721_v33  ;;  %vm3579_vm7 = vcmask 1041408  }
 0x225   : > { %v659_v61 = vsel %vm587_vm1, %v651_v56, %v8800_v10  ;;  %2777 = vmatmul.mubr.f32.gmra.mrb[6].mxu1 %v1380_v17  ;;  %v4952_v15 = vunpack.i.h.bf16 %v4950_v26  ;;  %v4951_v11 = vunpack.i.l.bf16 %v4950_v26  ;;  %v4945_v3 = vpop.permute.xlu0 %4944  ;;  %v2038_v20 = vsel %vm605_vm5, %v2030_v13, %v8801_v8 }
 0x226   : > { %v1335_v24 = vsel %vm596_vm2, %v1327_v35, %v7141_v6  ;;  %v4947_v32 = vunpack.i.h.bf16 %v4945_v3  ;;  %v4946_v49 = vunpack.i.l.bf16 %v4945_v3  ;;  %v668_v22 = vsel %vm667_vm13, %v659_v61, %v8802_v53 }
 0x227   : > { %2637 = vmatmul.mubr.f32.gmra.mrb[62].mxu0 %v2038_v20  ;;  %2139 = vrot.lane.b32.xlu0 %v6756_v27, %s5170_s14  ;;  %v8805_v17 = vunpack.i.l.bf16 %v8804_v45  ;;  %v676_v37 = vsel %vm605_vm5, %v668_v22, %v6930_v19  ;;  %v652_v46 = vsel %vm650_vm11, %v6846_v1, %v8806_v36  ;;  %v2232_v61 = vsel %vm578_vm0, %v7110_v0, %v7144_v40 }
 0x228   : > { %1352 = vrot.lane.b32.xlu1 %v1335_v24, %s5175_s24  ;;  %3794 = vmatprep.mubr.msk.f32.mxu0 %vm2352_vm12, %v6930_v19  ;;  %v4955_v57 = vpop.permute.xlu1 %4954  ;;  %v1205_v6 = vsel %vm614_vm3, %v8803_v21, %v4946_v49  ;;  %v8807_v1 = vunpack.i.h.bf16 %v8723_v16  ;;  %v2240_v26 = vsel %vm623_vm4, %v2232_v61, %v7159_v2  ;;  %v8811_v21 = vld [vmem:[#allocation21_spill] sm:$0xff] }
 0x229   : > { %v1198_v13 = vsel %vm614_vm3, %v8805_v17, %v4947_v32  ;;  %v1365_v34 = vpop.permute.xlu0 %1364  ;;  %v1213_v27 = vsel %vm650_vm11, %v1205_v6, %v4951_v11  ;;  %v4956_v35 = vunpack.i.l.bf16 %v4955_v57  ;;  %v8809_v11 = vunpack.i.l.bf16 %v8741_v14 }
 0x22a   : > { %v7478_v56 = vsel %vm650_vm11, %v1198_v13, %v4952_v15  ;;  %3809 = vmatprep.mubr.msk.f32.mxu1 %vm2352_vm12, %v1365_v34  ;;  %v1381_v10 = vsel %vm623_vm4, %v1213_v27, %v1365_v34  ;;  %v660_v63 = vsel %vm587_vm1, %v652_v46, %v8807_v1  ;;  %v3792_v15 = vld [vmem:[%s5242_s10 + $0x82] sm:$0xff]  ;;  %v2248_v2 = vsel %vm587_vm1, %v2240_v26, %v7189_v44  ;;  %v8814_v27 = vld [vmem:[#allocation9_spill] sm:$0xff] }
 0x22b   : > { %2707 = vmatmul.mubr.f32.vlgmr.msra.gmra.mrb[0].mxu0 %v676_v37  ;;  %2163 = vrot.lane.b32.xlu0 %v7184_v5, %s5162_s26  ;;  %v7493_v33 = vpop.f32.mrb[28].mxu0  ;;  %v8808_v5 = vunpack.i.h.bf16 %v6898_v38  ;;  %v653_v16 = vsel %vm650_vm11, %v6912_v25, %v8809_v11  ;;  %v2256_v20 = vsel %vm596_vm2, %v2248_v2, %v7204_v43  ;;  %v4957_v24 = vunpack.i.h.bf16 %v4955_v57  ;;  %v8815_v1 = vld [vmem:[#allocation41_spill] sm:$0xff] }
 0x22c   : > { %2187 = vrot.lane.b32.xlu1 %v7214_v41, %s5163_s11  ;;  %3795 = vmatprep.mubr.msk.f32.mxu0 %vm2352_vm12, %v6986_v55  ;;  %v4965_v40 = vpop.permute.xlu1 %4964  ;;  %v2555_v0 = vpop.f32.mrb[29].mxu0  ;;  %v8810_v44 = vunpack.i.l.bf16 %v8742_v42  ;;  %v8812_v6 = vunpack.i.l.bf16 %v8811_v21  ;;  %v8813_v37 = vunpack.i.h.bf16 %v8741_v14  ;;  %v8819_v2 = vunpack.i.l.bf16 %v8762_v18 }
 0x22d   : > { %2782 = vmatmul.mubr.f32.gmra.mrb[8].mxu1 %v1381_v10  ;;  %v669_v41 = vsel %vm667_vm13, %v660_v63, %v8808_v5  ;;  %v4960_v3 = vpop.permute.xlu0 %4959  ;;  %v4966_v49 = vunpack.i.l.bf16 %v4965_v40  ;;  %v4967_v17 = vunpack.i.h.bf16 %v4965_v40  ;;  %v8816_v63 = vunpack.i.h.bf16 %v8742_v42 }
 0x22e   : > { %v677_v8 = vsel %vm605_vm5, %v669_v41, %v6986_v55  ;;  %v4962_v38 = vunpack.i.h.bf16 %v4960_v3  ;;  %v4961_v32 = vunpack.i.l.bf16 %v4960_v3  ;;  %v661_v53 = vsel %vm587_vm1, %v653_v16, %v8810_v44  ;;  %v8823_v44 = vld [vmem:[#allocation10_spill] sm:$0xff] }
 0x22f   : > { %2712 = vmatmul.mubr.f32.gmra.mrb[2].mxu0 %v677_v8  ;;  %2219 = vrot.lane.b32.xlu0 %v3792_v15, %s5174_s21  ;;  %v7518_v25 = vpop.f32.mrb[30].mxu0  ;;  %v670_v45 = vsel %vm667_vm13, %v661_v53, %v8812_v6  ;;  %v654_v36 = vsel %vm650_vm11, %v8814_v27, %v8813_v37  ;;  %v8818_v0 = vunpack.i.h.bf16 %v8811_v21  ;;  %v655_v3 = vsel %vm650_vm11, %v6996_v52, %v8819_v2 }
 0x230   : > { %2273 = vrot.lane.b32.xlu1 %v2256_v20, %s5175_s24  ;;  %v1815_v22 = vsel %vm650_vm11, %v4956_v35, %v4961_v32  ;;  %3796 = vmatprep.mubr.msk.f32.mxu0 %vm2352_vm12, %v7081_v4  ;;  %v1728_v43 = vpop.permute.xlu1 %1727  ;;  %v2560_v57 = vpop.f32.mrb[31].mxu0  ;;  %v678_v34 = vsel %vm605_vm5, %v670_v45, %v7081_v4  ;;  %v1816_v46 = vsel %vm650_vm11, %v4957_v24, %v4962_v38  ;;  %v8817_v35 = vld [vmem:[#allocation20_spill] sm:$0xff]  ;;  %v8820_v20 = vld [vmem:[#allocation26_spill] sm:$0xff]  ;;  %v8821_v24 = vunpack.i.l.bf16 %v8766_v12 }
 0x231   : > { %v4970_v13 = vpop.permute.xlu0 %4969  ;;  %3810 = vmatprep.mubr.msk.f32.mxu1 %vm2352_vm12, %v1728_v43  ;;  %v662_v26 = vsel %vm587_vm1, %v654_v36, %v8816_v63  ;;  %v1823_v14 = vsel %vm587_vm1, %v1815_v22, %v4966_v49  ;;  %v1824_v16 = vsel %vm587_vm1, %v1816_v46, %v4967_v17  ;;  %v8822_v32 = vunpack.i.h.bf16 %v8762_v18  ;;  %v8824_v22 = vld [vmem:[#allocation32_spill] sm:$0xff] }
 0x232   : > { %v4972_v10 = vunpack.i.h.bf16 %v4970_v13  ;;  %v4971_v61 = vunpack.i.l.bf16 %v4970_v13  ;;  %v671_v5 = vsel %vm667_vm13, %v662_v26, %v8818_v0  ;;  %v663_v38 = vsel %vm587_vm1, %v655_v3, %v8821_v24  ;;  %v3793_v57 = vld [vmem:[%s5242_s10 + $0x92] sm:$0xff] }
 0x233   : > { %2717 = vmatmul.mubr.f32.gmra.mrb[4].mxu0 %v678_v34  ;;  %2117 = vrot.lane.b32.xlu0 %v7133_v28, %s5161_s15  ;;  %v679_v11 = vsel %vm605_vm5, %v671_v5, %v8817_v35  ;;  %v656_v49 = vsel %vm650_vm11, %v6999_v51, %v8822_v32  ;;  %v8826_v51 = vunpack.i.h.bf16 %v8766_v12  ;;  %v8827_v37 = vunpack.i.h.bf16 %v7284_v9  ;;  %v8828_v46 = vld [vmem:[#allocation40_spill] sm:$0xff]  ;;  %v8830_v5 = vld [vmem:[#allocation27_spill] sm:$0xff] }
 0x234   : > { %2141 = vrot.lane.b32.xlu1 %v8815_v1, %s5170_s14  ;;  %3797 = vmatprep.mubr.msk.f32.mxu0 %vm2352_vm12, %v8817_v35  ;;  %v4975_v40 = vpop.permute.xlu1 %4974  ;;  %v1831_v41 = vsel %vm667_vm13, %v1823_v14, %v4971_v61  ;;  %v1832_v8 = vsel %vm667_vm13, %v1824_v16, %v4972_v10  ;;  %v8829_v9 = vunpack.i.l.bf16 %v8782_v29  ;;  %v8832_v2 = vunpack.i.h.bf16 %v7339_v30 }
 0x235   : > { %v1730_v15 = vpop.permute.xlu0 %1729  ;;  %v1839_v42 = vsel %vm605_vm5, %v1831_v41, %v1728_v43  ;;  %v4976_v52 = vunpack.i.l.bf16 %v4975_v40  ;;  %v8825_v43 = vunpack.i.h.bf16 %v8824_v22  ;;  %v664_v45 = vsel %vm587_vm1, %v656_v49, %v8826_v51 }
 0x236   : > { %2787 = vmatmul.mubr.f32.gmra.mrb[10].mxu1 %v1839_v42  ;;  %v1840_v18 = vsel %vm605_vm5, %v1832_v8, %v1730_v15  ;;  %v4977_v17 = vunpack.i.h.bf16 %v4975_v40  ;;  %v673_v27 = vsel %vm667_vm13, %v664_v45, %v8827_v37  ;;  %v657_v26 = vsel %vm650_vm11, %v7130_v39, %v8829_v9 }
 0x237   : > { %2722 = vmatmul.mubr.f32.gmra.mrb[6].mxu0 %v679_v11  ;;  %2165 = vrot.lane.b32.xlu0 %v8820_v20, %s5162_s26  ;;  %v681_v63 = vsel %vm605_vm5, %v673_v27, %v7300_v58  ;;  %v665_v41 = vsel %vm587_vm1, %v657_v26, %v4361_v62  ;;  %v8831_v11 = vld [vmem:[#allocation16_spill] sm:$0xff]  ;;  %v658_v42 = vsel %vm650_vm11, %v7133_v28, %v4342_v31 }
 0x238   : > { %2189 = vrot.lane.b32.xlu1 %v7279_v54, %s5163_s11  ;;  %3798 = vmatprep.mubr.msk.f32.mxu0 %vm2352_vm12, %v8823_v44  ;;  %v4985_v53 = vpop.permute.xlu1 %4984  ;;  %v672_v54 = vsel %vm667_vm13, %v663_v38, %v8825_v43  ;;  %v5043_v39 = vpack.i.bf16 %v8831_v11, %v8828_v46  ;;  %v674_v3 = vsel %vm667_vm13, %v665_v41, %v8832_v2  ;;  %v8833_v38 = vunpack.i.h.bf16 %v8783_v50 }
 0x239   : > { %3811 = vmatprep.mubr.msk.f32.mxu1 %vm2352_vm12, %v1730_v15  ;;  %v4980_v21 = vpop.permute.xlu0 %4979  ;;  %v680_v6 = vsel %vm605_vm5, %v672_v54, %v8823_v44  ;;  %v4986_v36 = vunpack.i.l.bf16 %v4985_v53  ;;  %v4987_v61 = vunpack.i.h.bf16 %v4985_v53  ;;  %v682_v62 = vsel %vm605_vm5, %v674_v3, %v7368_v47 }
 0x23a   : > { %v4982_v13 = vunpack.i.h.bf16 %v4980_v21  ;;  %v4981_v34 = vunpack.i.l.bf16 %v4980_v21  ;;  %2792 = vmatmul.mubr.f32.gmra.mrb[12].mxu1 %v1840_v18  ;;  %v666_v29 = vsel %vm587_vm1, %v658_v42, %v8833_v38 }
 0x23b   : > { %2727 = vmatmul.mubr.f32.gmra.mrb[8].mxu0 %v680_v6  ;;  %2221 = vrot.lane.b32.xlu0 %v3793_v57, %s5174_s21  ;;  %v675_v28 = vsel %vm667_vm13, %v666_v29, %v4942_v7 }
 0x23c   : > { %1056 = vrot.lane.b32.xlu1 %v8828_v46, %s5171_s16  ;;  %v1817_v10 = vsel %vm650_vm11, %v4976_v52, %v4981_v34  ;;  %3799 = vmatprep.mubr.msk.f32.mxu0 %vm2352_vm12, %v7300_v58  ;;  %v1732_v12 = vpop.permute.xlu1 %1731  ;;  %v1818_v14 = vsel %vm650_vm11, %v4977_v17, %v4982_v13  ;;  %v683_v52 = vsel %vm605_vm5, %v675_v28, %v7422_v59 }
 0x23d   : > { %v4990_v1 = vpop.permute.xlu0 %4989  ;;  %3812 = vmatprep.mubr.msk.f32.mxu1 %vm2352_vm12, %v1732_v12  ;;  %v1825_v15 = vsel %vm587_vm1, %v1817_v10, %v4986_v36  ;;  %v1826_v32 = vsel %vm587_vm1, %v1818_v14, %v4987_v61 }
 0x23e   : > { %v4992_v40 = vunpack.i.h.bf16 %v4990_v1  ;;  %v4991_v0 = vunpack.i.l.bf16 %v4990_v1 }
 0x23f   : > { %2732 = vmatmul.mubr.f32.gmra.mrb[10].mxu0 %v681_v63  ;;  %1080 = vrot.lane.b32.xlu0 %v8830_v5, %s5167_s9 }
 0x240   : > { %3800 = vmatprep.mubr.msk.f32.mxu0 %vm2352_vm12, %v7368_v47  ;;  %v4995_v16 = vpop.permute.xlu1 %4994  ;;  %v1833_v8 = vsel %vm667_vm13, %v1825_v15, %v4991_v0  ;;  %v1834_v31 = vsel %vm667_vm13, %v1826_v32, %v4992_v40 }
 0x241   : > { %v1734_v20 = vpop.permute.xlu0 %1733  ;;  %v1841_v24 = vsel %vm605_vm5, %v1833_v8, %v1732_v12  ;;  %v4996_v30 = vunpack.i.l.bf16 %v4995_v16  ;;  %v4997_v61 = vunpack.i.h.bf16 %v4995_v16 }
 0x242   : > { %2797 = vmatmul.mubr.f32.gmra.mrb[14].mxu1 %v1841_v24  ;;  %v1842_v53 = vsel %vm605_vm5, %v1834_v31, %v1734_v20  ;;  %v5148_v24 = vld [vmem:[%s5242_s10 + $0x52] sm:$0xff] }
 0x243   : > { %2737 = vmatmul.mubr.f32.gmra.mrb[12].mxu0 %v682_v62  ;;  %5044 = vrot.lane.b32.xlu0 %v5043_v39, %s5165_s8  ;;  %v8834_v39 = vld [vmem:[#allocation39_spill] sm:$0xff]  ;;  %v5053_v38 = vpack.i.bf16 %v7313_v48, %v5148_v24 }
 0x244   : > { %3801 = vmatprep.mubr.msk.f32.mxu0 %vm2352_vm12, %v7422_v59  ;;  %3813 = vmatprep.mubr.msk.f32.mxu1 %vm2352_vm12, %v1734_v20  ;;  %v5005_v50 = vpop.permute.xlu1 %5004 }
 0x245   : > { %v5000_v49 = vpop.permute.xlu0 %4999  ;;  %v5006_v60 = vunpack.i.l.bf16 %v5005_v50  ;;  %v5007_v40 = vunpack.i.h.bf16 %v5005_v50 }
 0x246   : > { %v5001_v22 = vunpack.i.l.bf16 %v5000_v49  ;;  %2802 = vmatmul.mubr.f32.gmra.mrb[16].mxu1 %v1842_v53  ;;  %v5002_v1 = vunpack.i.h.bf16 %v5000_v49 }
 0x247   : > { %2742 = vmatmul.mubr.f32.gmra.mrb[14].mxu0 %v683_v52 }
 0x248   : > { %v1819_v7 = vsel %vm650_vm11, %v4996_v30, %v5001_v22  ;;  %v5010_v43 = vpop.permute.xlu1 %5009 }
 0x249   : > { %v5011_v54 = vunpack.i.l.bf16 %v5010_v43  ;;  %v1219_v57 = vpop.permute.xlu0 %1218  ;;  %v1827_v21 = vsel %vm587_vm1, %v1819_v7, %v5006_v60  ;;  %v5012_v5 = vunpack.i.h.bf16 %v5010_v43 }
 0x24a   : > { %v1312_v37 = vsel %vm578_vm0, %v1219_v57, %v8828_v46  ;;  %v1820_v46 = vsel %vm650_vm11, %v4997_v61, %v5002_v1  ;;  %v8835_v61 = vld [vmem:[#allocation33_spill] sm:$0xff] }
 0x24b   : > { %v1835_v6 = vsel %vm667_vm13, %v1827_v21, %v5011_v54  ;;  %v1828_v2 = vsel %vm587_vm1, %v1820_v46, %v5007_v40 }
 0x24c   : > { %v1736_v18 = vpop.permute.xlu1 %1735  ;;  %v1836_v20 = vsel %vm667_vm13, %v1828_v2, %v5012_v5 }
 0x24d   : > { %v1243_v51 = vpop.permute.xlu0 %1242  ;;  %3814 = vmatprep.mubr.msk.f32.mxu1 %vm2352_vm12, %v1736_v18  ;;  %v1843_v45 = vsel %vm605_vm5, %v1835_v6, %v1736_v18 }
 0x24e   : > { %2807 = vmatmul.mubr.f32.gmra.mrb[18].mxu1 %v1843_v45  ;;  %v1320_v36 = vsel %vm623_vm4, %v1312_v37, %v1243_v51 }
 0x250   : > { %v2108_v17 = vpop.permute.xlu1 %2107 }
 0x251   : > { %v1267_v13 = vpop.permute.xlu0 %1266  ;;  %v7642_v34 = vpop.f32.mrb[32].mxu0 }
 0x252   : > { %v2565_v27 = vpop.f32.mrb[33].mxu0  ;;  %v1328_v10 = vsel %vm587_vm1, %v1320_v36, %v1267_v13 }
 0x254   : > { %v1291_v12 = vpop.permute.xlu1 %1290 }
 0x255   : > { %v1336_v63 = vsel %vm596_vm2, %v1328_v10, %v1291_v12  ;;  %v2132_v9 = vpop.permute.xlu0 %2131  ;;  %v7649_v26 = vpop.f32.mrb[34].mxu0 }
 0x256   : > { %v2570_v14 = vpop.f32.mrb[35].mxu0  ;;  %1354 = vrot.lane.b32.xlu1 %v1336_v63, %s5175_s24  ;;  %v2233_v41 = vsel %vm578_vm0, %v2108_v17, %v2132_v9 }
 0x258   : > { %v2180_v0 = vpop.permute.xlu1 %2179 }
 0x259   : > { %v2156_v15 = vpop.permute.xlu0 %2155 }
 0x25a   : > { %v2241_v11 = vsel %vm623_vm4, %v2233_v41, %v2156_v15  ;;  %5049 = vrot.lane.b32.xlu1 %v8834_v39, %s5175_s24 }
 0x25b   : > { %v2249_v16 = vsel %vm587_vm1, %v2241_v11, %v2180_v0 }
 0x25c   : > { %v2212_v42 = vpop.permute.xlu1 %2211 }
 0x25d   : > { %v2257_v3 = vsel %vm596_vm2, %v2249_v16, %v2212_v42  ;;  %v1738_v8 = vpop.permute.xlu0 %1737 }
 0x25e   : > { %3815 = vmatprep.mubr.msk.f32.mxu1 %vm2352_vm12, %v1738_v8  ;;  %2275 = vrot.lane.b32.xlu0 %v2257_v3, %s5175_s24  ;;  %v1844_v62 = vsel %vm605_vm5, %v1836_v20, %v1738_v8 }
 0x25f   : > { %2812 = vmatmul.mubr.f32.gmra.mrb[20].mxu1 %v1844_v62 }
 0x260   : > { %v5020_v29 = vpop.permute.xlu1 %5019 }
 0x261   : > { %v5015_v32 = vpop.permute.xlu0 %5014  ;;  %v5021_v52 = vunpack.i.l.bf16 %v5020_v29  ;;  %v5022_v1 = vunpack.i.h.bf16 %v5020_v29 }
 0x262   : > { %5054 = vrot.lane.b32.xlu0 %v5053_v38, %s5165_s8  ;;  %v5016_v53 = vunpack.i.l.bf16 %v5015_v32  ;;  %v5017_v63 = vunpack.i.h.bf16 %v5015_v32  ;;  %v5149_v32 = vld [vmem:[%s5242_s10 + $0x72] sm:$0xff] }
 0x264   : > { %v2134_v28 = vpop.permute.xlu1 %2133  ;;  %v1821_v48 = vsel %vm650_vm11, %v5016_v53, %v5021_v52  ;;  %v1822_v41 = vsel %vm650_vm11, %v5017_v63, %v5022_v1 }
 0x265   : > { %v2110_v31 = vpop.permute.xlu0 %2109 }
 0x266   : > { %v2234_v57 = vsel %vm578_vm0, %v2110_v31, %v2134_v28 }
 0x268   : > { %v2158_v30 = vpop.permute.xlu1 %2157 }
 0x269   : > { %v5025_v50 = vpop.permute.xlu0 %5024  ;;  %v7667_v49 = vpop.f32.mrb[36].mxu0  ;;  %v2242_v18 = vsel %vm623_vm4, %v2234_v57, %v2158_v30 }
 0x26a   : > { %v2575_v60 = vpop.f32.mrb[37].mxu0  ;;  %v5026_v22 = vunpack.i.l.bf16 %v5025_v50  ;;  %v5027_v9 = vunpack.i.h.bf16 %v5025_v50 }
 0x26c   : > { %v2182_v7 = vpop.permute.xlu1 %2181  ;;  %v1829_v51 = vsel %vm587_vm1, %v1821_v48, %v5026_v22  ;;  %v1830_v39 = vsel %vm587_vm1, %v1822_v41, %v5027_v9 }
 0x26d   : > { %v5030_v43 = vpop.permute.xlu0 %5029  ;;  %v7669_v54 = vpop.f32.mrb[38].mxu0  ;;  %v2250_v45 = vsel %vm587_vm1, %v2242_v18, %v2182_v7 }
 0x26e   : > { %v5031_v21 = vunpack.i.l.bf16 %v5030_v43  ;;  %v2580_v6 = vpop.f32.mrb[39].mxu0  ;;  %v5032_v40 = vunpack.i.h.bf16 %v5030_v43 }
 0x270   : > { %v2214_v17 = vpop.permute.xlu1 %2213  ;;  %v1837_v13 = vsel %vm667_vm13, %v1829_v51, %v5031_v21  ;;  %v1838_v3 = vsel %vm667_vm13, %v1830_v39, %v5032_v40 }
 0x271   : > { %v2258_v37 = vsel %vm596_vm2, %v2250_v45, %v2214_v17  ;;  %v1740_v27 = vpop.permute.xlu0 %1739 }
 0x272   : > { %3816 = vmatprep.mubr.msk.f32.mxu1 %vm2352_vm12, %v1740_v27  ;;  %2277 = vrot.lane.b32.xlu1 %v2258_v37, %s5175_s24  ;;  %v1845_v36 = vsel %vm605_vm5, %v1837_v13, %v1740_v27 }
 0x273   : > { %2817 = vmatmul.mubr.f32.gmra.mrb[22].mxu1 %v1845_v36 }
 0x274   : > { %v2136_v10 = vpop.permute.xlu1 %2135 }
 0x275   : > { %v2112_v12 = vpop.permute.xlu0 %2111 }
 0x276   : > { %5059 = vrot.lane.b32.xlu1 %v8835_v61, %s5175_s24  ;;  %v2235_v0 = vsel %vm578_vm0, %v2112_v12, %v2136_v10  ;;  %v8836_v10 = vld [vmem:[#allocation11_spill] sm:$0xff] }
 0x277   : > { %v8837_v12 = vld [vmem:[#allocation3_spill] sm:$0xff] }
 0x278   : > { %v2184_v14 = vpop.permute.xlu1 %2183  ;;  %v8838_v61 = vunpack.i.l.bf16 %v8837_v12 }
 0x279   : > { %v2160_v46 = vpop.permute.xlu0 %2159 }
 0x27a   : > { %v2243_v5 = vsel %vm623_vm4, %v2235_v0, %v2160_v46 }
 0x27b   : > { %v2251_v11 = vsel %vm587_vm1, %v2243_v5, %v2184_v14  ;;  %v5150_v5 = vld [vmem:[%s5242_s10 + $0x82] sm:$0xff] }
 0x27c   : > { %v2216_v15 = vpop.permute.xlu1 %2215 }
 0x27d   : > { %v2259_v42 = vsel %vm596_vm2, %v2251_v11, %v2216_v15  ;;  %v1742_v16 = vpop.permute.xlu0 %1741  ;;  %v7689_v2 = vpop.f32.mrb[40].mxu0 }
 0x27e   : > { %v2585_v8 = vpop.f32.mrb[41].mxu0  ;;  %3817 = vmatprep.mubr.msk.f32.mxu1 %vm2352_vm12, %v1742_v16  ;;  %2279 = vrot.lane.b32.xlu0 %v2259_v42, %s5175_s24  ;;  %v1846_v20 = vsel %vm605_vm5, %v1838_v3, %v1742_v16 }
 0x27f   : > { %2822 = vmatmul.mubr.f32.gmra.mrb[24].mxu1 %v1846_v20 }
 0x280   : > { %v2138_v62 = vpop.permute.xlu1 %2137 }
 0x281   : > { %v2114_v24 = vpop.permute.xlu0 %2113  ;;  %v7695_v38 = vpop.f32.mrb[42].mxu0 }
 0x282   : > { %v2590_v29 = vpop.f32.mrb[43].mxu0  ;;  %1963 = vrot.lane.b32.xlu0 %v5149_v32, %s5165_s8  ;;  %v2236_v57 = vsel %vm578_vm0, %v2114_v24, %v2138_v62 }
 0x284   : > { %v5035_v28 = vpop.permute.xlu1 %5034 }
 0x285   : > { %v1351_v31 = vpop.permute.xlu0 %1350  ;;  %v5036_v53 = vunpack.i.l.bf16 %v5035_v28  ;;  %v5037_v41 = vunpack.i.h.bf16 %v5035_v28 }
 0x286   : > { %3802 = vmatprep.mubr.msk.f32.mxu0 %vm2352_vm12, %v1351_v31  ;;  %v1374_v30 = vsel %vm623_vm4, %v7478_v56, %v1351_v31 }
 0x287   : > { %2747 = vmatmul.mubr.f32.gmra.mrb[16].mxu0 %v1374_v30  ;;  %v2087_v21 = vsel %vm614_vm3, %v6930_v19, %v5036_v53  ;;  %v2088_v20 = vsel %vm614_vm3, %v6986_v55, %v5037_v41  ;;  %v5151_v55 = vld [vmem:[%s5242_s10 + $0x80] sm:$0xff]  ;;  %s4137_s10 = smul.u32 24, %s8847_s19 }
 0x288   : > { %v5040_v50 = vpop.permute.xlu1 %5039  ;;  %v8841_v41 = vld [vmem:[#allocation22_spill] sm:$0xff] }
 0x289   : > { %v2162_v52 = vpop.permute.xlu0 %2161  ;;  %v5041_v60 = vunpack.i.l.bf16 %v5040_v50  ;;  %v5042_v15 = vunpack.i.h.bf16 %v5040_v50  ;;  %s8486_s19 = scalar_lea.vmem %s8522_s5, %s4137_s10 }
 0x28a   : > { %v2244_v6 = vsel %vm623_vm4, %v2236_v57, %v2162_v52 }
 0x28b   : > { %v2095_v56 = vsel %vm650_vm11, %v2087_v21, %v5041_v60  ;;  %v2096_v32 = vsel %vm650_vm11, %v2088_v20, %v5042_v15 }
 0x28c   : > { %v1055_v22 = vpop.permute.xlu1 %1054 }
 0x28d   : > { %v2186_v7 = vpop.permute.xlu0 %2185  ;;  %v7702_v43 = vpop.f32.mrb[44].mxu0  ;;  %v1199_v1 = vsel %vm614_vm3, %v8838_v61, %v1055_v22 }
 0x28e   : > { %v2595_v48 = vpop.f32.mrb[45].mxu0  ;;  %v2252_v51 = vsel %vm587_vm1, %v2244_v6, %v2186_v7 }
 0x290   : > { %v2272_v18 = vpop.permute.xlu1 %2271 }
 0x291   : > { %v2218_v45 = vpop.permute.xlu0 %2217  ;;  %v7710_v17 = vpop.f32.mrb[46].mxu0  ;;  %3818 = vmatprep.mubr.msk.f32.mxu1 %vm2352_vm12, %v2272_v18  ;;  %v2295_v13 = vsel %vm623_vm4, %v2095_v56, %v2272_v18 }
 0x292   : > { %v2260_v37 = vsel %vm596_vm2, %v2252_v51, %v2218_v45  ;;  %v2600_v27 = vpop.f32.mrb[47].mxu0  ;;  %2827 = vmatmul.mubr.f32.gmra.mrb[26].mxu1 %v2295_v13  ;;  %v8839_v51 = vld [vmem:[#allocation8_spill] sm:$0xff] }
 0x293   : > { %2281 = vrot.lane.b32.xlu1 %v2260_v37, %s5175_s24  ;;  %v8840_v45 = vunpack.i.l.bf16 %v8839_v51 }
 0x295   : > { %v1079_v36 = vpop.permute.xlu0 %1078 }
 0x296   : > { %v2116_v19 = vpop.permute.xlu1 %2115  ;;  %v1207_v9 = vsel %vm650_vm11, %v1199_v1, %v1079_v36 }
 0x297   : > { %1987 = vrot.lane.b32.xlu1 %v8836_v10, %s5175_s24 }
 0x298   : > { %v7721_v63 = vpop.f32.mrb[48].mxu0 }
 0x299   : > { %v2140_v40 = vpop.permute.xlu0 %2139  ;;  %v2605_v0 = vpop.f32.mrb[49].mxu0 }
 0x29a   : > { %v1353_v14 = vpop.permute.xlu1 %1352  ;;  %v2237_v11 = vsel %vm578_vm0, %v2116_v19, %v2140_v40 }
 0x29b   : > { %3803 = vmatprep.mubr.msk.f32.mxu0 %vm2352_vm12, %v1353_v14  ;;  %v1375_v46 = vsel %vm623_vm4, %v1207_v9, %v1353_v14  ;;  %1965 = vrot.lane.b32.xlu1 %v5150_v5, %s5165_s8 }
 0x29c   : > { %2752 = vmatmul.mubr.f32.gmra.mrb[18].mxu0 %v1375_v46 }
 0x29d   : > { %v2164_v42 = vpop.permute.xlu0 %2163 }
 0x29e   : > { %v2188_v39 = vpop.permute.xlu1 %2187  ;;  %v2245_v16 = vsel %vm623_vm4, %v2237_v11, %v2164_v42 }
 0x29f   : > { %v7730_v3 = vpop.f32.mrb[50].mxu0  ;;  %v2253_v24 = vsel %vm587_vm1, %v2245_v16, %v2188_v39 }
 0x2a0   : > { %v2610_v8 = vpop.f32.mrb[51].mxu0 }
 0x2a1   : > { %v2220_v29 = vpop.permute.xlu0 %2219 }
 0x2a2   : > { %v2274_v62 = vpop.permute.xlu1 %2273  ;;  %v2261_v28 = vsel %vm596_vm2, %v2253_v24, %v2220_v29 }
 0x2a3   : > { %3819 = vmatprep.mubr.msk.f32.mxu1 %vm2352_vm12, %v2274_v62  ;;  %v2296_v31 = vsel %vm623_vm4, %v2096_v32, %v2274_v62  ;;  %2283 = vrot.lane.b32.xlu0 %v2261_v28, %s5175_s24  ;;  %v8842_v62 = vld [vmem:[#allocation25_spill] sm:$0xff] }
 0x2a4   : > { %2832 = vmatmul.mubr.f32.gmra.mrb[28].mxu1 %v2296_v31 }
 0x2a5   : > { %v2118_v50 = vpop.permute.xlu0 %2117 }
 0x2a6   : > { %v2142_v30 = vpop.permute.xlu1 %2141 }
 0x2a7   : > { %v2238_v52 = vsel %vm578_vm0, %v2118_v50, %v2142_v30  ;;  %1989 = vrot.lane.b32.xlu0 %v5151_v55, %s5175_s24 }
 0x2a9   : > { %v2166_v53 = vpop.permute.xlu0 %2165 }
 0x2aa   : > { %v2190_v60 = vpop.permute.xlu1 %2189  ;;  %v2246_v22 = vsel %vm623_vm4, %v2238_v52, %v2166_v53 }
 0x2ab   : > { %v2254_v7 = vsel %vm587_vm1, %v2246_v22, %v2190_v60 }
 0x2ad   : > { %v2222_v48 = vpop.permute.xlu0 %2221 }
 0x2ae   : > { %v2262_v57 = vsel %vm596_vm2, %v2254_v7, %v2222_v48  ;;  %v1057_v56 = vpop.permute.xlu1 %1056 }
 0x2af   : > { %2285 = vrot.lane.b32.xlu1 %v2262_v57, %s5175_s24  ;;  %v1200_v13 = vsel %vm614_vm3, %v8840_v45, %v1057_v56 }
 0x2b1   : > { %v1081_v18 = vpop.permute.xlu0 %1080 }
 0x2b2   : > { %v1208_v27 = vsel %vm650_vm11, %v1200_v13, %v1081_v18 }
 0x2b5   : > { %v5045_v37 = vpop.permute.xlu0 %5044 }
 0x2b6   : > { %v5046_v10 = vunpack.i.l.bf16 %v5045_v37  ;;  %v5047_v16 = vunpack.i.h.bf16 %v5045_v37 }
 0x2b8   : > { %v2089_v14 = vsel %vm614_vm3, %v7081_v4, %v5046_v10  ;;  %v2090_v32 = vsel %vm614_vm3, %v8817_v35, %v5047_v16 }
 0x2be   : > { %v7747_v21 = vpop.f32.mrb[52].mxu0 }
 0x2bf   : > { %v2615_v6 = vpop.f32.mrb[53].mxu0 }
 0x2c8   : > { %v1355_v19 = vpop.permute.xlu1 %1354 }
 0x2c9   : > { %3804 = vmatprep.mubr.msk.f32.mxu0 %vm2352_vm12, %v1355_v19  ;;  %v1376_v36 = vsel %vm623_vm4, %v1208_v27, %v1355_v19 }
 0x2ca   : > { %v7755_v12 = vpop.f32.mrb[54].mxu0  ;;  %2757 = vmatmul.mubr.f32.gmra.mrb[20].mxu0 %v1376_v36 }
 0x2cb   : > { %v2620_v61 = vpop.f32.mrb[55].mxu0 }
 0x2cc   : > { %v5050_v1 = vpop.permute.xlu1 %5049 }
 0x2cd   : > { %v5051_v9 = vunpack.i.l.bf16 %v5050_v1  ;;  %v5052_v8 = vunpack.i.h.bf16 %v5050_v1 }
 0x2cf   : > { %v2097_v40 = vsel %vm650_vm11, %v2089_v14, %v5051_v9  ;;  %v2098_v30 = vsel %vm650_vm11, %v2090_v32, %v5052_v8 }
 0x2d0   : > { %v2276_v0 = vpop.permute.xlu0 %2275 }
 0x2d1   : > { %3820 = vmatprep.mubr.msk.f32.mxu1 %vm2352_vm12, %v2276_v0  ;;  %v2297_v46 = vsel %vm623_vm4, %v2097_v40, %v2276_v0 }
 0x2d2   : > { %2837 = vmatmul.mubr.f32.gmra.mrb[30].mxu1 %v2297_v46 }
 0x2d4   : > { %v5055_v52 = vpop.permute.xlu0 %5054 }
 0x2d5   : > { %v2763_v5 = vpop.f32.mrb[0].mxu1  ;;  %v5056_v53 = vunpack.i.l.bf16 %v5055_v52  ;;  %v5057_v10 = vunpack.i.h.bf16 %v5055_v52 }
 0x2d6   : > { %v2764_v15 = vadd.f32 %v2763_v5, %v8841_v41  ;;  %v2765_v11 = vpop.f32.mrb[1].mxu1 }
 0x2d7   : > { %v2091_v7 = vsel %vm614_vm3, %v8823_v44, %v5056_v53  ;;  %v2092_v0 = vsel %vm614_vm3, %v7300_v58, %v5057_v10 }
 0x2d8   : > { %v2890_v16 = vsel %vm2867_vm10, %v2764_v15, -inf }
 0x2dd   : > { %v7763_v39 = vpop.f32.mrb[56].mxu0 }
 0x2de   : > { %v2625_v42 = vpop.f32.mrb[57].mxu0 }
 0x2e2   : > { %v2768_v20 = vpop.f32.mrb[2].mxu1 }
 0x2e3   : > { %v2769_v4 = vadd.f32 %v2768_v20, %v8842_v62  ;;  %v7766_v24 = vpop.f32.mrb[58].mxu0  ;;  %v2770_v29 = vpop.f32.mrb[3].mxu1 }
 0x2e4   : > { %v2630_v28 = vpop.f32.mrb[59].mxu0  ;;  %v2278_v31 = vpop.permute.xlu1 %2277 }
 0x2e5   : > { %3821 = vmatprep.mubr.msk.f32.mxu1 %vm2352_vm12, %v2278_v31  ;;  %v2298_v50 = vsel %vm623_vm4, %v2098_v30, %v2278_v31  ;;  %v2897_v31 = vsel %vm2867_vm10, %v2769_v4, -inf }
 0x2e6   : > { %2842 = vmatmul.mubr.f32.gmra.mrb[32].mxu1 %v2298_v50 }
 0x2e8   : > { %v5060_v55 = vpop.permute.xlu1 %5059 }
 0x2e9   : > { %v5061_v60 = vunpack.i.l.bf16 %v5060_v55  ;;  %v5062_v9 = vunpack.i.h.bf16 %v5060_v55 }
 0x2eb   : > { %v2099_v6 = vsel %vm650_vm11, %v2091_v7, %v5061_v60  ;;  %v2100_v5 = vsel %vm650_vm11, %v2092_v0, %v5062_v9 }
 0x2ef   : > { %v2773_v22 = vpop.f32.mrb[4].mxu1 }
 0x2f0   : > { %v2774_v48 = vadd.f32 %v2773_v22, %v7334_v23  ;;  %v2775_v35 = vpop.f32.mrb[5].mxu1  ;;  %v2280_v57 = vpop.permute.xlu0 %2279 }
 0x2f1   : > { %3822 = vmatprep.mubr.msk.f32.mxu1 %vm2352_vm12, %v2280_v57  ;;  %v2299_v18 = vsel %vm623_vm4, %v2099_v6, %v2280_v57 }
 0x2f2   : > { %2847 = vmatmul.mubr.f32.gmra.mrb[34].mxu1 %v2299_v18 }
 0x2f4   : > { %v1964_v15 = vpop.permute.xlu0 %1963 }
 0x2f5   : > { %v2093_v6 = vsel %vm614_vm3, %v7368_v47, %v1964_v15 }
 0x2f6   : > { %v7779_v56 = vpop.f32.mrb[60].mxu0 }
 0x2f7   : > { %v2635_v51 = vpop.f32.mrb[61].mxu0 }
 0x2f8   : > { %v2778_v45 = vpop.f32.mrb[6].mxu1 }
 0x2f9   : > { %v2779_v13 = vadd.f32 %v2778_v45, %v7493_v33  ;;  %v2780_v37 = vpop.f32.mrb[7].mxu1 }
 0x2fa   : > { %v7782_v27 = vpop.f32.mrb[62].mxu0 }
 0x2fb   : > { %v2640_v44 = vpop.f32.mrb[63].mxu0  ;;  %v7815_v45 = vsel %vm2867_vm10, %v2779_v13, -inf }
 0x2fe   : > { %v7784_v23 = vpop.f32.mrb[0].mxu0 }
 0x2ff   : > { %v2710_v19 = vpop.f32.mrb[1].mxu0 }
 0x300   : > { %v2783_v36 = vpop.f32.mrb[8].mxu1 }
 0x301   : > { %v2784_v61 = vadd.f32 %v2783_v36, %v7518_v25  ;;  %v2785_v1 = vpop.f32.mrb[9].mxu1 }
 0x302   : > { %v7787_v14 = vpop.f32.mrb[2].mxu0 }
 0x303   : > { %v2715_v40 = vpop.f32.mrb[3].mxu0  ;;  %v7828_v13 = vsel %vm2867_vm10, %v2784_v61, -inf }
 0x305   : > { %v2282_v33 = vpop.permute.xlu1 %2281 }
 0x306   : > { %v7791_v46 = vpop.f32.mrb[4].mxu0  ;;  %3823 = vmatprep.mubr.msk.f32.mxu1 %vm2352_vm12, %v2282_v33  ;;  %v2300_v11 = vsel %vm623_vm4, %v2100_v5, %v2282_v33 }
 0x307   : > { %v2720_v41 = vpop.f32.mrb[5].mxu0  ;;  %2852 = vmatmul.mubr.f32.gmra.mrb[36].mxu1 %v2300_v11 }
 0x309   : > { %v2788_v8 = vpop.f32.mrb[10].mxu1  ;;  %v1988_v22 = vpop.permute.xlu1 %1987 }
 0x30a   : > { %v2723_v25 = vpop.f32.mrb[6].mxu0  ;;  %v7799_v58 = vadd.f32 %v2788_v8, %v7642_v34  ;;  %v2790_v29 = vpop.f32.mrb[11].mxu1  ;;  %v2904_v34 = vsel %vm2867_vm10, %v2774_v48, -inf  ;;  %v2101_v4 = vsel %vm650_vm11, %v2093_v6, %v1988_v22  ;;  %v3101_v22 = vld [vmem:[%s8520_s3 + $0x28] sm:$0xff] }
 0x30b   : > { %v2889_v42 = vsel %vm2867_vm10, %v2723_v25, -inf  ;;  %v2725_v20 = vpop.f32.mrb[7].mxu0 }
 0x30c   : > { %v2891_v62 = vmax.f32 %v2889_v42, %v2890_v16 }
 0x30d   : > { %v2793_v30 = vpop.f32.mrb[12].mxu1  ;;  %v1966_v41 = vpop.permute.xlu1 %1965 }
 0x30e   : > { %v2728_v32 = vpop.f32.mrb[8].mxu0  ;;  %v7804_v55 = vadd.f32 %v2793_v30, %v7649_v26  ;;  %v2795_v53 = vpop.f32.mrb[13].mxu1  ;;  %v2094_v42 = vsel %vm614_vm3, %v7422_v59, %v1966_v41 }
 0x30f   : > { %v2896_v28 = vsel %vm2867_vm10, %v2728_v32, -inf  ;;  %v2730_v50 = vpop.f32.mrb[9].mxu0  ;;  %v3099_v53 = vld [vmem:[%s8520_s3 + $0x18] sm:$0xff] }
 0x310   : > { %v2898_v52 = vmax.f32 %v2896_v28, %v2897_v31 }
 0x312   : > { %v2733_v60 = vpop.f32.mrb[10].mxu0 }
 0x313   : > { %v2903_v7 = vsel %vm2867_vm10, %v2733_v60, -inf  ;;  %v2735_v35 = vpop.f32.mrb[11].mxu0 }
 0x314   : > { %v2905_v57 = vmax.f32 %v2903_v7, %v2904_v34  ;;  %v3103_v7 = vld [vmem:[%s8520_s3 + $0x38] sm:$0xff]  ;;  %v3100_v35 = vld [vmem:[%s8520_s3 + $0x20] sm:$0xff] }
 0x315   : > { %v2284_v18 = vpop.permute.xlu0 %2283  ;;  %v2798_v37 = vpop.f32.mrb[14].mxu1  ;;  %v3911_v34 = vpack.c.bf16 %v3103_v7, %v3101_v22  ;;  %v2868_v22 = vsel %vm2867_vm10, %v7784_v23, -inf  ;;  %v3124_v23 = vld [vmem:[%s8520_s3 + $0xe0] sm:$0xff] }
 0x316   : > { %v2738_v51 = vpop.f32.mrb[12].mxu0  ;;  %3824 = vmatprep.mubr.msk.f32.mxu1 %vm2352_vm12, %v2284_v18  ;;  %v2301_v48 = vsel %vm623_vm4, %v2101_v4, %v2284_v18  ;;  %v7822_v47 = vadd.f32 %v2798_v37, %v7667_v49  ;;  %v2800_v36 = vpop.f32.mrb[15].mxu1 }
 0x317   : > { %v7812_v26 = vsel %vm2867_vm10, %v2738_v51, -inf  ;;  %v2740_v44 = vpop.f32.mrb[13].mxu0  ;;  %2857 = vmatmul.mubr.f32.gmra.mrb[38].mxu1 %v2301_v48  ;;  %v3104_v48 = vld [vmem:[%s8520_s3 + $0x40] sm:$0xff] }
 0x318   : > { %v2912_v19 = vmax.f32 %v7812_v26, %v7815_v45  ;;  %v3105_v26 = vld [vmem:[%s8520_s3 + $0x48] sm:$0xff]  ;;  %v3107_v45 = vld [vmem:[%s8520_s3 + $0x58] sm:$0xff] }
 0x319   : > { %v2803_v9 = vpop.f32.mrb[16].mxu1  ;;  %v1990_v11 = vpop.permute.xlu0 %1989  ;;  %v3915_v44 = vpack.c.bf16 %v3107_v45, %v3105_v26 }
 0x31a   : > { %v2743_v10 = vpop.f32.mrb[14].mxu0  ;;  %v2804_v33 = vadd.f32 %v2803_v9, %v7669_v54  ;;  %v2805_v5 = vpop.f32.mrb[17].mxu1  ;;  %v2102_v61 = vsel %vm650_vm11, %v2094_v42, %v1990_v11  ;;  %v3109_v9 = vld [vmem:[%s8520_s3 + $0x68] sm:$0xff]  ;;  %v3115_v11 = vld [vmem:[%s8520_s3 + $0x98] sm:$0xff]  ;;  %v3112_v42 = vld [vmem:[%s8520_s3 + $0x80] sm:$0xff] }
 0x31b   : > { %v7825_v1 = vsel %vm2867_vm10, %v2743_v10, -inf  ;;  %v2745_v40 = vpop.f32.mrb[15].mxu0  ;;  %v3108_v5 = vld [vmem:[%s8520_s3 + $0x60] sm:$0xff] }
 0x31c   : > { %v2919_v0 = vmax.f32 %v7825_v1, %v7828_v13  ;;  %v2892_v49 = vsel %vm2867_vm10, %v2804_v33, -inf  ;;  %v3111_v40 = vld [vmem:[%s8520_s3 + $0x78] sm:$0xff]  ;;  %v3122_v1 = vld [vmem:[%s8520_s3 + $0xd0] sm:$0xff] }
 0x31d   : > { %v7834_v25 = vmax.f32 %v2891_v62, %v2892_v49  ;;  %v3919_v33 = vpack.c.bf16 %v3111_v40, %v3109_v9  ;;  %v3113_v49 = vld [vmem:[%s8520_s3 + $0x88] sm:$0xff]  ;;  %v3135_v40 = vld [vmem:[%s8520_s3 + $0x138] sm:$0xff] }
 0x31e   : > { %v3133_v9 = vld [vmem:[%s8520_s3 + $0x128] sm:$0xff] }
 0x321   : > { %v2286_v16 = vpop.permute.xlu1 %2285  ;;  %v2808_v8 = vpop.f32.mrb[18].mxu1 }
 0x322   : > { %v2809_v20 = vadd.f32 %v2808_v8, %v7689_v2  ;;  %3825 = vmatprep.mubr.msk.f32.mxu1 %vm2352_vm12, %v2286_v16  ;;  %v2810_v29 = vpop.f32.mrb[19].mxu1  ;;  %v2302_v54 = vsel %vm623_vm4, %v2102_v61, %v2286_v16  ;;  %v3097_v2 = vld [vmem:[%s8520_s3 + $0x8] sm:$0xff]  ;;  %v3923_v61 = vpack.c.bf16 %v3115_v11, %v3113_v49  ;;  %v3114_v16 = vld [vmem:[%s8520_s3 + $0x90] sm:$0xff] }
 0x323   : > { %2862 = vmatmul.mubr.f32.gmra.mrb[40].mxu1 %v2302_v54  ;;  %v3907_v15 = vpack.c.bf16 %v3099_v53, %v3097_v2  ;;  %v3117_v8 = vld [vmem:[%s8520_s3 + $0xa8] sm:$0xff]  ;;  %v3925_v54 = vpack.c.bf16 %v3114_v16, %v3112_v42  ;;  %v7990_v16 = vld [vmem:[%s8519_s2] ss:$0 sm:$0xff] }
 0x324   : > { %v2899_v32 = vsel %vm2867_vm10, %v2809_v20, -inf  ;;  %v3119_v20 = vld [vmem:[%s8520_s3 + $0xb8] sm:$0xff] }
 0x325   : > { %v7843_v28 = vmax.f32 %v2898_v52, %v2899_v32  ;;  %v3096_v52 = vld [vmem:[%s8520_s3] sm:$0xff]  ;;  %3908 = vmatprep.subr.bf16.mxu1 %v3907_v15  ;;  %v3927_v32 = vpack.c.bf16 %v3119_v20, %v3117_v8  ;;  %v3137_v8 = vld [vmem:[%s8520_s3 + $0x148] sm:$0xff]  ;;  %v3139_v20 = vld [vmem:[%s8520_s3 + $0x158] sm:$0xff] }
 0x332   : > { %v2813_v62 = vpop.f32.mrb[20].mxu1 }
 0x333   : > { %v2814_v31 = vadd.f32 %v2813_v62, %v7695_v38  ;;  %v2815_v59 = vpop.f32.mrb[21].mxu1  ;;  %v3098_v38 = vld [vmem:[%s8520_s3 + $0x10] sm:$0xff]  ;;  %v3116_v62 = vld [vmem:[%s8520_s3 + $0xa0] sm:$0xff] }
 0x334   : > { %v3909_v60 = vpack.c.bf16 %v3098_v38, %v3096_v52  ;;  %v3121_v52 = vld [vmem:[%s8520_s3 + $0xc8] sm:$0xff] }
 0x335   : > { %v2906_v30 = vsel %vm2867_vm10, %v2814_v31, -inf  ;;  %v3118_v31 = vld [vmem:[%s8520_s3 + $0xb0] sm:$0xff] }
 0x336   : > { %v7847_v50 = vmax.f32 %v2905_v57, %v2906_v30  ;;  %3910 = vmatpush1.bf16.msra.mxu1 %v3909_v60  ;;  %v3102_v57 = vld [vmem:[%s8520_s3 + $0x30] sm:$0xff]  ;;  %v3929_v2 = vpack.c.bf16 %v3118_v31, %v3116_v62  ;;  %v3120_v60 = vld [vmem:[%s8520_s3 + $0xc0] sm:$0xff] }
 0x337   : > { %v3913_v4 = vpack.c.bf16 %v3102_v57, %v3100_v35  ;;  %3912 = vmatprep.subr.bf16.mxu1 %v3911_v34  ;;  %v3125_v57 = vld [vmem:[%s8520_s3 + $0xe8] sm:$0xff] }
 0x33a   : > { %3914 = vmatpush1.bf16.msra.mxu1 %v3913_v4  ;;  %v2871_v4 = vsel %vm2867_vm10, %v7799_v58, -inf  ;;  %v3131_v58 = vld [vmem:[%s8520_s3 + $0x118] sm:$0xff] }
 0x33b   : > { %3916 = vmatprep.subr.bf16.mxu1 %v3915_v44 }
 0x346   : > { %v2818_v6 = vpop.f32.mrb[22].mxu1 }
 0x347   : > { %v2819_v18 = vadd.f32 %v2818_v6, %v7702_v43  ;;  %v2820_v51 = vpop.f32.mrb[23].mxu1  ;;  %v3106_v43 = vld [vmem:[%s8520_s3 + $0x50] sm:$0xff]  ;;  %v3127_v6 = vld [vmem:[%s8520_s3 + $0xf8] sm:$0xff] }
 0x348   : > { %v3917_v10 = vpack.c.bf16 %v3106_v43, %v3104_v48  ;;  %v3126_v51 = vld [vmem:[%s8520_s3 + $0xf0] sm:$0xff]  ;;  %v3128_v48 = vld [vmem:[%s8520_s3 + $0x100] sm:$0xff] }
 0x349   : > { %v2913_v37 = vsel %vm2867_vm10, %v2819_v18, -inf  ;;  %v3935_v18 = vpack.c.bf16 %v3127_v6, %v3125_v57  ;;  %v3937_v45 = vpack.c.bf16 %v3126_v51, %v3124_v23  ;;  %v3130_v43 = vld [vmem:[%s8520_s3 + $0x110] sm:$0xff]  ;;  %v3144_v6 = vld [vmem:[%s8520_s3 + $0x180] sm:$0xff]  ;;  %v3149_v51 = vld [vmem:[%s8520_s3 + $0x1a8] sm:$0xff] }
 0x34a   : > { %v7887_v36 = vmax.f32 %v2912_v19, %v2913_v37  ;;  %3918 = vmatpush1.bf16.msra.mxu1 %v3917_v10  ;;  %v3110_v19 = vld [vmem:[%s8520_s3 + $0x70] sm:$0xff]  ;;  %v3129_v37 = vld [vmem:[%s8520_s3 + $0x108] sm:$0xff]  ;;  %v3941_v10 = vpack.c.bf16 %v3130_v43, %v3128_v48 }
 0x34b   : > { %v3921_v41 = vpack.c.bf16 %v3110_v19, %v3108_v5  ;;  %3920 = vmatprep.subr.bf16.mxu1 %v3919_v33  ;;  %v3939_v44 = vpack.c.bf16 %v3131_v58, %v3129_v37  ;;  %v3943_v5 = vpack.c.bf16 %v3135_v40, %v3133_v9  ;;  %v3132_v19 = vld [vmem:[%s8520_s3 + $0x120] sm:$0xff]  ;;  %v3150_v37 = vld [vmem:[%s8520_s3 + $0x1b0] sm:$0xff]  ;;  %v3155_v9 = vld [vmem:[%s8520_s3 + $0x1d8] sm:$0xff] }
 0x34e   : > { %3922 = vmatpush1.bf16.msra.mxu1 %v3921_v41  ;;  %v3134_v41 = vld [vmem:[%s8520_s3 + $0x130] sm:$0xff] }
 0x34f   : > { %3924 = vmatprep.subr.bf16.mxu1 %v3923_v61  ;;  %v3945_v42 = vpack.c.bf16 %v3134_v41, %v3132_v19 }
 0x352   : > { %v2823_v29 = vpop.f32.mrb[24].mxu1  ;;  %3926 = vmatpush1.bf16.msra.mxu1 %v3925_v54  ;;  %v3136_v54 = vld [vmem:[%s8520_s3 + $0x140] sm:$0xff] }
 0x353   : > { %v2824_v59 = vadd.f32 %v2823_v29, %v7710_v17  ;;  %v2825_v30 = vpop.f32.mrb[25].mxu1  ;;  %3928 = vmatprep.subr.bf16.mxu1 %v3927_v32  ;;  %v3123_v17 = vld [vmem:[%s8520_s3 + $0xd8] sm:$0xff]  ;;  %v3947_v29 = vpack.c.bf16 %v3139_v20, %v3137_v8  ;;  %v3138_v32 = vld [vmem:[%s8520_s3 + $0x150] sm:$0xff]  ;;  %v3156_v8 = vld [vmem:[%s8520_s3 + $0x1e0] sm:$0xff] }
 0x354   : > { %v3931_v38 = vpack.c.bf16 %v3123_v17, %v3121_v52  ;;  %v3949_v62 = vpack.c.bf16 %v3138_v32, %v3136_v54  ;;  %v3143_v30 = vld [vmem:[%s8520_s3 + $0x178] sm:$0xff]  ;;  %v3140_v52 = vld [vmem:[%s8520_s3 + $0x160] sm:$0xff]  ;;  %v3142_v17 = vld [vmem:[%s8520_s3 + $0x170] sm:$0xff] }
 0x355   : > { %v2920_v53 = vsel %vm2867_vm10, %v2824_v59, -inf  ;;  %v3141_v59 = vld [vmem:[%s8520_s3 + $0x168] sm:$0xff]  ;;  %v3158_v20 = vld [vmem:[%s8520_s3 + $0x1f0] sm:$0xff] }
 0x356   : > { %v7930_v15 = vmax.f32 %v2919_v0, %v2920_v53  ;;  %3930 = vmatpush1.bf16.msra.mxu1 %v3929_v2  ;;  %v3933_v0 = vpack.c.bf16 %v3122_v1, %v3120_v60  ;;  %v3951_v53 = vpack.c.bf16 %v3143_v30, %v3141_v59  ;;  %v3953_v60 = vpack.c.bf16 %v3142_v17, %v3140_v52 }
 0x357   : > { %3932 = vmatprep.subr.bf16.mxu1 %v3931_v38  ;;  %v2875_v1 = vsel %vm2867_vm10, %v7787_v14, -inf  ;;  %v2878_v14 = vsel %vm2867_vm10, %v7804_v55, -inf  ;;  %v3151_v55 = vld [vmem:[%s8520_s3 + $0x1b8] sm:$0xff]  ;;  %v2882_v30 = vsel %vm2867_vm10, %v7791_v46, -inf  ;;  %v2885_v17 = vsel %vm2867_vm10, %v7822_v47, -inf }
 0x358   : > { %v3163_v47 = vld [vmem:[%s8520_s3 + $0x218] sm:$0xff] }
 0x35a   : > { %v2748_v13 = vpop.f32.mrb[16].mxu0  ;;  %3934 = vmatpush1.bf16.msra.mxu1 %v3933_v0 }
 0x35b   : > { %v2869_v7 = vsel %vm2867_vm10, %v2748_v13, -inf  ;;  %v2750_v34 = vpop.f32.mrb[17].mxu0  ;;  %3936 = vmatprep.subr.bf16.mxu1 %v3935_v18 }
 0x35c   : > { %v2870_v35 = vmax.f32 %v2868_v22, %v2869_v7  ;;  %v3145_v34 = vld [vmem:[%s8520_s3 + $0x188] sm:$0xff] }
 0x35e   : > { %v2872_v26 = vmax.f32 %v2870_v35, %v2871_v4  ;;  %3938 = vmatpush1.bf16.msra.mxu1 %v3937_v45  ;;  %v3147_v35 = vld [vmem:[%s8520_s3 + $0x198] sm:$0xff]  ;;  %v3146_v4 = vld [vmem:[%s8520_s3 + $0x190] sm:$0xff]  ;;  %v3148_v45 = vld [vmem:[%s8520_s3 + $0x1a0] sm:$0xff] }
 0x35f   : > { %3940 = vmatprep.subr.bf16.mxu1 %v3939_v44  ;;  %v3955_v57 = vpack.c.bf16 %v3147_v35, %v3145_v34  ;;  %v3957_v23 = vpack.c.bf16 %v3146_v4, %v3144_v6  ;;  %v3961_v44 = vpack.c.bf16 %v3150_v37, %v3148_v45  ;;  %v3161_v35 = vld [vmem:[%s8520_s3 + $0x208] sm:$0xff] }
 0x362   : > { %3942 = vmatpush1.bf16.msra.mxu1 %v3941_v10  ;;  %v3153_v10 = vld [vmem:[%s8520_s3 + $0x1c8] sm:$0xff] }
 0x363   : > { %3944 = vmatprep.subr.bf16.mxu1 %v3943_v5  ;;  %v3152_v5 = vld [vmem:[%s8520_s3 + $0x1c0] sm:$0xff] }
 0x365   : > { %v2828_v33 = vpop.f32.mrb[26].mxu1 }
 0x366   : > { %v2829_v49 = vadd.f32 %v2828_v33, %v7721_v63  ;;  %v2830_v11 = vpop.f32.mrb[27].mxu1  ;;  %3946 = vmatpush1.bf16.msra.mxu1 %v3945_v42  ;;  %v3963_v33 = vpack.c.bf16 %v3155_v9, %v3153_v10  ;;  %v3159_v42 = vld [vmem:[%s8520_s3 + $0x1f8] sm:$0xff] }
 0x367   : > { %3948 = vmatprep.subr.bf16.mxu1 %v3947_v29  ;;  %v3157_v11 = vld [vmem:[%s8520_s3 + $0x1e8] sm:$0xff]  ;;  %v3969_v29 = vpack.c.bf16 %v3158_v20, %v3156_v8 }
 0x368   : > { %v2873_v61 = vsel %vm2867_vm10, %v2829_v49, -inf }
 0x369   : > { %v2874_v63 = vmax.f32 %v2872_v26, %v2873_v61  ;;  %v3959_v26 = vpack.c.bf16 %v3151_v55, %v3149_v51  ;;  %v3967_v61 = vpack.c.bf16 %v3159_v42, %v3157_v11 }
 0x36a   : > { %3950 = vmatpush1.bf16.msra.mxu1 %v3949_v62 }
 0x36b   : > { %v2931_v31 = vadd.f32 %v7990_v16, %v2874_v63  ;;  %3952 = vmatprep.subr.bf16.mxu1 %v3951_v53 }
 0x36d   : > { %vm2939_vm14 = vcmp.gt.f32.partialorder %v2931_v31, 0.0  ;;  %v2947_v2 = vmul.f32 0.1, %v2931_v31 }
 0x36e   : > { %3954 = vmatpush1.bf16.msra.mxu1 %v3953_v60 }
 0x36f   : > { %v2753_v38 = vpop.f32.mrb[18].mxu0  ;;  %v2955_v13 = vsel %vm2939_vm14, %v2931_v31, %v2947_v2  ;;  %3956 = vmatprep.subr.bf16.mxu1 %v3955_v57 }
 0x370   : > { %v2876_v0 = vsel %vm2867_vm10, %v2753_v38, -inf  ;;  %v2755_v22 = vpop.f32.mrb[19].mxu0  ;;  %2963 = vst.msk [vmem:[#allocation2] sm:$0xff] %vm2867_vm10, %v2955_v13 }
 0x371   : > { %v2877_v7 = vmax.f32 %v2875_v1, %v2876_v0 }
 0x372   : > { %3958 = vmatpush1.bf16.msra.mxu1 %v3957_v23 }
 0x373   : > { %v2879_v18 = vmax.f32 %v2877_v7, %v2878_v14  ;;  %3960 = vmatprep.subr.bf16.mxu1 %v3959_v26 }
 0x376   : > { %3962 = vmatpush1.bf16.msra.mxu1 %v3961_v44 }
 0x377   : > { %v2833_v58 = vpop.f32.mrb[28].mxu1  ;;  %3964 = vmatprep.subr.bf16.mxu1 %v3963_v33 }
 0x378   : > { %v2834_v48 = vadd.f32 %v2833_v58, %v7730_v3  ;;  %v2835_v43 = vpop.f32.mrb[29].mxu1  ;;  %v3154_v3 = vld [vmem:[%s8520_s3 + $0x1d0] sm:$0xff] }
 0x379   : > { %v3965_v41 = vpack.c.bf16 %v3154_v3, %v3152_v5 }
 0x37a   : > { %v2880_v40 = vsel %vm2867_vm10, %v2834_v48, -inf }
 0x37b   : > { %v2881_v19 = vmax.f32 %v2879_v18, %v2880_v40  ;;  %3966 = vmatpush1.bf16.msra.mxu1 %v3965_v41 }
 0x37c   : > { %3968 = vmatprep.subr.bf16.mxu1 %v3967_v61 }
 0x37d   : > { %v2932_v49 = vadd.f32 %v7990_v16, %v2881_v19 }
 0x37f   : > { %vm2940_vm15 = vcmp.gt.f32.partialorder %v2932_v49, 0.0  ;;  %v2948_v63 = vmul.f32 0.1, %v2932_v49  ;;  %3970 = vmatpush1.bf16.msra.mxu1 %v3969_v29 }
 0x381   : > { %v2956_v54 = vsel %vm2940_vm15, %v2932_v49, %v2948_v63 }
 0x382   : > { %2964 = vst.msk [vmem:[#allocation2 + $0x8] sm:$0xff] %vm2867_vm10, %v2956_v54 }
 0x389   : > { %v8075_v32 = vld [vmem:[#allocation2 + $0x8] sm:$0xff] }
 0x38a   : > { %v2978_v62 = vld [vmem:[#allocation2 + $0x1] sm:$0xff] }
 0x38b   : > { %v5063_v31 = vpack.i.bf16 %v2978_v62, %v8075_v32 }
 0x38d   : > { %5064 = vrot.lane.b32.xlu0 %v5063_v31, %s5170_s14 }
 0x39d   : > { %v2758_v59 = vpop.f32.mrb[20].mxu0 }
 0x39e   : > { %v2883_v2 = vsel %vm2867_vm10, %v2758_v59, -inf  ;;  %v2760_v53 = vpop.f32.mrb[21].mxu0 }
 0x39f   : > { %v2884_v52 = vmax.f32 %v2882_v30, %v2883_v2 }
 0x3a1   : > { %v2886_v38 = vmax.f32 %v2884_v52, %v2885_v17 }
 0x3a5   : > { %v2838_v60 = vpop.f32.mrb[30].mxu1 }
 0x3a6   : > { %v2839_v1 = vadd.f32 %v2838_v60, %v7747_v21  ;;  %v2840_v13 = vpop.f32.mrb[31].mxu1  ;;  %v3971_v21 = vpack.c.bf16 %v3163_v47, %v3161_v35 }
 0x3a7   : > { %v3160_v13 = vld [vmem:[%s8520_s3 + $0x200] sm:$0xff] }
 0x3a8   : > { %v2887_v0 = vsel %vm2867_vm10, %v2839_v1, -inf  ;;  %3972 = vmatprep.subr.bf16.mxu1 %v3971_v21 }
 0x3a9   : > { %v2888_v22 = vmax.f32 %v2886_v38, %v2887_v0 }
 0x3ab   : > { %v2933_v7 = vadd.f32 %v7990_v16, %v2888_v22 }
 0x3ad   : > { %vm2941_vm0 = vcmp.gt.f32.partialorder %v2933_v7, 0.0  ;;  %v2949_v34 = vmul.f32 0.1, %v2933_v7 }
 0x3af   : > { %v2957_v46 = vsel %vm2941_vm0, %v2933_v7, %v2949_v34 }
 0x3b0   : > { %2965 = vst.msk [vmem:[#allocation2 + $0x10] sm:$0xff] %vm2867_vm10, %v2957_v46 }
 0x3b7   : > { %v8094_v14 = vld [vmem:[#allocation2 + $0x10] sm:$0xff] }
 0x3b8   : > { %v8096_v57 = vld [vmem:[#allocation2 + $0x9] sm:$0xff] }
 0x3b9   : > { %v5068_v6 = vpack.i.bf16 %v8096_v57, %v8094_v14  ;;  %v2843_v4 = vpop.f32.mrb[32].mxu1  ;;  %v8141_v53 = vld [vmem:[#allocation2 + $0xa] sm:$0xff] }
 0x3ba   : > { %v2844_v18 = vadd.f32 %v2843_v4, %v7755_v12  ;;  %v2845_v23 = vpop.f32.mrb[33].mxu1  ;;  %v2972_v4 = vld [vmem:[#allocation2] sm:$0xff] }
 0x3bb   : > { %5069 = vrot.lane.b32.xlu1 %v5068_v6, %s5170_s14  ;;  %v2984_v6 = vld [vmem:[#allocation2 + $0x2] sm:$0xff] }
 0x3bc   : > { %v2894_v51 = vsel %vm2867_vm10, %v2844_v18, -inf }
 0x3bd   : > { %v2895_v55 = vmax.f32 %v7834_v25, %v2894_v51 }
 0x3bf   : > { %v2934_v26 = vadd.f32 %v7990_v16, %v2895_v55 }
 0x3c1   : > { %vm2942_vm1 = vcmp.gt.f32.partialorder %v2934_v26, 0.0  ;;  %v2950_v45 = vmul.f32 0.1, %v2934_v26 }
 0x3c3   : > { %v2958_v37 = vsel %vm2942_vm1, %v2934_v26, %v2950_v45  ;;  %v3164_v45 = vld [vmem:[%s8520_s3 + $0x220] sm:$0xff] }
 0x3c4   : > { %2966 = vst.msk [vmem:[#allocation2 + $0x18] sm:$0xff] %vm2867_vm10, %v2958_v37  ;;  %v3166_v37 = vld [vmem:[%s8520_s3 + $0x230] sm:$0xff] }
 0x3c5   : > { %v2848_v58 = vpop.f32.mrb[34].mxu1 }
 0x3c6   : > { %v2849_v44 = vadd.f32 %v2848_v58, %v7763_v39  ;;  %v2850_v48 = vpop.f32.mrb[35].mxu1  ;;  %v3169_v58 = vld [vmem:[%s8520_s3 + $0x248] sm:$0xff] }
 0x3c8   : > { %v2901_v12 = vsel %vm2867_vm10, %v2849_v44, -inf  ;;  %v3171_v44 = vld [vmem:[%s8520_s3 + $0x258] sm:$0xff] }
 0x3c9   : > { %v2902_v43 = vmax.f32 %v7843_v28, %v2901_v12  ;;  %v3977_v12 = vpack.c.bf16 %v3166_v37, %v3164_v45  ;;  %v3194_v45 = vld [vmem:[%s8520_s3 + $0x310] sm:$0xff]  ;;  %v3197_v37 = vld [vmem:[%s8520_s3 + $0x328] sm:$0xff] }
 0x3cb   : > { %v2935_v10 = vadd.f32 %v7990_v16, %v2902_v43  ;;  %v8110_v9 = vld [vmem:[#allocation2 + $0x18] sm:$0xff]  ;;  %v3979_v43 = vpack.c.bf16 %v3171_v44, %v3169_v58 }
 0x3cc   : > { %v8112_v25 = vld [vmem:[#allocation2 + $0x11] sm:$0xff] }
 0x3cd   : > { %v5073_v40 = vpack.i.bf16 %v8112_v25, %v8110_v9  ;;  %vm2943_vm2 = vcmp.gt.f32.partialorder %v2935_v10, 0.0  ;;  %v2951_v33 = vmul.f32 0.1, %v2935_v10  ;;  %v8188_v48 = vld [vmem:[#allocation2 + $0x12] sm:$0xff] }
 0x3ce   : > { %v3199_v58 = vld [vmem:[%s8520_s3 + $0x338] sm:$0xff] }
 0x3cf   : > { %5074 = vrot.lane.b32.xlu0 %v5073_v40, %s5170_s14  ;;  %v2959_v5 = vsel %vm2943_vm2, %v2935_v10, %v2951_v33  ;;  %v3168_v10 = vld [vmem:[%s8520_s3 + $0x240] sm:$0xff]  ;;  %v3170_v40 = vld [vmem:[%s8520_s3 + $0x250] sm:$0xff] }
 0x3d0   : > { %2967 = vst.msk [vmem:[#allocation2 + $0x20] sm:$0xff] %vm2867_vm10, %v2959_v5  ;;  %v3173_v5 = vld [vmem:[%s8520_s3 + $0x268] sm:$0xff] }
 0x3d7   : > { %v8118_v39 = vld [vmem:[#allocation2 + $0x20] sm:$0xff] }
 0x3d8   : > { %v8120_v3 = vld [vmem:[#allocation2 + $0x19] sm:$0xff] }
 0x3d9   : > { %v5078_v28 = vpack.i.bf16 %v8120_v3, %v8118_v39  ;;  %v8146_v17 = vld [vmem:[#allocation2 + $0x1a] sm:$0xff] }
 0x3da   : > { %v2853_v19 = vpop.f32.mrb[36].mxu1 }
 0x3db   : > { %5079 = vrot.lane.b32.xlu1 %v5078_v28, %s5170_s14  ;;  %v2854_v41 = vadd.f32 %v2853_v19, %v7766_v24  ;;  %v2855_v49 = vpop.f32.mrb[37].mxu1  ;;  %v3175_v28 = vld [vmem:[%s8520_s3 + $0x278] sm:$0xff] }
 0x3dd   : > { %v2908_v11 = vsel %vm2867_vm10, %v2854_v41, -inf }
 0x3de   : > { %v2909_v42 = vmax.f32 %v7847_v50, %v2908_v11 }
 0x3e0   : > { %v2936_v61 = vadd.f32 %v7990_v16, %v2909_v42  ;;  %v3981_v42 = vpack.c.bf16 %v3170_v40, %v3168_v10  ;;  %v3198_v10 = vld [vmem:[%s8520_s3 + $0x330] sm:$0xff]  ;;  %v3201_v40 = vld [vmem:[%s8520_s3 + $0x348] sm:$0xff] }
 0x3e2   : > { %vm2944_vm3 = vcmp.gt.f32.partialorder %v2936_v61, 0.0  ;;  %v2952_v8 = vmul.f32 0.1, %v2936_v61 }
 0x3e4   : > { %v2960_v20 = vsel %vm2944_vm3, %v2936_v61, %v2952_v8 }
 0x3e5   : > { %2968 = vst.msk [vmem:[#allocation2 + $0x28] sm:$0xff] %vm2867_vm10, %v2960_v20  ;;  %v3983_v20 = vpack.c.bf16 %v3175_v28, %v3173_v5  ;;  %v3203_v5 = vld [vmem:[%s8520_s3 + $0x358] sm:$0xff] }
 0x3ea   : > { %v2858_v63 = vpop.f32.mrb[38].mxu1 }
 0x3eb   : > { %v2859_v29 = vadd.f32 %v2858_v63, %v7779_v56  ;;  %v2860_v54 = vpop.f32.mrb[39].mxu1  ;;  %v3172_v63 = vld [vmem:[%s8520_s3 + $0x260] sm:$0xff] }
 0x3ec   : > { %v8131_v62 = vld [vmem:[#allocation2 + $0x28] sm:$0xff] }
 0x3ed   : > { %v8133_v31 = vld [vmem:[#allocation2 + $0x21] sm:$0xff]  ;;  %v2915_v24 = vsel %vm2867_vm10, %v2859_v29, -inf  ;;  %v3174_v29 = vld [vmem:[%s8520_s3 + $0x270] sm:$0xff] }
 0x3ee   : > { %v5083_v50 = vpack.i.bf16 %v8133_v31, %v8131_v62  ;;  %v2916_v59 = vmax.f32 %v7887_v36, %v2915_v24  ;;  %v8198_v33 = vld [vmem:[#allocation2 + $0x22] sm:$0xff]  ;;  %v3179_v24 = vld [vmem:[%s8520_s3 + $0x298] sm:$0xff] }
 0x3ef   : > { %v3177_v54 = vld [vmem:[%s8520_s3 + $0x288] sm:$0xff] }
 0x3f0   : > { %5084 = vrot.lane.b32.xlu0 %v5083_v50, %s5170_s14  ;;  %v2937_v30 = vadd.f32 %v7990_v16, %v2916_v59  ;;  %v3985_v50 = vpack.c.bf16 %v3174_v29, %v3172_v63  ;;  %v3987_v59 = vpack.c.bf16 %v3179_v24, %v3177_v54  ;;  %v3204_v54 = vld [vmem:[%s8520_s3 + $0x360] sm:$0xff]  ;;  %v3206_v24 = vld [vmem:[%s8520_s3 + $0x370] sm:$0xff] }
 0x3f2   : > { %vm2945_vm4 = vcmp.gt.f32.partialorder %v2937_v30, 0.0  ;;  %v2953_v2 = vmul.f32 0.1, %v2937_v30 }
 0x3f4   : > { %3050 = vrot.lane.b32.xlu0 %v8141_v53, %s5170_s14  ;;  %v2961_v56 = vsel %vm2945_vm4, %v2937_v30, %v2953_v2  ;;  %v3176_v30 = vld [vmem:[%s8520_s3 + $0x280] sm:$0xff]  ;;  %v3178_v2 = vld [vmem:[%s8520_s3 + $0x290] sm:$0xff] }
 0x3f5   : > { %2969 = vst.msk [vmem:[#allocation2 + $0x30] sm:$0xff] %vm2867_vm10, %v2961_v56  ;;  %v3181_v56 = vld [vmem:[%s8520_s3 + $0x2a8] sm:$0xff] }
 0x3f6   : > { %v2863_v52 = vpop.f32.mrb[40].mxu1 }
 0x3f7   : > { %v2864_v38 = vadd.f32 %v2863_v52, %v7782_v27  ;;  %v2865_v36 = vpop.f32.mrb[41].mxu1  ;;  %v3162_v27 = vld [vmem:[%s8520_s3 + $0x210] sm:$0xff]  ;;  %v3183_v52 = vld [vmem:[%s8520_s3 + $0x2b8] sm:$0xff] }
 0x3f8   : > { %3054 = vrot.lane.b32.xlu0 %v8146_v17, %s5170_s14  ;;  %v3973_v18 = vpack.c.bf16 %v3162_v27, %v3160_v13  ;;  %v3991_v36 = vpack.c.bf16 %v3183_v52, %v3181_v56  ;;  %v3185_v13 = vld [vmem:[%s8520_s3 + $0x2c8] sm:$0xff] }
 0x3f9   : > { %v2922_v60 = vsel %vm2867_vm10, %v2864_v38, -inf  ;;  %v3989_v38 = vpack.c.bf16 %v3178_v2, %v3176_v30  ;;  %v4017_v2 = vpack.c.bf16 %v3206_v24, %v3204_v54 }
 0x3fa   : > { %v2923_v1 = vmax.f32 %v7930_v15, %v2922_v60  ;;  %v3165_v15 = vld [vmem:[%s8520_s3 + $0x228] sm:$0xff]  ;;  %v3180_v60 = vld [vmem:[%s8520_s3 + $0x2a0] sm:$0xff] }
 0x3fc   : > { %v2938_v0 = vadd.f32 %v7990_v16, %v2923_v1  ;;  %v8157_v22 = vld [vmem:[#allocation2 + $0x29] sm:$0xff]  ;;  %v3167_v16 = vld [vmem:[%s8520_s3 + $0x238] sm:$0xff] }
 0x3fd   : > { %v8159_v7 = vld [vmem:[#allocation2 + $0x30] sm:$0xff]  ;;  %v3975_v26 = vpack.c.bf16 %v3167_v16, %v3165_v15  ;;  %v3189_v16 = vld [vmem:[%s8520_s3 + $0x2e8] sm:$0xff] }
 0x3fe   : > { %v5088_v46 = vpack.i.bf16 %v8157_v22, %v8159_v7  ;;  %vm2946_vm5 = vcmp.gt.f32.partialorder %v2938_v0, 0.0  ;;  %v2954_v35 = vmul.f32 0.1, %v2938_v0  ;;  %v8208_v19 = vld [vmem:[#allocation2 + $0x2a] sm:$0xff] }
 0x3ff   : > { %v5065_v34 = vpop.permute.xlu0 %5064  ;;  %v3182_v1 = vld [vmem:[%s8520_s3 + $0x2b0] sm:$0xff] }
 0x400   : > { %v5067_v47 = vunpack.i.h.bf16 %v5065_v34  ;;  %v5066_v21 = vunpack.i.l.bf16 %v5065_v34  ;;  %5089 = vrot.lane.b32.xlu1 %v5088_v46, %s5170_s14  ;;  %v2962_v23 = vsel %vm2946_vm5, %v2938_v0, %v2954_v35  ;;  %v3187_v0 = vld [vmem:[%s8520_s3 + $0x2d8] sm:$0xff]  ;;  %v3993_v27 = vpack.c.bf16 %v3182_v1, %v3180_v60  ;;  %v3184_v46 = vld [vmem:[%s8520_s3 + $0x2c0] sm:$0xff]  ;;  %v3186_v15 = vld [vmem:[%s8520_s3 + $0x2d0] sm:$0xff] }
 0x401   : > { %2970 = vst.msk [vmem:[#allocation2 + $0x38] sm:$0xff] %vm2867_vm10, %v2962_v23  ;;  %v3995_v34 = vpack.c.bf16 %v3187_v0, %v3185_v13  ;;  %v3191_v35 = vld [vmem:[%s8520_s3 + $0x2f8] sm:$0xff]  ;;  %v3210_v60 = vld [vmem:[%s8520_s3 + $0x390] sm:$0xff]  ;;  %v3213_v1 = vld [vmem:[%s8520_s3 + $0x3a8] sm:$0xff] }
 0x402   : > { %v3082_v51 = vsel %vm2867_vm10, %v2984_v6, %v5066_v21  ;;  %v3076_v55 = vsel %vm2867_vm10, %v2972_v4, %v5067_v47  ;;  %v3997_v47 = vpack.c.bf16 %v3186_v15, %v3184_v46  ;;  %v3999_v21 = vpack.c.bf16 %v3191_v35, %v3189_v16  ;;  %v3188_v6 = vld [vmem:[%s8520_s3 + $0x2e0] sm:$0xff]  ;;  %v3190_v4 = vld [vmem:[%s8520_s3 + $0x2f0] sm:$0xff]  ;;  %v3195_v23 = vld [vmem:[%s8520_s3 + $0x318] sm:$0xff] }
 0x403   : > { %3317 = vmatprep.mubr.f32.mxu1 %v3082_v51  ;;  %v4001_v51 = vpack.c.bf16 %v3190_v4, %v3188_v6  ;;  %v3215_v13 = vld [vmem:[%s8520_s3 + $0x3b8] sm:$0xff]  ;;  %v3212_v15 = vld [vmem:[%s8520_s3 + $0x3a0] sm:$0xff]  ;;  %v3214_v16 = vld [vmem:[%s8520_s3 + $0x3b0] sm:$0xff] }
 0x404   : > { %3318 = vmatmul.mubr.f32.vlgmr.msra.gmra.mrb[42].mxu1 %v3076_v55  ;;  %3052 = vrot.lane.b32.xlu1 %v8188_v48, %s5170_s14  ;;  %v4023_v46 = vpack.c.bf16 %v3215_v13, %v3213_v1  ;;  %v4025_v35 = vpack.c.bf16 %v3214_v16, %v3212_v15  ;;  %v3218_v6 = vld [vmem:[%s8520_s3 + $0x3d0] sm:$0xff]  ;;  %v3221_v4 = vld [vmem:[%s8520_s3 + $0x3e8] sm:$0xff]  ;;  %v3228_v1 = vld [vmem:[%s8520_s3 + $0x420] sm:$0xff] }
 0x405   : > { %3974 = vmatpush1.bf16.msra.mxu1 %v3973_v18  ;;  %v3193_v18 = vld [vmem:[%s8520_s3 + $0x308] sm:$0xff]  ;;  %v3230_v13 = vld [vmem:[%s8520_s3 + $0x430] sm:$0xff] }
 0x406   : > { %3976 = vmatprep.subr.bf16.mxu1 %v3975_v26  ;;  %v4003_v55 = vpack.c.bf16 %v3195_v23, %v3193_v18  ;;  %v3192_v26 = vld [vmem:[%s8520_s3 + $0x300] sm:$0xff]  ;;  %v3223_v18 = vld [vmem:[%s8520_s3 + $0x3f8] sm:$0xff]  ;;  %v4041_v15 = vpack.c.bf16 %v3230_v13, %v3228_v1 }
 0x407   : > { %v4005_v44 = vpack.c.bf16 %v3194_v45, %v3192_v26  ;;  %v3222_v26 = vld [vmem:[%s8520_s3 + $0x3f0] sm:$0xff]  ;;  %v3225_v45 = vld [vmem:[%s8520_s3 + $0x408] sm:$0xff] }
 0x408   : > { %3056 = vrot.lane.b32.xlu1 %v8198_v33, %s5170_s14  ;;  %v8210_v41 = vld [vmem:[#allocation2 + $0x31] sm:$0xff]  ;;  %v2994_v11 = vld [vmem:[#allocation2 + $0x39] sm:$0xff] }
 0x409   : > { %3978 = vmatpush1.bf16.msra.mxu1 %v3977_v12  ;;  %v8212_v49 = vld [vmem:[#allocation2 + $0x32] sm:$0xff]  ;;  %v5093_v61 = vpack.i.bf16 %v8208_v19, %v8210_v41  ;;  %v4007_v12 = vpack.c.bf16 %v3199_v58, %v3197_v37 }
 0x40a   : > { %3980 = vmatprep.subr.bf16.mxu1 %v3979_v43  ;;  %v5098_v8 = vpack.i.bf16 %v8212_v49, %v2994_v11  ;;  %v3196_v43 = vld [vmem:[%s8520_s3 + $0x320] sm:$0xff]  ;;  %v4011_v11 = vpack.c.bf16 %v3203_v5, %v3201_v40  ;;  %v3227_v37 = vld [vmem:[%s8520_s3 + $0x418] sm:$0xff] }
 0x40b   : > { %5094 = vrot.lane.b32.xlu0 %v5093_v61, %s5170_s14  ;;  %v4009_v28 = vpack.c.bf16 %v3198_v10, %v3196_v43  ;;  %v3202_v61 = vld [vmem:[%s8520_s3 + $0x350] sm:$0xff] }
 0x40c   : > { %5099 = vrot.lane.b32.xlu1 %v5098_v8, %s5170_s14  ;;  %v3205_v8 = vld [vmem:[%s8520_s3 + $0x368] sm:$0xff] }
 0x40d   : > { %3982 = vmatpush1.bf16.msra.mxu1 %v3981_v42  ;;  %v3200_v42 = vld [vmem:[%s8520_s3 + $0x340] sm:$0xff] }
 0x40e   : > { %3984 = vmatprep.subr.bf16.mxu1 %v3983_v20  ;;  %v3207_v20 = vld [vmem:[%s8520_s3 + $0x378] sm:$0xff]  ;;  %v4013_v63 = vpack.c.bf16 %v3202_v61, %v3200_v42 }
 0x40f   : > { %v4015_v29 = vpack.c.bf16 %v3207_v20, %v3205_v8 }
 0x411   : > { %3986 = vmatpush1.bf16.msra.mxu1 %v3985_v50  ;;  %v3209_v50 = vld [vmem:[%s8520_s3 + $0x388] sm:$0xff] }
 0x412   : > { %3988 = vmatprep.subr.bf16.mxu1 %v3987_v59  ;;  %v3211_v59 = vld [vmem:[%s8520_s3 + $0x398] sm:$0xff] }
 0x415   : > { %3990 = vmatpush1.bf16.msra.mxu1 %v3989_v38  ;;  %v4019_v38 = vpack.c.bf16 %v3211_v59, %v3209_v50 }
 0x416   : > { %3992 = vmatprep.subr.bf16.mxu1 %v3991_v36  ;;  %v3208_v36 = vld [vmem:[%s8520_s3 + $0x380] sm:$0xff] }
 0x419   : > { %3994 = vmatpush1.bf16.msra.mxu1 %v3993_v27 }
 0x41a   : > { %3996 = vmatprep.subr.bf16.mxu1 %v3995_v34  ;;  %v4021_v34 = vpack.c.bf16 %v3210_v60, %v3208_v36 }
 0x41d   : > { %3998 = vmatpush1.bf16.msra.mxu1 %v3997_v47 }
 0x41e   : > { %4000 = vmatprep.subr.bf16.mxu1 %v3999_v21  ;;  %v3216_v21 = vld [vmem:[%s8520_s3 + $0x3c0] sm:$0xff] }
 0x41f   : > { %v4029_v23 = vpack.c.bf16 %v3218_v6, %v3216_v21  ;;  %v3239_v21 = vld [vmem:[%s8520_s3 + $0x478] sm:$0xff] }
 0x421   : > { %4002 = vmatpush1.bf16.msra.mxu1 %v4001_v51  ;;  %v4031_v51 = vpack.c.bf16 %v3223_v18, %v3221_v4 }
 0x422   : > { %4004 = vmatprep.subr.bf16.mxu1 %v4003_v55  ;;  %v3220_v55 = vld [vmem:[%s8520_s3 + $0x3e0] sm:$0xff] }
 0x423   : > { %v4033_v58 = vpack.c.bf16 %v3222_v26, %v3220_v55 }
 0x425   : > { %4006 = vmatpush1.bf16.msra.mxu1 %v4005_v44  ;;  %v4035_v44 = vpack.c.bf16 %v3227_v37, %v3225_v45 }
 0x426   : > { %4008 = vmatprep.subr.bf16.mxu1 %v4007_v12 }
 0x429   : > { %4010 = vmatpush1.bf16.msra.mxu1 %v4009_v28 }
 0x42a   : > { %4012 = vmatprep.subr.bf16.mxu1 %v4011_v11 }
 0x42d   : > { %v5070_v30 = vpop.permute.xlu1 %5069  ;;  %4014 = vmatpush1.bf16.msra.mxu1 %v4013_v63 }
 0x42e   : > { %v5072_v56 = vunpack.i.h.bf16 %v5070_v30  ;;  %v5071_v52 = vunpack.i.l.bf16 %v5070_v30  ;;  %4016 = vmatprep.subr.bf16.mxu1 %v4015_v29 }
 0x430   : > { %v3083_v0 = vsel %vm2867_vm10, %v8141_v53, %v5071_v52  ;;  %v3077_v27 = vsel %vm2867_vm10, %v8075_v32, %v5072_v56  ;;  %v3217_v53 = vld [vmem:[%s8520_s3 + $0x3c8] sm:$0xff]  ;;  %v3219_v32 = vld [vmem:[%s8520_s3 + $0x3d8] sm:$0xff]  ;;  %v3226_v56 = vld [vmem:[%s8520_s3 + $0x410] sm:$0xff] }
 0x431   : > { %3323 = vmatprep.mubr.f32.mxu1 %v3083_v0  ;;  %4018 = vmatpush1.bf16.msra.mxu1 %v4017_v2  ;;  %v4027_v47 = vpack.c.bf16 %v3219_v32, %v3217_v53  ;;  %v3224_v2 = vld [vmem:[%s8520_s3 + $0x400] sm:$0xff]  ;;  %v3229_v52 = vld [vmem:[%s8520_s3 + $0x428] sm:$0xff] }
 0x432   : > { %3324 = vmatmul.mubr.f32.gmra.mrb[44].mxu1 %v3077_v27  ;;  %4020 = vmatprep.subr.bf16.mxu1 %v4019_v38  ;;  %v3231_v38 = vld [vmem:[%s8520_s3 + $0x438] sm:$0xff]  ;;  %v4037_v36 = vpack.c.bf16 %v3226_v56, %v3224_v2  ;;  %v3233_v27 = vld [vmem:[%s8520_s3 + $0x448] sm:$0xff]  ;;  %v3232_v53 = vld [vmem:[%s8520_s3 + $0x440] sm:$0xff] }
 0x433   : > { %v4039_v60 = vpack.c.bf16 %v3231_v38, %v3229_v52 }
 0x435   : > { %4022 = vmatpush1.bf16.msra.mxu1 %v4021_v34  ;;  %v3235_v34 = vld [vmem:[%s8520_s3 + $0x458] sm:$0xff] }
 0x436   : > { %4024 = vmatprep.subr.bf16.mxu1 %v4023_v46  ;;  %v4043_v16 = vpack.c.bf16 %v3235_v34, %v3233_v27 }
 0x439   : > { %4026 = vmatpush1.bf16.msra.mxu1 %v4025_v35 }
 0x43a   : > { %4028 = vmatprep.subr.bf16.mxu1 %v4027_v47  ;;  %v3237_v47 = vld [vmem:[%s8520_s3 + $0x468] sm:$0xff] }
 0x43b   : > { %v4047_v18 = vpack.c.bf16 %v3239_v21, %v3237_v47 }
 0x43d   : > { %4030 = vmatpush1.bf16.msra.mxu1 %v4029_v23  ;;  %v3236_v23 = vld [vmem:[%s8520_s3 + $0x460] sm:$0xff] }
 0x43e   : > { %4032 = vmatprep.subr.bf16.mxu1 %v4031_v51 }
 0x441   : > { %v5075_v12 = vpop.permute.xlu0 %5074  ;;  %4034 = vmatpush1.bf16.msra.mxu1 %v4033_v58 }
 0x442   : > { %v5077_v43 = vunpack.i.h.bf16 %v5075_v12  ;;  %v5076_v10 = vunpack.i.l.bf16 %v5075_v12  ;;  %4036 = vmatprep.subr.bf16.mxu1 %v4035_v44 }
 0x444   : > { %v3084_v40 = vsel %vm2867_vm10, %v8188_v48, %v5076_v10  ;;  %v3078_v5 = vsel %vm2867_vm10, %v8094_v14, %v5077_v43  ;;  %v2993_v10 = vld [vmem:[#allocation2 + $0x38] sm:$0xff] }
 0x445   : > { %3329 = vmatprep.mubr.f32.mxu1 %v3084_v40 }
 0x446   : > { %3330 = vmatmul.mubr.f32.gmra.mrb[46].mxu1 %v3078_v5 }
 0x44d   : > { %v5080_v28 = vpop.permute.xlu1 %5079 }
 0x44e   : > { %v5082_v11 = vunpack.i.h.bf16 %v5080_v28  ;;  %v5081_v42 = vunpack.i.l.bf16 %v5080_v28 }
 0x450   : > { %v3085_v61 = vsel %vm2867_vm10, %v8146_v17, %v5081_v42  ;;  %v3079_v8 = vsel %vm2867_vm10, %v8110_v9, %v5082_v11 }
 0x451   : > { %3335 = vmatprep.mubr.f32.mxu1 %v3085_v61 }
 0x452   : > { %3336 = vmatmul.mubr.f32.gmra.mrb[48].mxu1 %v3079_v8 }
 0x462   : > { %v5085_v20 = vpop.permute.xlu0 %5084 }
 0x463   : > { %v5087_v63 = vunpack.i.h.bf16 %v5085_v20  ;;  %v5086_v29 = vunpack.i.l.bf16 %v5085_v20 }
 0x465   : > { %v3086_v54 = vsel %vm2867_vm10, %v8198_v33, %v5086_v29  ;;  %v3080_v14 = vsel %vm2867_vm10, %v8118_v39, %v5087_v63 }
 0x466   : > { %3341 = vmatprep.mubr.f32.mxu1 %v3086_v54  ;;  %v3051_v39 = vpop.permute.xlu0 %3050 }
 0x467   : > { %3342 = vmatmul.mubr.f32.gmra.mrb[50].mxu1 %v3080_v14  ;;  %v3088_v0 = vsel %vm2867_vm10, %v8096_v57, %v3051_v39  ;;  %v3234_v57 = vld [vmem:[%s8520_s3 + $0x450] sm:$0xff] }
 0x468   : > { %v4045_v4 = vpack.c.bf16 %v3234_v57, %v3232_v53 }
 0x46a   : > { %v3055_v46 = vpop.permute.xlu0 %3054 }
 0x46b   : > { %v3090_v51 = vsel %vm2867_vm10, %v8120_v3, %v3055_v46 }
 0x472   : > { %v5090_v24 = vpop.permute.xlu1 %5089 }
 0x473   : > { %v5092_v50 = vunpack.i.h.bf16 %v5090_v24  ;;  %v5091_v59 = vunpack.i.l.bf16 %v5090_v24 }
 0x475   : > { %v3087_v30 = vsel %vm2867_vm10, %v8208_v19, %v5091_v59  ;;  %v3081_v9 = vsel %vm2867_vm10, %v8131_v62, %v5092_v50 }
 0x476   : > { %3347 = vmatprep.mubr.f32.mxu1 %v3087_v30  ;;  %v3053_v62 = vpop.permute.xlu1 %3052 }
 0x477   : > { %3348 = vmatmul.mubr.f32.gmra.mrb[52].mxu1 %v3081_v9  ;;  %v3089_v35 = vsel %vm2867_vm10, %v8112_v25, %v3053_v62  ;;  %v3238_v25 = vld [vmem:[%s8520_s3 + $0x470] sm:$0xff] }
 0x478   : > { %3418 = vmatprep.mubr.f32.mxu1 %v3078_v5  ;;  %v4049_v45 = vpack.c.bf16 %v3238_v25, %v3236_v23 }
 0x47a   : > { %v3057_v32 = vpop.permute.xlu1 %3056 }
 0x47b   : > { %3419 = vmatmul.mubr.f32.vlgmr.msra.gmra.mrb[42].mxu1 %v3088_v0  ;;  %v3091_v58 = vsel %vm2867_vm10, %v8133_v31, %v3057_v32  ;;  %v8843_v31 = vmov 0.0  }
 0x47c   : > { %4038 = vmatpush1.bf16.msra.mxu1 %v4037_v36  ;;  %3424 = vmatprep.mubr.f32.mxu1 %v3079_v8  ;;  %v3630_v8 = vld [vmem:[%s8521_s4] sm:$0x3] }
 0x47d   : > { %4040 = vmatprep.subr.bf16.mxu1 %v4039_v60  ;;  %v5095_v6 = vpop.permute.xlu0 %5094 }
 0x47e   : > { %v5096_v55 = vunpack.i.l.bf16 %v5095_v6  ;;  %v5100_v26 = vpop.permute.xlu1 %5099  ;;  %v5097_v37 = vunpack.i.h.bf16 %v5095_v6 }
 0x47f   : > { %3425 = vmatmul.mubr.f32.gmra.mrb[44].mxu1 %v3089_v35  ;;  %v5101_v44 = vunpack.i.l.bf16 %v5100_v26  ;;  %v5102_v43 = vunpack.i.h.bf16 %v5100_v26 }
 0x480   : > { %3430 = vmatprep.mubr.f32.mxu1 %v3080_v14  ;;  %4042 = vmatpush1.bf16.msra.mxu1 %v4041_v15  ;;  %v3094_v12 = vsel %vm2867_vm10, %v8159_v7, %v5096_v55  ;;  %v3092_v3 = vsel %vm2867_vm10, %v8157_v22, %v5097_v37  ;;  %v2995_v22 = vld [vmem:[#allocation2 + $0x3a] sm:$0xff] }
 0x481   : > { %4044 = vmatprep.subr.bf16.mxu1 %v4043_v16  ;;  %v3095_v40 = vsel %vm2867_vm10, %v2993_v10, %v5101_v44  ;;  %v3093_v5 = vsel %vm2867_vm10, %v8210_v41, %v5102_v43 }
 0x483   : > { %3431 = vmatmul.mubr.f32.gmra.mrb[46].mxu1 %v3090_v51 }
 0x484   : > { %3436 = vmatprep.mubr.f32.mxu1 %v3081_v9  ;;  %4046 = vmatpush1.bf16.msra.mxu1 %v4045_v4 }
 0x485   : > { %4048 = vmatprep.subr.bf16.mxu1 %v4047_v18 }
 0x487   : > { %3437 = vmatmul.mubr.f32.gmra.mrb[48].mxu1 %v3091_v58 }
 0x488   : > { %3442 = vmatprep.mubr.f32.mxu1 %v3094_v12  ;;  %4050 = vmatpush1.bf16.msra.mxu1 %v4049_v45 }
 0x48b   : > { %3443 = vmatmul.mubr.f32.gmra.mrb[50].mxu1 %v3092_v3 }
 0x48c   : > { %3448 = vmatprep.mubr.f32.mxu1 %v3095_v40 }
 0x48f   : > { %3449 = vmatmul.mubr.f32.gmra.mrb[52].mxu1 %v3093_v5 }
 0x490   : > { %3519 = vmatprep.mubr.f32.mxu1 %v8843_v31 }
 0x493   : > { %3827 = vmatmul.mubr.msk.f32.vlgmr.msra.gmra.mrb[42].mxu1 %vm2867_vm10, %v8188_v48 }
 0x494   : > { %3525 = vmatprep.mubr.f32.mxu1 %v8843_v31 }
 0x497   : > { %3828 = vmatmul.mubr.msk.f32.gmra.mrb[44].mxu1 %vm2867_vm10, %v8146_v17  ;;  %v3632_v17 = vlaneseq }
 0x498   : > { %3531 = vmatprep.mubr.f32.mxu1 %v8843_v31 }
 0x499   : > { %v3633_v41 = vshrl.u32 %v3632_v17, 7 }
 0x49b   : > { %3829 = vmatmul.mubr.msk.f32.gmra.mrb[46].mxu1 %vm2867_vm10, %v8198_v33  ;;  %v3638_v20 = vsub.s32 1, %v3633_v41 }
 0x49c   : > { %3537 = vmatprep.mubr.f32.mxu1 %v8843_v31 }
 0x49d   : > { %v8474_v2 = vrot.slane %v3630_v8, %v3638_v20 }
 0x49f   : > { %3830 = vmatmul.mubr.msk.f32.gmra.mrb[48].mxu1 %vm2867_vm10, %v8208_v19  ;;  %v3634_v19 = vsub.s32 0, %v3633_v41 }
 0x4a0   : > { %3543 = vmatprep.mubr.f32.mxu1 %v8843_v31 }
 0x4a1   : > { %v8472_v59 = vrot.slane %v3630_v8, %v3634_v19 }
 0x4a3   : > { %3831 = vmatmul.mubr.msk.f32.gmra.mrb[50].mxu1 %vm2867_vm10, %v8212_v49 }
 0x4a4   : > { %3549 = vmatprep.mubr.f32.mxu1 %v8843_v31 }
 0x4a7   : > { %3832 = vmatmul.mubr.msk.f32.gmra.mrb[52].mxu1 %vm2867_vm10, %v2995_v22  ;;  %vm3679_vm10 = vcmask 522244  }
 0x4a8   : > { %vm8489_vm12 = vmor %vm3679_vm10, %vm3678_vm8 }
 0x566   : > { %v3521_v7 = vpop.f32.mrb[42].mxu1 }
 0x567   : > { %v3523_v48 = vpop.f32.mrb[43].mxu1 }
 0x56a   : > { %v3527_v33 = vpop.f32.mrb[44].mxu1 }
 0x56b   : > { %v3556_v28 = vmax.f32 %v3521_v7, %v3527_v33  ;;  %v3529_v11 = vpop.f32.mrb[45].mxu1 }
 0x56c   : > { %v3557_v42 = vmax.f32 %v3523_v48, %v3529_v11 }
 0x56d   : > { %v3560_v61 = vrot.slane %v3556_v28, 1 }
 0x56e   : > { %v3561_v49 = vrot.slane %v3557_v42, 1  ;;  %v3533_v63 = vpop.f32.mrb[46].mxu1 }
 0x56f   : > { %v3564_v29 = vmax.f32 %v3556_v28, %v3560_v61  ;;  %v3535_v54 = vpop.f32.mrb[47].mxu1 }
 0x570   : > { %v3565_v14 = vmax.f32 %v3557_v42, %v3561_v49 }
 0x571   : > { %v3568_v24 = vrot.slane %v3564_v29, 1  ;;  %v3572_v50 = vrot.slane %v3564_v29, 2 }
 0x572   : > { %v3569_v30 = vrot.slane %v3565_v14, 1  ;;  %v3573_v9 = vrot.slane %v3565_v14, 2  ;;  %v3539_v56 = vpop.f32.mrb[48].mxu1 }
 0x573   : > { %v3577_v39 = vsel %vm3576_vm6, %v3564_v29, %v3568_v24  ;;  %v3582_v52 = vmax.f32 %v3533_v63, %v3539_v56  ;;  %v3541_v38 = vpop.f32.mrb[49].mxu1 }
 0x574   : > { %v3580_v62 = vsel %vm3579_vm7, %v3577_v39, %v3572_v50  ;;  %v3578_v36 = vsel %vm3576_vm6, %v3565_v14, %v3569_v30  ;;  %v3583_v60 = vmax.f32 %v3535_v54, %v3541_v38 }
 0x575   : > { %v3642_v1 = vadd.f32 %v8472_v59, %v3580_v62  ;;  %v3581_v13 = vsel %vm3579_vm7, %v3578_v36, %v3573_v9  ;;  %v3586_v0 = vrot.slane %v3582_v52, 1 }
 0x576   : > { %v3643_v27 = vadd.f32 %v8474_v2, %v3581_v13  ;;  %v3587_v34 = vrot.slane %v3583_v60, 1  ;;  %v3545_v46 = vpop.f32.mrb[50].mxu1 }
 0x577   : > { %vm3648_vm9 = vcmp.gt.f32.partialorder %v3642_v1, 0.0  ;;  %v3654_v15 = vmul.f32 0.1, %v3642_v1  ;;  %v3590_v16 = vmax.f32 %v3582_v52, %v3586_v0  ;;  %v3547_v53 = vpop.f32.mrb[51].mxu1 }
 0x578   : > { %vm3649_vm11 = vcmp.gt.f32.partialorder %v3643_v27, 0.0  ;;  %v3655_v57 = vmul.f32 0.1, %v3643_v27  ;;  %v3591_v32 = vmax.f32 %v3583_v60, %v3587_v34 }
 0x579   : > { %v3660_v35 = vsel %vm3648_vm9, %v3642_v1, %v3654_v15  ;;  %v3594_v47 = vrot.slane %v3590_v16, 1  ;;  %v3598_v21 = vrot.slane %v3590_v16, 2 }
 0x57a   : > { %v3661_v6 = vsel %vm3649_vm11, %v3643_v27, %v3655_v57  ;;  %v3595_v18 = vrot.slane %v3591_v32, 1  ;;  %v3599_v23 = vrot.slane %v3591_v32, 2  ;;  %v3551_v25 = vpop.f32.mrb[52].mxu1 }
 0x57b   : > { %v3672_v51 = vcombine.low %v3660_v35, %v3661_v6  ;;  %v3602_v55 = vsel %vm3576_vm6, %v3590_v16, %v3594_v47  ;;  %v3606_v26 = vmax.f32 %v3545_v46, %v3551_v25  ;;  %v3553_v45 = vpop.f32.mrb[53].mxu1 }
 0x57c   : > { %v3604_v37 = vsel %vm3579_vm7, %v3602_v55, %v3598_v21  ;;  %v3603_v58 = vsel %vm3576_vm6, %v3591_v32, %v3595_v18  ;;  %v3607_v44 = vmax.f32 %v3547_v53, %v3553_v45 }
 0x57d   : > { %3681 = vst.msk [vmem:[%s8486_s19] sm:$0x77] %vm8489_vm12, %v3672_v51  ;;  %v3644_v12 = vadd.f32 %v8472_v59, %v3604_v37  ;;  %v3605_v43 = vsel %vm3579_vm7, %v3603_v58, %v3599_v23  ;;  %v3610_v3 = vrot.slane %v3606_v26, 1 }
 0x57e   : > { %v3645_v10 = vadd.f32 %v8474_v2, %v3605_v43  ;;  %v3611_v40 = vrot.slane %v3607_v44, 1 }
 0x57f   : > { %vm3650_vm13 = vcmp.gt.f32.partialorder %v3644_v12, 0.0  ;;  %v3656_v5 = vmul.f32 0.1, %v3644_v12  ;;  %v3614_v31 = vmax.f32 %v3606_v26, %v3610_v3 }
 0x580   : > { %vm3651_vm14 = vcmp.gt.f32.partialorder %v3645_v10, 0.0  ;;  %v3657_v22 = vmul.f32 0.1, %v3645_v10  ;;  %v3615_v17 = vmax.f32 %v3607_v44, %v3611_v40 }
 0x581   : > { %v3662_v7 = vsel %vm3650_vm13, %v3644_v12, %v3656_v5  ;;  %v3618_v48 = vrot.slane %v3614_v31, 1  ;;  %v3622_v41 = vrot.slane %v3614_v31, 2 }
 0x582   : > { %v3663_v33 = vsel %vm3651_vm14, %v3645_v10, %v3657_v22  ;;  %v3619_v28 = vrot.slane %v3615_v17, 1  ;;  %v3623_v11 = vrot.slane %v3615_v17, 2 }
 0x583   : > { %v3673_v42 = vcombine.low %v3662_v7, %v3663_v33  ;;  %v3626_v61 = vsel %vm3576_vm6, %v3614_v31, %v3618_v48 }
 0x584   : > { %v3628_v19 = vsel %vm3579_vm7, %v3626_v61, %v3622_v41  ;;  %v3627_v8 = vsel %vm3576_vm6, %v3615_v17, %v3619_v28 }
 0x585   : > { %3682 = vst.msk [vmem:[%s8486_s19 + $0x8] sm:$0x77] %vm8489_vm12, %v3673_v42  ;;  %v3646_v49 = vadd.f32 %v8472_v59, %v3628_v19  ;;  %v3629_v20 = vsel %vm3579_vm7, %v3627_v8, %v3623_v11 }
 0x586   : > { %v3647_v63 = vadd.f32 %v8474_v2, %v3629_v20 }
 0x587   : > { %vm3652_vm15 = vcmp.gt.f32.partialorder %v3646_v49, 0.0  ;;  %v3658_v29 = vmul.f32 0.1, %v3646_v49 }
 0x588   : > { %vm3653_vm0 = vcmp.gt.f32.partialorder %v3647_v63, 0.0  ;;  %v3659_v54 = vmul.f32 0.1, %v3647_v63 }
 0x589   : > { %v3664_v14 = vsel %vm3652_vm15, %v3646_v49, %v3658_v29 }
 0x58a   : > { %v3665_v24 = vsel %vm3653_vm0, %v3647_v63, %v3659_v54 }
 0x58b   : > { %v3674_v50 = vcombine.low %v3664_v14, %v3665_v24 }
 0x58d   : > { %3683 = vst.msk [vmem:[%s8486_s19 + $0x10] sm:$0x77] %vm8489_vm12, %v3674_v50 }
 0x58e PF: > { %s15_s18 = sadd.s32 1, %s5158_s18  }
 0x58f   : > { %p12_p4 = scmp.ge.s32.totalorder %s15_s18, 4  }
 0x591   :  { %14 = sbr.rel (!%p12_p4) target bundleno = 1 (0x1), region = 72 }

</bundles_post_ra>
